<compile_context>
chip_gen: v7x
topology: tpu7x:2x2x1
jax: 0.10.0
libtpu: 0.0.40
codegen_flags: <defaults>
</compile_context>

<pallas_src>
import functools

import jax
import jax.numpy as jnp
from jax.experimental import pallas as pl
from jax.experimental.pallas import tpu as pltpu

EPS = 1e-5                    # nn.BatchNorm2d default eps
ACT_DTYPE = jnp.bfloat16      # activation / weight dtype fed to the MXU
LANE = 128
WPAD = 8                      # left zero-pad width (W / sublane dim) of the 3x3 buffer


def _round_up(x, m):
    return (x + m - 1) // m * m


def _vmem_budget():
    """Scoped-VMEM budget derived from the actual part (128 MiB v5e/v6e, 64 MiB v7x)."""
    try:
        cap = int(pltpu.get_tpu_info().vmem_capacity_bytes)
    except Exception:
        cap = 64 * 1024 * 1024
    return max(32 * 1024 * 1024, min(cap * 3 // 4, 96 * 1024 * 1024))


VMEM_LIMIT = _vmem_budget()
TM_CAP = 1024 if VMEM_LIMIT >= 64 * 1024 * 1024 else 512


def _row_tile(m, k, n):
    """Row-tile size: multiple of 8, fits the VMEM budget, and (when there is enough
    work) gives >=2 grid steps so both v7x TensorCores can be used."""
    def need(t):  # double-buffered bf16 x/y blocks + resident bf16 weight + slack
        return 2 * 2 * t * (k + n) + 2 * k * n + 4 * t * n + 8 * n

    cap = TM_CAP
    while cap > 128 and need(cap) > VMEM_LIMIT // 2:
        cap -= 128
    if m <= cap:
        if m >= 256:
            return _round_up((m + 1) // 2, 8)   # expose 2 parallel grid steps
        return m
    return cap


# --------------------- fused 1x1-conv matmul + BN stats ----------------------

def _mm_bn_kernel(*refs, in_affine, in_relu, m_total, tm):
    if in_affine:
        x_ref, w_ref, scale_ref, shift_ref, y_ref, psum_ref, psq_ref = refs
    else:
        x_ref, w_ref, y_ref, psum_ref, psq_ref = refs

    x = x_ref[...]
    if in_affine:                       # previous layer's BN affine (+ReLU) on load
        xf = x.astype(jnp.float32) * scale_ref[...] + shift_ref[...]
        if in_relu:
            xf = jnp.maximum(xf, 0.0)
        x = xf.astype(ACT_DTYPE)

    y = jnp.dot(x, w_ref[...], preferred_element_type=jnp.float32)
    y_ref[...] = y.astype(y_ref.dtype)

    if m_total % tm != 0:               # mask the partial last row tile out of stats
        rows = (jax.lax.broadcasted_iota(jnp.int32, (tm, 1), 0)
                + pl.program_id(0) * tm)
        y = jnp.where(rows < m_total, y, 0.0)
    psum_ref[0] = jnp.sum(y, axis=0, keepdims=True)
    psq_ref[0] = jnp.sum(y * y, axis=0, keepdims=True)


def matmul_bn(x, w, in_scale=None, in_shift=None, in_relu=False):
    """y = (relu(x*scale+shift) if affine else x) @ w  (bf16 in, f32 accumulate),
    plus per-row-block partial sums of y and y*y for the output BN batch stats.
    The whole (K, N) weight stays resident in VMEM (constant index_map)."""
    m, k = x.shape
    k2, n = w.shape
    assert k == k2
    tm = _row_tile(m, k, n)
    mg = pl.cdiv(m, tm)
    in_affine = in_scale is not None

    in_specs = [pl.BlockSpec((tm, k), lambda i: (i, 0)),
                pl.BlockSpec((k, n), lambda i: (0, 0))]         # resident weight
    args = [x.astype(ACT_DTYPE), w.astype(ACT_DTYPE)]
    if in_affine:
        in_specs += [pl.BlockSpec((1, k), lambda i: (0, 0)),
                     pl.BlockSpec((1, k), lambda i: (0, 0))]
        args += [in_scale, in_shift]

    kernel = functools.partial(_mm_bn_kernel, in_affine=in_affine,
                               in_relu=in_relu, m_total=m, tm=tm)
    y, psum, psq = pl.pallas_call(
        kernel,
        out_shape=(jax.ShapeDtypeStruct((m, n), ACT_DTYPE),
                   jax.ShapeDtypeStruct((mg, 1, n), jnp.float32),
                   jax.ShapeDtypeStruct((mg, 1, n), jnp.float32)),
        grid_spec=pltpu.PrefetchScalarGridSpec(
            num_scalar_prefetch=0,
            grid=(mg,),
            in_specs=in_specs,
            out_specs=(pl.BlockSpec((tm, n), lambda i: (i, 0)),
                       pl.BlockSpec((1, 1, n), lambda i: (i, 0, 0)),
                       pl.BlockSpec((1, 1, n), lambda i: (i, 0, 0)))),
        compiler_params=pltpu.CompilerParams(
            dimension_semantics=("parallel",),
            vmem_limit_bytes=VMEM_LIMIT),
        cost_estimate=pl.CostEstimate(
            flops=2 * m * k * n, transcendentals=0,
            bytes_accessed=2 * (m * k + k * n + m * n) + 8 * mg * n),
    )(*args)
    return y, psum, psq


# ------------- fused 3x3 conv (+ bn1 affine/relu on input, bn2 stats) --------

def _conv3x3_bn_kernel(xph_ref, w_ref, scale_ref, shift_ref,
                       y_ref, psum_ref, psq_ref, pbuf_ref, col_ref,
                       *, stride, ho, wo, cin):
    s = stride

    # Zero the padded buffer ONCE: scratch persists across grid steps and the
    # interior is fully overwritten every step.  The grid axis is "arbitrary"
    # (sequential) so step 0 always runs first.
    @pl.when(pl.program_id(0) == 0)
    def _():
        pbuf_ref[...] = jnp.zeros_like(pbuf_ref)

    # bn1 affine + ReLU on load, cast to bf16, write phase-plane interiors
    # (W offset = WPAD keeps the big store sublane-aligned).
    for p in range(s * s):
        xp = xph_ref[p].astype(jnp.float32)
        act = jnp.maximum(xp * scale_ref[...] + shift_ref[...], 0.0)
        pbuf_ref[p, 1:1 + ho, WPAD:WPAD + wo, :] = act.astype(pbuf_ref.dtype)

    # Gather the 9 taps into one (Ho*Wo, 9*Cin) bf16 im2col slab in VMEM.
    for dy in range(3):
        pr, r0 = (dy - 1) % s, 1 + (dy - 1) // s
        for dx in range(3):
            pc, c0 = (dx - 1) % s, WPAD + (dx - 1) // s
            t = 3 * dy + dx
            tap = pbuf_ref[pr * s + pc, r0:r0 + ho, c0:c0 + wo, :]
            col_ref[:, t * cin:(t + 1) * cin] = tap.reshape(ho * wo, cin)

    # One deep matmul on the MXU (contraction depth 9*Cin), f32 result.
    y = jnp.dot(col_ref[...], w_ref[...], preferred_element_type=jnp.float32)
    y_ref[...] = y.astype(y_ref.dtype)
    psum_ref[0] = jnp.sum(y, axis=0, keepdims=True)
    psq_ref[0] = jnp.sum(y * y, axis=0, keepdims=True)


def conv3x3_bn(x_ph_flat, w9, in_scale, in_shift, stride):
    """x_ph_flat: (N*s*s, Ho, Wo, Cin) phase-split pre-BN conv1 output.
    w9: (9*Cin, Cout).  Returns pre-BN conv2 output (N*Ho*Wo, Cout) plus per-image
    partial BN sums."""
    nph = stride * stride
    total, ho, wo, cin = x_ph_flat.shape
    n = total // nph
    cout = w9.shape[-1]
    pad_hi = 1 if stride == 1 else 0
    hs, ws = ho + 1 + pad_hi, WPAD + wo + pad_hi

    kernel = functools.partial(_conv3x3_bn_kernel, stride=stride,
                               ho=ho, wo=wo, cin=cin)
    y, psum, psq = pl.pallas_call(
        kernel,
        out_shape=(jax.ShapeDtypeStruct((n * ho * wo, cout), ACT_DTYPE),
                   jax.ShapeDtypeStruct((n, 1, cout), jnp.float32),
                   jax.ShapeDtypeStruct((n, 1, cout), jnp.float32)),
        grid_spec=pltpu.PrefetchScalarGridSpec(
            num_scalar_prefetch=0,
            grid=(n,),
            in_specs=[pl.BlockSpec((nph, ho, wo, cin), lambda b: (b, 0, 0, 0)),
                      pl.BlockSpec((9 * cin, cout), lambda b: (0, 0)),   # resident
                      pl.BlockSpec((1, cin), lambda b: (0, 0)),
                      pl.BlockSpec((1, cin), lambda b: (0, 0))],
            out_specs=(pl.BlockSpec((ho * wo, cout), lambda b: (b, 0)),
                       pl.BlockSpec((1, 1, cout), lambda b: (b, 0, 0)),
                       pl.BlockSpec((1, 1, cout), lambda b: (b, 0, 0))),
            scratch_shapes=[pltpu.VMEM((nph, hs, ws, cin), ACT_DTYPE),
                            pltpu.VMEM((ho * wo, 9 * cin), ACT_DTYPE)]),
        compiler_params=pltpu.CompilerParams(
            # "arbitrary": the zero-once at step 0 must precede every other step.
            # TODO(synk): per-step ring-zero + spatial row tiling would re-enable
            # megacore parallelism for very large feature maps on v7x.
            dimension_semantics=("arbitrary",),
            vmem_limit_bytes=VMEM_LIMIT),
        cost_estimate=pl.CostEstimate(
            flops=2 * n * ho * wo * 9 * cin * cout, transcendentals=0,
            bytes_accessed=2 * (total * ho * wo * cin + 9 * cin * cout
                                + n * ho * wo * cout)),
    )(x_ph_flat.astype(ACT_DTYPE), w9.astype(ACT_DTYPE), in_scale, in_shift)
    return y, psum, psq


# -------------- fused epilogue: bn3 + (downsample bn) + add + relu -----------

def _bn_add_relu_kernel(*refs, id_affine):
    if id_affine:
        y_ref, id_ref, s_ref, b_ref, si_ref, bi_ref, o_ref = refs
    else:
        y_ref, id_ref, s_ref, b_ref, o_ref = refs
    y = y_ref[...].astype(jnp.float32) * s_ref[...] + b_ref[...]
    iden = id_ref[...].astype(jnp.float32)
    if id_affine:
        iden = iden * si_ref[...] + bi_ref[...]
    o_ref[...] = jnp.maximum(y + iden, 0.0)


def bn_add_relu(y, identity, scale, shift, scale_id=None, shift_id=None):
    m, c = y.shape
    tm = min(m, TM_CAP)
    mg = pl.cdiv(m, tm)
    id_affine = scale_id is not None

    in_specs = [pl.BlockSpec((tm, c), lambda i: (i, 0)),
                pl.BlockSpec((tm, c), lambda i: (i, 0)),
                pl.BlockSpec((1, c), lambda i: (0, 0)),
                pl.BlockSpec((1, c), lambda i: (0, 0))]
    args = [y, identity, scale, shift]
    if id_affine:
        in_specs += [pl.BlockSpec((1, c), lambda i: (0, 0)),
                     pl.BlockSpec((1, c), lambda i: (0, 0))]
        args += [scale_id, shift_id]

    return pl.pallas_call(
        functools.partial(_bn_add_relu_kernel, id_affine=id_affine),
        out_shape=jax.ShapeDtypeStruct((m, c), jnp.float32),
        grid_spec=pltpu.PrefetchScalarGridSpec(
            num_scalar_prefetch=0,
            grid=(mg,),
            in_specs=in_specs,
            out_specs=pl.BlockSpec((tm, c), lambda i: (i, 0))),
        compiler_params=pltpu.CompilerParams(
            dimension_semantics=("parallel",),
            vmem_limit_bytes=VMEM_LIMIT),
    )(*args)


# ------------------------------- glue (JAX) ----------------------------------

def _finalize_stats(psum, psq, count, gamma, beta):
    # TODO(synk): single-pass E[x^2]-mean^2 can lose precision for very large
    # activations; switch to a shifted / two-pass variance for real workloads.
    s = jnp.sum(psum, axis=0)                              # (1, C)
    sq = jnp.sum(psq, axis=0)
    mean = s / count
    var = jnp.maximum(sq / count - mean * mean, 0.0)       # biased (training BN)
    scale = gamma.reshape(1, -1) * jax.lax.rsqrt(var + EPS)
    shift = beta.reshape(1, -1) - mean * scale
    return scale, shift


def _phase_split(x_nhwc, stride):
    """(N,H,W,C) -> (N*s*s, H/s, W/s, C); plane p = pr*s+pc holds x[:, pr::s, pc::s, :]."""
    n, h, w, c = x_nhwc.shape
    s = stride
    if s == 1:
        return x_nhwc
    t = x_nhwc.reshape(n, h // s, s, w // s, s, c)
    t = t.transpose(0, 2, 4, 1, 3, 5)
    return t.reshape(n * s * s, h // s, w // s, c)


def _pad2(a, r, c):
    pr, pc = r - a.shape[0], c - a.shape[1]
    return jnp.pad(a, ((0, pr), (0, pc))) if (pr or pc) else a


def _pad_gamma_beta(g, b, cp):
    c = g.shape[0]
    if cp == c:
        return g, b
    return (jnp.pad(g, (0, cp - c), constant_values=1.0),
            jnp.pad(b, (0, cp - c)))


def init_params(key, in_channels, out_channels, stride):
    ks = jax.random.split(key, 4)
    p = {
        # PyTorch OIHW conv weights (deterministic synthetic init, bias=False)
        "w1": 0.1 * jax.random.normal(ks[0], (out_channels, in_channels, 1, 1), jnp.float32),
        "w2": 0.1 * jax.random.normal(ks[1], (out_channels, out_channels, 3, 3), jnp.float32),
        "w3": 0.1 * jax.random.normal(ks[2], (out_channels * 4, out_channels, 1, 1), jnp.float32),
        # BatchNorm2d init: weight=1, bias=0
        "g1": jnp.ones((out_channels,), jnp.float32), "b1": jnp.zeros((out_channels,), jnp.float32),
        "g2": jnp.ones((out_channels,), jnp.float32), "b2": jnp.zeros((out_channels,), jnp.float32),
        "g3": jnp.ones((out_channels * 4,), jnp.float32), "b3": jnp.zeros((out_channels * 4,), jnp.float32),
    }
    if stride != 1 or in_channels != out_channels * 4:
        p["wd"] = 0.1 * jax.random.normal(ks[3], (out_channels * 4, in_channels, 1, 1), jnp.float32)
        p["gd"] = jnp.ones((out_channels * 4,), jnp.float32)
        p["bd"] = jnp.zeros((out_channels * 4,), jnp.float32)
    return p


def bottleneck_forward(x_nchw, p, stride):
    n, cin, h, w = x_nchw.shape
    cout = p["w1"].shape[0]
    c4 = 4 * cout
    assert stride in (1, 2) and h % stride == 0 and w % stride == 0
    ho, wo = h // stride, w // stride
    cin_p = _round_up(cin, LANE)
    cm_p = _round_up(cout, LANE)
    c4_p = _round_up(c4, LANE)

    # NCHW -> NHWC, channel-pad to a lane multiple, cast to bf16 (one fused XLA pass).
    # TODO(synk): these layout transposes are still XLA-level HBM passes; change the
    # external contract to NHWC (or fold into the conv index_maps) to drop them.
    x = jnp.transpose(x_nchw, (0, 2, 3, 1))
    x = jnp.pad(x, ((0, 0), (0, 0), (0, 0), (0, cin_p - cin))).astype(ACT_DTYPE)
    x2d = x.reshape(-1, cin_p)

    # Conv weights -> zero-padded matmul layouts.
    w1 = _pad2(p["w1"].reshape(cout, cin).T, cin_p, cm_p)                # (Cin_p, Cm_p)
    w2 = jnp.transpose(p["w2"], (2, 3, 1, 0))                            # (3,3,Cin,Cout)
    w2 = jnp.pad(w2, ((0, 0), (0, 0), (0, cm_p - cout), (0, cm_p - cout)))
    w2 = w2.reshape(9 * cm_p, cm_p)                                      # (9*Cm_p, Cm_p)
    w3 = _pad2(p["w3"].reshape(c4, cout).T, cm_p, c4_p)                  # (Cm_p, C4_p)

    g1, b1 = _pad_gamma_beta(p["g1"], p["b1"], cm_p)
    g2, b2 = _pad_gamma_beta(p["g2"], p["b2"], cm_p)
    g3, b3 = _pad_gamma_beta(p["g3"], p["b3"], c4_p)

    # conv1 (1x1) with fused bn1 batch statistics.
    y1, ps1, pq1 = matmul_bn(x2d, w1)
    s1, sh1 = _finalize_stats(ps1, pq1, n * h * w, g1, b1)

    # conv2 (3x3, stride, pad=1): bn1 affine+relu on load, im2col + one matmul, bn2 stats.
    # TODO(synk): the stride-2 phase split below is one extra HBM pass over y1; fold it
    # into conv1's output layout or conv2's input DMA.
    y1_ph = _phase_split(y1.reshape(n, h, w, cm_p), stride)
    y2, ps2, pq2 = conv3x3_bn(y1_ph, w2, s1, sh1, stride)
    s2, sh2 = _finalize_stats(ps2, pq2, n * ho * wo, g2, b2)

    # conv3 (1x1): bn2 affine+relu on load, bn3 stats fused.
    y3, ps3, pq3 = matmul_bn(y2, w3, in_scale=s2, in_shift=sh2, in_relu=True)
    s3, sh3 = _finalize_stats(ps3, pq3, n * ho * wo, g3, b3)

    # Identity / downsample path.
    if "wd" in p:
        wd = _pad2(p["wd"].reshape(c4, cin).T, cin_p, c4_p)
        gd, bdp = _pad_gamma_beta(p["gd"], p["bd"], c4_p)
        # TODO(synk): fold this strided subsample into the downsample matmul's
        # index_map to avoid the small gather copy.
        xs = x[:, ::stride, ::stride, :].reshape(-1, cin_p)
        idy, psd, pqd = matmul_bn(xs, wd)
        sd, shd = _finalize_stats(psd, pqd, n * ho * wo, gd, bdp)
        out = bn_add_relu(y3, idy, s3, sh3, sd, shd)
    else:
        out = bn_add_relu(y3, x2d, s3, sh3)       # bf16 identity, no dead affine

    out = out[:, :c4].reshape(n, ho, wo, c4)
    return jnp.transpose(out, (0, 3, 1, 2))       # back to NCHW


# --------------------------- pure-JAX reference -------------------------------

def bottleneck_ref(x, p, stride):
    def conv(x, w, s, pad):
        return jax.lax.conv_general_dilated(
            x, w, (s, s), pad, dimension_numbers=("NCHW", "OIHW", "NCHW"))

    def bn(x, g, b):
        mean = jnp.mean(x, axis=(0, 2, 3), keepdims=True)
        var = jnp.var(x, axis=(0, 2, 3), keepdims=True)
        xn = (x - mean) * jax.lax.rsqrt(var + EPS)
        return xn * g.reshape(1, -1, 1, 1) + b.reshape(1, -1, 1, 1)

    identity = x
    y = jax.nn.relu(bn(conv(x, p["w1"], 1, "VALID"), p["g1"], p["b1"]))
    y = jax.nn.relu(bn(conv(y, p["w2"], stride, [(1, 1), (1, 1)]), p["g2"], p["b2"]))
    y = bn(conv(y, p["w3"], 1, "VALID"), p["g3"], p["b3"])
    if "wd" in p:
        identity = bn(conv(identity, p["wd"], stride, "VALID"), p["gd"], p["bd"])
    return jax.nn.relu(y + identity)


# ------------------------------------ main ------------------------------------

if __name__ == "__main__":
    key = jax.random.PRNGKey(0)
    kx, kp = jax.random.split(key)

    N, IN_C, OUT_C, H, W, STRIDE = 2, 8, 8, 16, 16, 2
    x = jax.random.normal(kx, (N, IN_C, H, W), jnp.float32)
    params = init_params(kp, IN_C, OUT_C, STRIDE)

    fwd = jax.jit(bottleneck_forward, static_argnums=2)
    out = jax.block_until_ready(fwd(x, params, STRIDE))

    ref = bottleneck_ref(x, params, STRIDE)
    assert out.shape == ref.shape == (N, OUT_C * 4, H // STRIDE, W // STRIDE), out.shape
    max_err = float(jnp.max(jnp.abs(out - ref)))
    # bf16 MXU inputs -> looser tolerance than a pure-f32 path.
    assert jnp.allclose(out, ref, atol=5e-2, rtol=5e-2), max_err
    print("KERNEL_OK")
</pallas_src>

<mosaic_0001>
module attributes {stable_mosaic.version = 11 : i64} {
  func.func @_mm_bn_kernel(%arg0: i32, %arg1: memref<256x128xbf16, #tpu.memory_space<vmem>>, %arg2: memref<128x128xbf16, #tpu.memory_space<vmem>>, %arg3: memref<256x128xbf16, #tpu.memory_space<vmem>>, %arg4: memref<1x1x128xf32, #tpu.memory_space<vmem>>, %arg5: memref<1x1x128xf32, #tpu.memory_space<vmem>>) attributes {dimension_semantics = [#tpu.dimension_semantics<parallel>], iteration_bounds = array<i64: 2>, scalar_prefetch = 0 : i64, scratch_operands = 0 : i64, tpu.core_type = #tpu.core_type<tc>, window_params = [{transform_indices = @transform_0, window_bounds = array<i64: 256, 128>}, {pipeline_mode = #tpu.pipeline_mode<synchronous>, transform_indices = @transform_1, window_bounds = array<i64: 128, 128>}, {transform_indices = @transform_2, window_bounds = array<i64: 256, 128>}, {transform_indices = @transform_3, window_bounds = array<i64: 1, 1, 128>}, {transform_indices = @transform_4, window_bounds = array<i64: 1, 1, 128>}]} {
    %c0 = arith.constant 0 : index
    %c0_0 = arith.constant 0 : index
    %0 = vector.load %arg1[%c0, %c0_0] : memref<256x128xbf16, #tpu.memory_space<vmem>>, vector<256x128xbf16>
    %c0_1 = arith.constant 0 : index
    %c0_2 = arith.constant 0 : index
    %1 = vector.load %arg2[%c0_1, %c0_2] : memref<128x128xbf16, #tpu.memory_space<vmem>>, vector<128x128xbf16>
    %cst = arith.constant dense<0.000000e+00> : vector<256x128xf32>
    %2 = tpu.matmul %0, %1, %cst {dimension_numbers = #tpu.dot_dimension_numbers<[1], [0], [0], [1], [0, 0, 1, 1], [], []>} : vector<256x128xbf16>, vector<128x128xbf16>, vector<256x128xf32> -> vector<256x128xf32>
    %3 = arith.truncf %2 : vector<256x128xf32> to vector<256x128xbf16>
    %c0_3 = arith.constant 0 : index
    %c0_4 = arith.constant 0 : index
    %4 = vector.load %arg3[%c0_3, %c0_4] : memref<256x128xbf16, #tpu.memory_space<vmem>>, vector<256x128xbf16>
    tpu.vector_store %arg3[%c0_3, %c0_4], %3 {strides = array<i32>} : memref<256x128xbf16, #tpu.memory_space<vmem>>, vector<256x128xbf16>,
    %cst_5 = arith.constant dense<0.000000e+00> : vector<128xf32>
    %5 = vector.multi_reduction <add>, %2, %cst_5 [0] : vector<256x128xf32> to vector<128xf32>
    %6 = vector.shape_cast %5 : vector<128xf32> to vector<1x128xf32>
    %c0_6 = arith.constant 0 : index
    %c0_7 = arith.constant 0 : index
    %c0_8 = arith.constant 0 : index
    %7 = vector.load %arg4[%c0_6, %c0_7, %c0_8] : memref<1x1x128xf32, #tpu.memory_space<vmem>>, vector<1x1x128xf32>
    %8 = vector.shape_cast %7 : vector<1x1x128xf32> to vector<1x128xf32>
    %9 = vector.shape_cast %6 : vector<1x128xf32> to vector<1x1x128xf32>
    tpu.vector_store %arg4[%c0_6, %c0_7, %c0_8], %9 {strides = array<i32>} : memref<1x1x128xf32, #tpu.memory_space<vmem>>, vector<1x1x128xf32>,
    %10 = arith.mulf %2, %2 : vector<256x128xf32>
    %cst_9 = arith.constant dense<0.000000e+00> : vector<128xf32>
    %11 = vector.multi_reduction <add>, %10, %cst_9 [0] : vector<256x128xf32> to vector<128xf32>
    %12 = vector.shape_cast %11 : vector<128xf32> to vector<1x128xf32>
    %c0_10 = arith.constant 0 : index
    %c0_11 = arith.constant 0 : index
    %c0_12 = arith.constant 0 : index
    %13 = vector.load %arg5[%c0_10, %c0_11, %c0_12] : memref<1x1x128xf32, #tpu.memory_space<vmem>>, vector<1x1x128xf32>
    %14 = vector.shape_cast %13 : vector<1x1x128xf32> to vector<1x128xf32>
    %15 = vector.shape_cast %12 : vector<1x128xf32> to vector<1x1x128xf32>
    tpu.vector_store %arg5[%c0_10, %c0_11, %c0_12], %15 {strides = array<i32>} : memref<1x1x128xf32, #tpu.memory_space<vmem>>, vector<1x1x128xf32>,
    return
  }
  func.func @transform_0(%arg0: i32) -> (i32, i32) {
    %c0_i32 = arith.constant 0 : i32
    %c0_i32_0 = arith.constant 0 : i32
    return %arg0, %c0_i32 : i32, i32
  }
  func.func @transform_1(%arg0: i32) -> (i32, i32) {
    %c0_i32 = arith.constant 0 : i32
    %c0_i32_0 = arith.constant 0 : i32
    %c0_i32_1 = arith.constant 0 : i32
    return %c0_i32, %c0_i32_0 : i32, i32
  }
  func.func @transform_2(%arg0: i32) -> (i32, i32) {
    %c0_i32 = arith.constant 0 : i32
    %c0_i32_0 = arith.constant 0 : i32
    return %arg0, %c0_i32 : i32, i32
  }
  func.func @transform_3(%arg0: i32) -> (i32, i32, i32) {
    %c0_i32 = arith.constant 0 : i32
    %c0_i32_0 = arith.constant 0 : i32
    %c0_i32_1 = arith.constant 0 : i32
    return %arg0, %c0_i32, %c0_i32_0 : i32, i32, i32
  }
  func.func @transform_4(%arg0: i32) -> (i32, i32, i32) {
    %c0_i32 = arith.constant 0 : i32
    %c0_i32_0 = arith.constant 0 : i32
    %c0_i32_1 = arith.constant 0 : i32
    return %arg0, %c0_i32, %c0_i32_0 : i32, i32, i32
  }
}

module attributes {stable_mosaic.version = 11 : i64} {
  func.func @_conv3x3_bn_kernel(%arg0: i32, %arg1: memref<4x8x8x128xbf16, #tpu.memory_space<vmem>>, %arg2: memref<1152x128xbf16, #tpu.memory_space<vmem>>, %arg3: memref<1x128xf32, #tpu.memory_space<vmem>>, %arg4: memref<1x128xf32, #tpu.memory_space<vmem>>, %arg5: memref<64x128xbf16, #tpu.memory_space<vmem>>, %arg6: memref<1x1x128xf32, #tpu.memory_space<vmem>>, %arg7: memref<1x1x128xf32, #tpu.memory_space<vmem>>, %arg8: memref<4x9x16x128xbf16, #tpu.memory_space<vmem>>, %arg9: memref<64x1152xbf16, #tpu.memory_space<vmem>>) attributes {dimension_semantics = [#tpu.dimension_semantics<arbitrary>], iteration_bounds = array<i64: 2>, scalar_prefetch = 0 : i64, scratch_operands = 2 : i64, tpu.core_type = #tpu.core_type<tc>, window_params = [{transform_indices = @transform_0, window_bounds = array<i64: 4, 8, 8, 128>}, {pipeline_mode = #tpu.pipeline_mode<synchronous>, transform_indices = @transform_1, window_bounds = array<i64: 1152, 128>}, {pipeline_mode = #tpu.pipeline_mode<synchronous>, transform_indices = @transform_2, window_bounds = array<i64: 1, 128>}, {pipeline_mode = #tpu.pipeline_mode<synchronous>, transform_indices = @transform_3, window_bounds = array<i64: 1, 128>}, {transform_indices = @transform_4, window_bounds = array<i64: 64, 128>}, {transform_indices = @transform_5, window_bounds = array<i64: 1, 1, 128>}, {transform_indices = @transform_6, window_bounds = array<i64: 1, 1, 128>}]} {
    %c0_i32 = arith.constant 0 : i32
    %0 = arith.cmpi eq, %arg0, %c0_i32 : i32
    %1 = arith.extui %0 : i1 to i32
    %c0_i32_0 = arith.constant 0 : i32
    %2 = arith.cmpi ne, %1, %c0_i32_0 : i32
    scf.if %2 {
      %cst_107 = arith.constant 0.000000e+00 : bf16
      %123 = vector.broadcast %cst_107 : bf16 to vector<4x9x16x128xbf16>
      %c0_108 = arith.constant 0 : index
      %c0_109 = arith.constant 0 : index
      %c0_110 = arith.constant 0 : index
      %c0_111 = arith.constant 0 : index
      %124 = vector.load %arg8[%c0_108, %c0_109, %c0_110, %c0_111] : memref<4x9x16x128xbf16, #tpu.memory_space<vmem>>, vector<4x9x16x128xbf16>
      tpu.vector_store %arg8[%c0_108, %c0_109, %c0_110, %c0_111], %123 {strides = array<i32>} : memref<4x9x16x128xbf16, #tpu.memory_space<vmem>>, vector<4x9x16x128xbf16>,
    } else {
    }
    %c0 = arith.constant 0 : index
    %c0_1 = arith.constant 0 : index
    %c0_2 = arith.constant 0 : index
    %c0_3 = arith.constant 0 : index
    %3 = vector.load %arg1[%c0, %c0_1, %c0_2, %c0_3] : memref<4x8x8x128xbf16, #tpu.memory_space<vmem>>, vector<1x8x8x128xbf16>
    %4 = vector.shape_cast %3 : vector<1x8x8x128xbf16> to vector<8x8x128xbf16>
    %5 = arith.extf %4 : vector<8x8x128xbf16> to vector<8x8x128xf32>
    %c0_4 = arith.constant 0 : index
    %c0_5 = arith.constant 0 : index
    %6 = vector.load %arg3[%c0_4, %c0_5] : memref<1x128xf32, #tpu.memory_space<vmem>>, vector<1x128xf32>
    %7 = vector.shape_cast %6 : vector<1x128xf32> to vector<1x1x128xf32>
    %8 = vector.broadcast %7 : vector<1x1x128xf32> to vector<8x8x128xf32>
    %9 = arith.mulf %5, %8 : vector<8x8x128xf32>
    %c0_6 = arith.constant 0 : index
    %c0_7 = arith.constant 0 : index
    %10 = vector.load %arg4[%c0_6, %c0_7] : memref<1x128xf32, #tpu.memory_space<vmem>>, vector<1x128xf32>
    %11 = vector.shape_cast %10 : vector<1x128xf32> to vector<1x1x128xf32>
    %12 = vector.broadcast %11 : vector<1x1x128xf32> to vector<8x8x128xf32>
    %13 = arith.addf %9, %12 : vector<8x8x128xf32>
    %cst = arith.constant 0.000000e+00 : f32
    %14 = vector.broadcast %cst : f32 to vector<8x8x128xf32>
    %15 = arith.maximumf %13, %14 : vector<8x8x128xf32>
    %16 = arith.truncf %15 : vector<8x8x128xf32> to vector<8x8x128xbf16>
    %c0_8 = arith.constant 0 : index
    %c1 = arith.constant 1 : index
    %c8 = arith.constant 8 : index
    %c0_9 = arith.constant 0 : index
    %17 = vector.load %arg8[%c0_8, %c1, %c8, %c0_9] : memref<4x9x16x128xbf16, #tpu.memory_space<vmem>>, vector<1x8x8x128xbf16>
    %18 = vector.shape_cast %17 : vector<1x8x8x128xbf16> to vector<8x8x128xbf16>
    %19 = vector.shape_cast %16 : vector<8x8x128xbf16> to vector<1x8x8x128xbf16>
    tpu.vector_store %arg8[%c0_8, %c1, %c8, %c0_9], %19 {strides = array<i32>} : memref<4x9x16x128xbf16, #tpu.memory_space<vmem>>, vector<1x8x8x128xbf16>,
    %c1_10 = arith.constant 1 : index
    %c0_11 = arith.constant 0 : index
    %c0_12 = arith.constant 0 : index
    %c0_13 = arith.constant 0 : index
    %20 = vector.load %arg1[%c1_10, %c0_11, %c0_12, %c0_13] : memref<4x8x8x128xbf16, #tpu.memory_space<vmem>>, vector<1x8x8x128xbf16>
    %21 = vector.shape_cast %20 : vector<1x8x8x128xbf16> to vector<8x8x128xbf16>
    %22 = arith.extf %21 : vector<8x8x128xbf16> to vector<8x8x128xf32>
    %c0_14 = arith.constant 0 : index
    %c0_15 = arith.constant 0 : index
    %23 = vector.load %arg3[%c0_14, %c0_15] : memref<1x128xf32, #tpu.memory_space<vmem>>, vector<1x128xf32>
    %24 = vector.shape_cast %23 : vector<1x128xf32> to vector<1x1x128xf32>
    %25 = vector.broadcast %24 : vector<1x1x128xf32> to vector<8x8x128xf32>
    %26 = arith.mulf %22, %25 : vector<8x8x128xf32>
    %c0_16 = arith.constant 0 : index
    %c0_17 = arith.constant 0 : index
    %27 = vector.load %arg4[%c0_16, %c0_17] : memref<1x128xf32, #tpu.memory_space<vmem>>, vector<1x128xf32>
    %28 = vector.shape_cast %27 : vector<1x128xf32> to vector<1x1x128xf32>
    %29 = vector.broadcast %28 : vector<1x1x128xf32> to vector<8x8x128xf32>
    %30 = arith.addf %26, %29 : vector<8x8x128xf32>
    %cst_18 = arith.constant 0.000000e+00 : f32
    %31 = vector.broadcast %cst_18 : f32 to vector<8x8x128xf32>
    %32 = arith.maximumf %30, %31 : vector<8x8x128xf32>
    %33 = arith.truncf %32 : vector<8x8x128xf32> to vector<8x8x128xbf16>
    %c1_19 = arith.constant 1 : index
    %c1_20 = arith.constant 1 : index
    %c8_21 = arith.constant 8 : index
    %c0_22 = arith.constant 0 : index
    %34 = vector.load %arg8[%c1_19, %c1_20, %c8_21, %c0_22] : memref<4x9x16x128xbf16, #tpu.memory_space<vmem>>, vector<1x8x8x128xbf16>
    %35 = vector.shape_cast %34 : vector<1x8x8x128xbf16> to vector<8x8x128xbf16>
    %36 = vector.shape_cast %33 : vector<8x8x128xbf16> to vector<1x8x8x128xbf16>
    tpu.vector_store %arg8[%c1_19, %c1_20, %c8_21, %c0_22], %36 {strides = array<i32>} : memref<4x9x16x128xbf16, #tpu.memory_space<vmem>>, vector<1x8x8x128xbf16>,
    %c2 = arith.constant 2 : index
    %c0_23 = arith.constant 0 : index
    %c0_24 = arith.constant 0 : index
    %c0_25 = arith.constant 0 : index
    %37 = vector.load %arg1[%c2, %c0_23, %c0_24, %c0_25] : memref<4x8x8x128xbf16, #tpu.memory_space<vmem>>, vector<1x8x8x128xbf16>
    %38 = vector.shape_cast %37 : vector<1x8x8x128xbf16> to vector<8x8x128xbf16>
    %39 = arith.extf %38 : vector<8x8x128xbf16> to vector<8x8x128xf32>
    %c0_26 = arith.constant 0 : index
    %c0_27 = arith.constant 0 : index
    %40 = vector.load %arg3[%c0_26, %c0_27] : memref<1x128xf32, #tpu.memory_space<vmem>>, vector<1x128xf32>
    %41 = vector.shape_cast %40 : vector<1x128xf32> to vector<1x1x128xf32>
    %42 = vector.broadcast %41 : vector<1x1x128xf32> to vector<8x8x128xf32>
    %43 = arith.mulf %39, %42 : vector<8x8x128xf32>
    %c0_28 = arith.constant 0 : index
    %c0_29 = arith.constant 0 : index
    %44 = vector.load %arg4[%c0_28, %c0_29] : memref<1x128xf32, #tpu.memory_space<vmem>>, vector<1x128xf32>
    %45 = vector.shape_cast %44 : vector<1x128xf32> to vector<1x1x128xf32>
    %46 = vector.broadcast %45 : vector<1x1x128xf32> to vector<8x8x128xf32>
    %47 = arith.addf %43, %46 : vector<8x8x128xf32>
    %cst_30 = arith.constant 0.000000e+00 : f32
    %48 = vector.broadcast %cst_30 : f32 to vector<8x8x128xf32>
    %49 = arith.maximumf %47, %48 : vector<8x8x128xf32>
    %50 = arith.truncf %49 : vector<8x8x128xf32> to vector<8x8x128xbf16>
    %c2_31 = arith.constant 2 : index
    %c1_32 = arith.constant 1 : index
    %c8_33 = arith.constant 8 : index
    %c0_34 = arith.constant 0 : index
    %51 = vector.load %arg8[%c2_31, %c1_32, %c8_33, %c0_34] : memref<4x9x16x128xbf16, #tpu.memory_space<vmem>>, vector<1x8x8x128xbf16>
    %52 = vector.shape_cast %51 : vector<1x8x8x128xbf16> to vector<8x8x128xbf16>
    %53 = vector.shape_cast %50 : vector<8x8x128xbf16> to vector<1x8x8x128xbf16>
    tpu.vector_store %arg8[%c2_31, %c1_32, %c8_33, %c0_34], %53 {strides = array<i32>} : memref<4x9x16x128xbf16, #tpu.memory_space<vmem>>, vector<1x8x8x128xbf16>,
    %c3 = arith.constant 3 : index
    %c0_35 = arith.constant 0 : index
    %c0_36 = arith.constant 0 : index
    %c0_37 = arith.constant 0 : index
    %54 = vector.load %arg1[%c3, %c0_35, %c0_36, %c0_37] : memref<4x8x8x128xbf16, #tpu.memory_space<vmem>>, vector<1x8x8x128xbf16>
    %55 = vector.shape_cast %54 : vector<1x8x8x128xbf16> to vector<8x8x128xbf16>
    %56 = arith.extf %55 : vector<8x8x128xbf16> to vector<8x8x128xf32>
    %c0_38 = arith.constant 0 : index
    %c0_39 = arith.constant 0 : index
    %57 = vector.load %arg3[%c0_38, %c0_39] : memref<1x128xf32, #tpu.memory_space<vmem>>, vector<1x128xf32>
    %58 = vector.shape_cast %57 : vector<1x128xf32> to vector<1x1x128xf32>
    %59 = vector.broadcast %58 : vector<1x1x128xf32> to vector<8x8x128xf32>
    %60 = arith.mulf %56, %59 : vector<8x8x128xf32>
    %c0_40 = arith.constant 0 : index
    %c0_41 = arith.constant 0 : index
    %61 = vector.load %arg4[%c0_40, %c0_41] : memref<1x128xf32, #tpu.memory_space<vmem>>, vector<1x128xf32>
    %62 = vector.shape_cast %61 : vector<1x128xf32> to vector<1x1x128xf32>
    %63 = vector.broadcast %62 : vector<1x1x128xf32> to vector<8x8x128xf32>
    %64 = arith.addf %60, %63 : vector<8x8x128xf32>
    %cst_42 = arith.constant 0.000000e+00 : f32
    %65 = vector.broadcast %cst_42 : f32 to vector<8x8x128xf32>
    %66 = arith.maximumf %64, %65 : vector<8x8x128xf32>
    %67 = arith.truncf %66 : vector<8x8x128xf32> to vector<8x8x128xbf16>
    %c3_43 = arith.constant 3 : index
    %c1_44 = arith.constant 1 : index
    %c8_45 = arith.constant 8 : index
    %c0_46 = arith.constant 0 : index
    %68 = vector.load %arg8[%c3_43, %c1_44, %c8_45, %c0_46] : memref<4x9x16x128xbf16, #tpu.memory_space<vmem>>, vector<1x8x8x128xbf16>
    %69 = vector.shape_cast %68 : vector<1x8x8x128xbf16> to vector<8x8x128xbf16>
    %70 = vector.shape_cast %67 : vector<8x8x128xbf16> to vector<1x8x8x128xbf16>
    tpu.vector_store %arg8[%c3_43, %c1_44, %c8_45, %c0_46], %70 {strides = array<i32>} : memref<4x9x16x128xbf16, #tpu.memory_space<vmem>>, vector<1x8x8x128xbf16>,
    %c3_47 = arith.constant 3 : index
    %c0_48 = arith.constant 0 : index
    %c7 = arith.constant 7 : index
    %c0_49 = arith.constant 0 : index
    %71 = vector.load %arg8[%c3_47, %c0_48, %c7, %c0_49] : memref<4x9x16x128xbf16, #tpu.memory_space<vmem>>, vector<1x8x8x128xbf16>
    %72 = vector.shape_cast %71 : vector<1x8x8x128xbf16> to vector<8x8x128xbf16>
    %73 = vector.shape_cast %72 : vector<8x8x128xbf16> to vector<64x128xbf16>
    %c0_50 = arith.constant 0 : index
    %c0_51 = arith.constant 0 : index
    %74 = vector.load %arg9[%c0_50, %c0_51] : memref<64x1152xbf16, #tpu.memory_space<vmem>>, vector<64x128xbf16>
    tpu.vector_store %arg9[%c0_50, %c0_51], %73 {strides = array<i32>} : memref<64x1152xbf16, #tpu.memory_space<vmem>>, vector<64x128xbf16>,
    %c2_52 = arith.constant 2 : index
    %c0_53 = arith.constant 0 : index
    %c8_54 = arith.constant 8 : index
    %c0_55 = arith.constant 0 : index
    %75 = vector.load %arg8[%c2_52, %c0_53, %c8_54, %c0_55] : memref<4x9x16x128xbf16, #tpu.memory_space<vmem>>, vector<1x8x8x128xbf16>
    %76 = vector.shape_cast %75 : vector<1x8x8x128xbf16> to vector<8x8x128xbf16>
    %77 = vector.shape_cast %76 : vector<8x8x128xbf16> to vector<64x128xbf16>
    %c0_56 = arith.constant 0 : index
    %c128 = arith.constant 128 : index
    %78 = vector.load %arg9[%c0_56, %c128] : memref<64x1152xbf16, #tpu.memory_space<vmem>>, vector<64x128xbf16>
    tpu.vector_store %arg9[%c0_56, %c128], %77 {strides = array<i32>} : memref<64x1152xbf16, #tpu.memory_space<vmem>>, vector<64x128xbf16>,
    %c3_57 = arith.constant 3 : index
    %c0_58 = arith.constant 0 : index
    %c8_59 = arith.constant 8 : index
    %c0_60 = arith.constant 0 : index
    %79 = vector.load %arg8[%c3_57, %c0_58, %c8_59, %c0_60] : memref<4x9x16x128xbf16, #tpu.memory_space<vmem>>, vector<1x8x8x128xbf16>
    %80 = vector.shape_cast %79 : vector<1x8x8x128xbf16> to vector<8x8x128xbf16>
    %81 = vector.shape_cast %80 : vector<8x8x128xbf16> to vector<64x128xbf16>
    %c0_61 = arith.constant 0 : index
    %c256 = arith.constant 256 : index
    %82 = vector.load %arg9[%c0_61, %c256] : memref<64x1152xbf16, #tpu.memory_space<vmem>>, vector<64x128xbf16>
    tpu.vector_store %arg9[%c0_61, %c256], %81 {strides = array<i32>} : memref<64x1152xbf16, #tpu.memory_space<vmem>>, vector<64x128xbf16>,
    %c1_62 = arith.constant 1 : index
    %c1_63 = arith.constant 1 : index
    %c7_64 = arith.constant 7 : index
    %c0_65 = arith.constant 0 : index
    %83 = vector.load %arg8[%c1_62, %c1_63, %c7_64, %c0_65] : memref<4x9x16x128xbf16, #tpu.memory_space<vmem>>, vector<1x8x8x128xbf16>
    %84 = vector.shape_cast %83 : vector<1x8x8x128xbf16> to vector<8x8x128xbf16>
    %85 = vector.shape_cast %84 : vector<8x8x128xbf16> to vector<64x128xbf16>
    %c0_66 = arith.constant 0 : index
    %c384 = arith.constant 384 : index
    %86 = vector.load %arg9[%c0_66, %c384] : memref<64x1152xbf16, #tpu.memory_space<vmem>>, vector<64x128xbf16>
    tpu.vector_store %arg9[%c0_66, %c384], %85 {strides = array<i32>} : memref<64x1152xbf16, #tpu.memory_space<vmem>>, vector<64x128xbf16>,
    %c0_67 = arith.constant 0 : index
    %c1_68 = arith.constant 1 : index
    %c8_69 = arith.constant 8 : index
    %c0_70 = arith.constant 0 : index
    %87 = vector.load %arg8[%c0_67, %c1_68, %c8_69, %c0_70] : memref<4x9x16x128xbf16, #tpu.memory_space<vmem>>, vector<1x8x8x128xbf16>
    %88 = vector.shape_cast %87 : vector<1x8x8x128xbf16> to vector<8x8x128xbf16>
    %89 = vector.shape_cast %88 : vector<8x8x128xbf16> to vector<64x128xbf16>
    %c0_71 = arith.constant 0 : index
    %c512 = arith.constant 512 : index
    %90 = vector.load %arg9[%c0_71, %c512] : memref<64x1152xbf16, #tpu.memory_space<vmem>>, vector<64x128xbf16>
    tpu.vector_store %arg9[%c0_71, %c512], %89 {strides = array<i32>} : memref<64x1152xbf16, #tpu.memory_space<vmem>>, vector<64x128xbf16>,
    %c1_72 = arith.constant 1 : index
    %c1_73 = arith.constant 1 : index
    %c8_74 = arith.constant 8 : index
    %c0_75 = arith.constant 0 : index
    %91 = vector.load %arg8[%c1_72, %c1_73, %c8_74, %c0_75] : memref<4x9x16x128xbf16, #tpu.memory_space<vmem>>, vector<1x8x8x128xbf16>
    %92 = vector.shape_cast %91 : vector<1x8x8x128xbf16> to vector<8x8x128xbf16>
    %93 = vector.shape_cast %92 : vector<8x8x128xbf16> to vector<64x128xbf16>
    %c0_76 = arith.constant 0 : index
    %c640 = arith.constant 640 : index
    %94 = vector.load %arg9[%c0_76, %c640] : memref<64x1152xbf16, #tpu.memory_space<vmem>>, vector<64x128xbf16>
    tpu.vector_store %arg9[%c0_76, %c640], %93 {strides = array<i32>} : memref<64x1152xbf16, #tpu.memory_space<vmem>>, vector<64x128xbf16>,
    %c3_77 = arith.constant 3 : index
    %c1_78 = arith.constant 1 : index
    %c7_79 = arith.constant 7 : index
    %c0_80 = arith.constant 0 : index
    %95 = vector.load %arg8[%c3_77, %c1_78, %c7_79, %c0_80] : memref<4x9x16x128xbf16, #tpu.memory_space<vmem>>, vector<1x8x8x128xbf16>
    %96 = vector.shape_cast %95 : vector<1x8x8x128xbf16> to vector<8x8x128xbf16>
    %97 = vector.shape_cast %96 : vector<8x8x128xbf16> to vector<64x128xbf16>
    %c0_81 = arith.constant 0 : index
    %c768 = arith.constant 768 : index
    %98 = vector.load %arg9[%c0_81, %c768] : memref<64x1152xbf16, #tpu.memory_space<vmem>>, vector<64x128xbf16>
    tpu.vector_store %arg9[%c0_81, %c768], %97 {strides = array<i32>} : memref<64x1152xbf16, #tpu.memory_space<vmem>>, vector<64x128xbf16>,
    %c2_82 = arith.constant 2 : index
    %c1_83 = arith.constant 1 : index
    %c8_84 = arith.constant 8 : index
    %c0_85 = arith.constant 0 : index
    %99 = vector.load %arg8[%c2_82, %c1_83, %c8_84, %c0_85] : memref<4x9x16x128xbf16, #tpu.memory_space<vmem>>, vector<1x8x8x128xbf16>
    %100 = vector.shape_cast %99 : vector<1x8x8x128xbf16> to vector<8x8x128xbf16>
    %101 = vector.shape_cast %100 : vector<8x8x128xbf16> to vector<64x128xbf16>
    %c0_86 = arith.constant 0 : index
    %c896 = arith.constant 896 : index
    %102 = vector.load %arg9[%c0_86, %c896] : memref<64x1152xbf16, #tpu.memory_space<vmem>>, vector<64x128xbf16>
    tpu.vector_store %arg9[%c0_86, %c896], %101 {strides = array<i32>} : memref<64x1152xbf16, #tpu.memory_space<vmem>>, vector<64x128xbf16>,
    %c3_87 = arith.constant 3 : index
    %c1_88 = arith.constant 1 : index
    %c8_89 = arith.constant 8 : index
    %c0_90 = arith.constant 0 : index
    %103 = vector.load %arg8[%c3_87, %c1_88, %c8_89, %c0_90] : memref<4x9x16x128xbf16, #tpu.memory_space<vmem>>, vector<1x8x8x128xbf16>
    %104 = vector.shape_cast %103 : vector<1x8x8x128xbf16> to vector<8x8x128xbf16>
    %105 = vector.shape_cast %104 : vector<8x8x128xbf16> to vector<64x128xbf16>
    %c0_91 = arith.constant 0 : index
    %c1024 = arith.constant 1024 : index
    %106 = vector.load %arg9[%c0_91, %c1024] : memref<64x1152xbf16, #tpu.memory_space<vmem>>, vector<64x128xbf16>
    tpu.vector_store %arg9[%c0_91, %c1024], %105 {strides = array<i32>} : memref<64x1152xbf16, #tpu.memory_space<vmem>>, vector<64x128xbf16>,
    %c0_92 = arith.constant 0 : index
    %c0_93 = arith.constant 0 : index
    %107 = vector.load %arg9[%c0_92, %c0_93] : memref<64x1152xbf16, #tpu.memory_space<vmem>>, vector<64x1152xbf16>
    %c0_94 = arith.constant 0 : index
    %c0_95 = arith.constant 0 : index
    %108 = vector.load %arg2[%c0_94, %c0_95] : memref<1152x128xbf16, #tpu.memory_space<vmem>>, vector<1152x128xbf16>
    %cst_96 = arith.constant dense<0.000000e+00> : vector<64x128xf32>
    %109 = tpu.matmul %107, %108, %cst_96 {dimension_numbers = #tpu.dot_dimension_numbers<[1], [0], [0], [1], [0, 0, 1, 1], [], []>} : vector<64x1152xbf16>, vector<1152x128xbf16>, vector<64x128xf32> -> vector<64x128xf32>
    %110 = arith.truncf %109 : vector<64x128xf32> to vector<64x128xbf16>
    %c0_97 = arith.constant 0 : index
    %c0_98 = arith.constant 0 : index
    %111 = vector.load %arg5[%c0_97, %c0_98] : memref<64x128xbf16, #tpu.memory_space<vmem>>, vector<64x128xbf16>
    tpu.vector_store %arg5[%c0_97, %c0_98], %110 {strides = array<i32>} : memref<64x128xbf16, #tpu.memory_space<vmem>>, vector<64x128xbf16>,
    %cst_99 = arith.constant dense<0.000000e+00> : vector<128xf32>
    %112 = vector.multi_reduction <add>, %109, %cst_99 [0] : vector<64x128xf32> to vector<128xf32>
    %113 = vector.shape_cast %112 : vector<128xf32> to vector<1x128xf32>
    %c0_100 = arith.constant 0 : index
    %c0_101 = arith.constant 0 : index
    %c0_102 = arith.constant 0 : index
    %114 = vector.load %arg6[%c0_100, %c0_101, %c0_102] : memref<1x1x128xf32, #tpu.memory_space<vmem>>, vector<1x1x128xf32>
    %115 = vector.shape_cast %114 : vector<1x1x128xf32> to vector<1x128xf32>
    %116 = vector.shape_cast %113 : vector<1x128xf32> to vector<1x1x128xf32>
    tpu.vector_store %arg6[%c0_100, %c0_101, %c0_102], %116 {strides = array<i32>} : memref<1x1x128xf32, #tpu.memory_space<vmem>>, vector<1x1x128xf32>,
    %117 = arith.mulf %109, %109 : vector<64x128xf32>
    %cst_103 = arith.constant dense<0.000000e+00> : vector<128xf32>
    %118 = vector.multi_reduction <add>, %117, %cst_103 [0] : vector<64x128xf32> to vector<128xf32>
    %119 = vector.shape_cast %118 : vector<128xf32> to vector<1x128xf32>
    %c0_104 = arith.constant 0 : index
    %c0_105 = arith.constant 0 : index
    %c0_106 = arith.constant 0 : index
    %120 = vector.load %arg7[%c0_104, %c0_105, %c0_106] : memref<1x1x128xf32, #tpu.memory_space<vmem>>, vector<1x1x128xf32>
    %121 = vector.shape_cast %120 : vector<1x1x128xf32> to vector<1x128xf32>
    %122 = vector.shape_cast %119 : vector<1x128xf32> to vector<1x1x128xf32>
    tpu.vector_store %arg7[%c0_104, %c0_105, %c0_106], %122 {strides = array<i32>} : memref<1x1x128xf32, #tpu.memory_space<vmem>>, vector<1x1x128xf32>,
    return
  }
  func.func @transform_0(%arg0: i32) -> (i32, i32, i32, i32) {
    %c0_i32 = arith.constant 0 : i32
    %c0_i32_0 = arith.constant 0 : i32
    %c0_i32_1 = arith.constant 0 : i32
    %c0_i32_2 = arith.constant 0 : i32
    return %arg0, %c0_i32, %c0_i32_0, %c0_i32_1 : i32, i32, i32, i32
  }
  func.func @transform_1(%arg0: i32) -> (i32, i32) {
    %c0_i32 = arith.constant 0 : i32
    %c0_i32_0 = arith.constant 0 : i32
    %c0_i32_1 = arith.constant 0 : i32
    return %c0_i32, %c0_i32_0 : i32, i32
  }
  func.func @transform_2(%arg0: i32) -> (i32, i32) {
    %c0_i32 = arith.constant 0 : i32
    %c0_i32_0 = arith.constant 0 : i32
    %c0_i32_1 = arith.constant 0 : i32
    return %c0_i32, %c0_i32_0 : i32, i32
  }
  func.func @transform_3(%arg0: i32) -> (i32, i32) {
    %c0_i32 = arith.constant 0 : i32
    %c0_i32_0 = arith.constant 0 : i32
    %c0_i32_1 = arith.constant 0 : i32
    return %c0_i32, %c0_i32_0 : i32, i32
  }
  func.func @transform_4(%arg0: i32) -> (i32, i32) {
    %c0_i32 = arith.constant 0 : i32
    %c0_i32_0 = arith.constant 0 : i32
    return %arg0, %c0_i32 : i32, i32
  }
  func.func @transform_5(%arg0: i32) -> (i32, i32, i32) {
    %c0_i32 = arith.constant 0 : i32
    %c0_i32_0 = arith.constant 0 : i32
    %c0_i32_1 = arith.constant 0 : i32
    return %arg0, %c0_i32, %c0_i32_0 : i32, i32, i32
  }
  func.func @transform_6(%arg0: i32) -> (i32, i32, i32) {
    %c0_i32 = arith.constant 0 : i32
    %c0_i32_0 = arith.constant 0 : i32
    %c0_i32_1 = arith.constant 0 : i32
    return %arg0, %c0_i32, %c0_i32_0 : i32, i32, i32
  }
}

module attributes {stable_mosaic.version = 11 : i64} {
  func.func @_mm_bn_kernel(%arg0: i32, %arg1: memref<128x128xbf16, #tpu.memory_space<vmem>>, %arg2: memref<128x128xbf16, #tpu.memory_space<vmem>>, %arg3: memref<1x128xf32, #tpu.memory_space<vmem>>, %arg4: memref<1x128xf32, #tpu.memory_space<vmem>>, %arg5: memref<128x128xbf16, #tpu.memory_space<vmem>>, %arg6: memref<1x1x128xf32, #tpu.memory_space<vmem>>, %arg7: memref<1x1x128xf32, #tpu.memory_space<vmem>>) attributes {dimension_semantics = [#tpu.dimension_semantics<parallel>], iteration_bounds = array<i64: 1>, scalar_prefetch = 0 : i64, scratch_operands = 0 : i64, tpu.core_type = #tpu.core_type<tc>, window_params = [{transform_indices = @transform_0, window_bounds = array<i64: 128, 128>}, {pipeline_mode = #tpu.pipeline_mode<synchronous>, transform_indices = @transform_1, window_bounds = array<i64: 128, 128>}, {pipeline_mode = #tpu.pipeline_mode<synchronous>, transform_indices = @transform_2, window_bounds = array<i64: 1, 128>}, {pipeline_mode = #tpu.pipeline_mode<synchronous>, transform_indices = @transform_3, window_bounds = array<i64: 1, 128>}, {transform_indices = @transform_4, window_bounds = array<i64: 128, 128>}, {transform_indices = @transform_5, window_bounds = array<i64: 1, 1, 128>}, {transform_indices = @transform_6, window_bounds = array<i64: 1, 1, 128>}]} {
    %c0 = arith.constant 0 : index
    %c0_0 = arith.constant 0 : index
    %0 = vector.load %arg1[%c0, %c0_0] : memref<128x128xbf16, #tpu.memory_space<vmem>>, vector<128x128xbf16>
    %1 = arith.extf %0 : vector<128x128xbf16> to vector<128x128xf32>
    %c0_1 = arith.constant 0 : index
    %c0_2 = arith.constant 0 : index
    %2 = vector.load %arg3[%c0_1, %c0_2] : memref<1x128xf32, #tpu.memory_space<vmem>>, vector<1x128xf32>
    %3 = vector.broadcast %2 : vector<1x128xf32> to vector<128x128xf32>
    %4 = arith.mulf %1, %3 : vector<128x128xf32>
    %c0_3 = arith.constant 0 : index
    %c0_4 = arith.constant 0 : index
    %5 = vector.load %arg4[%c0_3, %c0_4] : memref<1x128xf32, #tpu.memory_space<vmem>>, vector<1x128xf32>
    %6 = vector.broadcast %5 : vector<1x128xf32> to vector<128x128xf32>
    %7 = arith.addf %4, %6 : vector<128x128xf32>
    %cst = arith.constant 0.000000e+00 : f32
    %8 = vector.broadcast %cst : f32 to vector<128x128xf32>
    %9 = arith.maximumf %7, %8 : vector<128x128xf32>
    %10 = arith.truncf %9 : vector<128x128xf32> to vector<128x128xbf16>
    %c0_5 = arith.constant 0 : index
    %c0_6 = arith.constant 0 : index
    %11 = vector.load %arg2[%c0_5, %c0_6] : memref<128x128xbf16, #tpu.memory_space<vmem>>, vector<128x128xbf16>
    %cst_7 = arith.constant dense<0.000000e+00> : vector<128x128xf32>
    %12 = tpu.matmul %10, %11, %cst_7 {dimension_numbers = #tpu.dot_dimension_numbers<[1], [0], [0], [1], [0, 0, 1, 1], [], []>} : vector<128x128xbf16>, vector<128x128xbf16>, vector<128x128xf32> -> vector<128x128xf32>
    %13 = arith.truncf %12 : vector<128x128xf32> to vector<128x128xbf16>
    %c0_8 = arith.constant 0 : index
    %c0_9 = arith.constant 0 : index
    %14 = vector.load %arg5[%c0_8, %c0_9] : memref<128x128xbf16, #tpu.memory_space<vmem>>, vector<128x128xbf16>
    tpu.vector_store %arg5[%c0_8, %c0_9], %13 {strides = array<i32>} : memref<128x128xbf16, #tpu.memory_space<vmem>>, vector<128x128xbf16>,
    %cst_10 = arith.constant dense<0.000000e+00> : vector<128xf32>
    %15 = vector.multi_reduction <add>, %12, %cst_10 [0] : vector<128x128xf32> to vector<128xf32>
    %16 = vector.shape_cast %15 : vector<128xf32> to vector<1x128xf32>
    %c0_11 = arith.constant 0 : index
    %c0_12 = arith.constant 0 : index
    %c0_13 = arith.constant 0 : index
    %17 = vector.load %arg6[%c0_11, %c0_12, %c0_13] : memref<1x1x128xf32, #tpu.memory_space<vmem>>, vector<1x1x128xf32>
    %18 = vector.shape_cast %17 : vector<1x1x128xf32> to vector<1x128xf32>
    %19 = vector.shape_cast %16 : vector<1x128xf32> to vector<1x1x128xf32>
    tpu.vector_store %arg6[%c0_11, %c0_12, %c0_13], %19 {strides = array<i32>} : memref<1x1x128xf32, #tpu.memory_space<vmem>>, vector<1x1x128xf32>,
    %20 = arith.mulf %12, %12 : vector<128x128xf32>
    %cst_14 = arith.constant dense<0.000000e+00> : vector<128xf32>
    %21 = vector.multi_reduction <add>, %20, %cst_14 [0] : vector<128x128xf32> to vector<128xf32>
    %22 = vector.shape_cast %21 : vector<128xf32> to vector<1x128xf32>
    %c0_15 = arith.constant 0 : index
    %c0_16 = arith.constant 0 : index
    %c0_17 = arith.constant 0 : index
    %23 = vector.load %arg7[%c0_15, %c0_16, %c0_17] : memref<1x1x128xf32, #tpu.memory_space<vmem>>, vector<1x1x128xf32>
    %24 = vector.shape_cast %23 : vector<1x1x128xf32> to vector<1x128xf32>
    %25 = vector.shape_cast %22 : vector<1x128xf32> to vector<1x1x128xf32>
    tpu.vector_store %arg7[%c0_15, %c0_16, %c0_17], %25 {strides = array<i32>} : memref<1x1x128xf32, #tpu.memory_space<vmem>>, vector<1x1x128xf32>,
    return
  }
  func.func @transform_0(%arg0: i32) -> (i32, i32) {
    %c0_i32 = arith.constant 0 : i32
    %c0_i32_0 = arith.constant 0 : i32
    return %arg0, %c0_i32 : i32, i32
  }
  func.func @transform_1(%arg0: i32) -> (i32, i32) {
    %c0_i32 = arith.constant 0 : i32
    %c0_i32_0 = arith.constant 0 : i32
    %c0_i32_1 = arith.constant 0 : i32
    return %c0_i32, %c0_i32_0 : i32, i32
  }
  func.func @transform_2(%arg0: i32) -> (i32, i32) {
    %c0_i32 = arith.constant 0 : i32
    %c0_i32_0 = arith.constant 0 : i32
    %c0_i32_1 = arith.constant 0 : i32
    return %c0_i32, %c0_i32_0 : i32, i32
  }
  func.func @transform_3(%arg0: i32) -> (i32, i32) {
    %c0_i32 = arith.constant 0 : i32
    %c0_i32_0 = arith.constant 0 : i32
    %c0_i32_1 = arith.constant 0 : i32
    return %c0_i32, %c0_i32_0 : i32, i32
  }
  func.func @transform_4(%arg0: i32) -> (i32, i32) {
    %c0_i32 = arith.constant 0 : i32
    %c0_i32_0 = arith.constant 0 : i32
    return %arg0, %c0_i32 : i32, i32
  }
  func.func @transform_5(%arg0: i32) -> (i32, i32, i32) {
    %c0_i32 = arith.constant 0 : i32
    %c0_i32_0 = arith.constant 0 : i32
    %c0_i32_1 = arith.constant 0 : i32
    return %arg0, %c0_i32, %c0_i32_0 : i32, i32, i32
  }
  func.func @transform_6(%arg0: i32) -> (i32, i32, i32) {
    %c0_i32 = arith.constant 0 : i32
    %c0_i32_0 = arith.constant 0 : i32
    %c0_i32_1 = arith.constant 0 : i32
    return %arg0, %c0_i32, %c0_i32_0 : i32, i32, i32
  }
}

module attributes {stable_mosaic.version = 11 : i64} {
  func.func @_mm_bn_kernel(%arg0: i32, %arg1: memref<128x128xbf16, #tpu.memory_space<vmem>>, %arg2: memref<128x128xbf16, #tpu.memory_space<vmem>>, %arg3: memref<128x128xbf16, #tpu.memory_space<vmem>>, %arg4: memref<1x1x128xf32, #tpu.memory_space<vmem>>, %arg5: memref<1x1x128xf32, #tpu.memory_space<vmem>>) attributes {dimension_semantics = [#tpu.dimension_semantics<parallel>], iteration_bounds = array<i64: 1>, scalar_prefetch = 0 : i64, scratch_operands = 0 : i64, tpu.core_type = #tpu.core_type<tc>, window_params = [{transform_indices = @transform_0, window_bounds = array<i64: 128, 128>}, {pipeline_mode = #tpu.pipeline_mode<synchronous>, transform_indices = @transform_1, window_bounds = array<i64: 128, 128>}, {transform_indices = @transform_2, window_bounds = array<i64: 128, 128>}, {transform_indices = @transform_3, window_bounds = array<i64: 1, 1, 128>}, {transform_indices = @transform_4, window_bounds = array<i64: 1, 1, 128>}]} {
    %c0 = arith.constant 0 : index
    %c0_0 = arith.constant 0 : index
    %0 = vector.load %arg1[%c0, %c0_0] : memref<128x128xbf16, #tpu.memory_space<vmem>>, vector<128x128xbf16>
    %c0_1 = arith.constant 0 : index
    %c0_2 = arith.constant 0 : index
    %1 = vector.load %arg2[%c0_1, %c0_2] : memref<128x128xbf16, #tpu.memory_space<vmem>>, vector<128x128xbf16>
    %cst = arith.constant dense<0.000000e+00> : vector<128x128xf32>
    %2 = tpu.matmul %0, %1, %cst {dimension_numbers = #tpu.dot_dimension_numbers<[1], [0], [0], [1], [0, 0, 1, 1], [], []>} : vector<128x128xbf16>, vector<128x128xbf16>, vector<128x128xf32> -> vector<128x128xf32>
    %3 = arith.truncf %2 : vector<128x128xf32> to vector<128x128xbf16>
    %c0_3 = arith.constant 0 : index
    %c0_4 = arith.constant 0 : index
    %4 = vector.load %arg3[%c0_3, %c0_4] : memref<128x128xbf16, #tpu.memory_space<vmem>>, vector<128x128xbf16>
    tpu.vector_store %arg3[%c0_3, %c0_4], %3 {strides = array<i32>} : memref<128x128xbf16, #tpu.memory_space<vmem>>, vector<128x128xbf16>,
    %cst_5 = arith.constant dense<0.000000e+00> : vector<128xf32>
    %5 = vector.multi_reduction <add>, %2, %cst_5 [0] : vector<128x128xf32> to vector<128xf32>
    %6 = vector.shape_cast %5 : vector<128xf32> to vector<1x128xf32>
    %c0_6 = arith.constant 0 : index
    %c0_7 = arith.constant 0 : index
    %c0_8 = arith.constant 0 : index
    %7 = vector.load %arg4[%c0_6, %c0_7, %c0_8] : memref<1x1x128xf32, #tpu.memory_space<vmem>>, vector<1x1x128xf32>
    %8 = vector.shape_cast %7 : vector<1x1x128xf32> to vector<1x128xf32>
    %9 = vector.shape_cast %6 : vector<1x128xf32> to vector<1x1x128xf32>
    tpu.vector_store %arg4[%c0_6, %c0_7, %c0_8], %9 {strides = array<i32>} : memref<1x1x128xf32, #tpu.memory_space<vmem>>, vector<1x1x128xf32>,
    %10 = arith.mulf %2, %2 : vector<128x128xf32>
    %cst_9 = arith.constant dense<0.000000e+00> : vector<128xf32>
    %11 = vector.multi_reduction <add>, %10, %cst_9 [0] : vector<128x128xf32> to vector<128xf32>
    %12 = vector.shape_cast %11 : vector<128xf32> to vector<1x128xf32>
    %c0_10 = arith.constant 0 : index
    %c0_11 = arith.constant 0 : index
    %c0_12 = arith.constant 0 : index
    %13 = vector.load %arg5[%c0_10, %c0_11, %c0_12] : memref<1x1x128xf32, #tpu.memory_space<vmem>>, vector<1x1x128xf32>
    %14 = vector.shape_cast %13 : vector<1x1x128xf32> to vector<1x128xf32>
    %15 = vector.shape_cast %12 : vector<1x128xf32> to vector<1x1x128xf32>
    tpu.vector_store %arg5[%c0_10, %c0_11, %c0_12], %15 {strides = array<i32>} : memref<1x1x128xf32, #tpu.memory_space<vmem>>, vector<1x1x128xf32>,
    return
  }
  func.func @transform_0(%arg0: i32) -> (i32, i32) {
    %c0_i32 = arith.constant 0 : i32
    %c0_i32_0 = arith.constant 0 : i32
    return %arg0, %c0_i32 : i32, i32
  }
  func.func @transform_1(%arg0: i32) -> (i32, i32) {
    %c0_i32 = arith.constant 0 : i32
    %c0_i32_0 = arith.constant 0 : i32
    %c0_i32_1 = arith.constant 0 : i32
    return %c0_i32, %c0_i32_0 : i32, i32
  }
  func.func @transform_2(%arg0: i32) -> (i32, i32) {
    %c0_i32 = arith.constant 0 : i32
    %c0_i32_0 = arith.constant 0 : i32
    return %arg0, %c0_i32 : i32, i32
  }
  func.func @transform_3(%arg0: i32) -> (i32, i32, i32) {
    %c0_i32 = arith.constant 0 : i32
    %c0_i32_0 = arith.constant 0 : i32
    %c0_i32_1 = arith.constant 0 : i32
    return %arg0, %c0_i32, %c0_i32_0 : i32, i32, i32
  }
  func.func @transform_4(%arg0: i32) -> (i32, i32, i32) {
    %c0_i32 = arith.constant 0 : i32
    %c0_i32_0 = arith.constant 0 : i32
    %c0_i32_1 = arith.constant 0 : i32
    return %arg0, %c0_i32, %c0_i32_0 : i32, i32, i32
  }
}

module attributes {stable_mosaic.version = 11 : i64} {
  func.func @_bn_add_relu_kernel(%arg0: i32, %arg1: memref<128x128xbf16, #tpu.memory_space<vmem>>, %arg2: memref<128x128xbf16, #tpu.memory_space<vmem>>, %arg3: memref<1x128xf32, #tpu.memory_space<vmem>>, %arg4: memref<1x128xf32, #tpu.memory_space<vmem>>, %arg5: memref<1x128xf32, #tpu.memory_space<vmem>>, %arg6: memref<1x128xf32, #tpu.memory_space<vmem>>, %arg7: memref<128x128xf32, #tpu.memory_space<vmem>>) attributes {dimension_semantics = [#tpu.dimension_semantics<parallel>], iteration_bounds = array<i64: 1>, scalar_prefetch = 0 : i64, scratch_operands = 0 : i64, tpu.core_type = #tpu.core_type<tc>, window_params = [{transform_indices = @transform_0, window_bounds = array<i64: 128, 128>}, {transform_indices = @transform_1, window_bounds = array<i64: 128, 128>}, {pipeline_mode = #tpu.pipeline_mode<synchronous>, transform_indices = @transform_2, window_bounds = array<i64: 1, 128>}, {pipeline_mode = #tpu.pipeline_mode<synchronous>, transform_indices = @transform_3, window_bounds = array<i64: 1, 128>}, {pipeline_mode = #tpu.pipeline_mode<synchronous>, transform_indices = @transform_4, window_bounds = array<i64: 1, 128>}, {pipeline_mode = #tpu.pipeline_mode<synchronous>, transform_indices = @transform_5, window_bounds = array<i64: 1, 128>}, {transform_indices = @transform_6, window_bounds = array<i64: 128, 128>}]} {
    %c0 = arith.constant 0 : index
    %c0_0 = arith.constant 0 : index
    %0 = vector.load %arg1[%c0, %c0_0] : memref<128x128xbf16, #tpu.memory_space<vmem>>, vector<128x128xbf16>
    %1 = arith.extf %0 : vector<128x128xbf16> to vector<128x128xf32>
    %c0_1 = arith.constant 0 : index
    %c0_2 = arith.constant 0 : index
    %2 = vector.load %arg3[%c0_1, %c0_2] : memref<1x128xf32, #tpu.memory_space<vmem>>, vector<1x128xf32>
    %3 = vector.broadcast %2 : vector<1x128xf32> to vector<128x128xf32>
    %4 = arith.mulf %1, %3 : vector<128x128xf32>
    %c0_3 = arith.constant 0 : index
    %c0_4 = arith.constant 0 : index
    %5 = vector.load %arg4[%c0_3, %c0_4] : memref<1x128xf32, #tpu.memory_space<vmem>>, vector<1x128xf32>
    %6 = vector.broadcast %5 : vector<1x128xf32> to vector<128x128xf32>
    %7 = arith.addf %4, %6 : vector<128x128xf32>
    %c0_5 = arith.constant 0 : index
    %c0_6 = arith.constant 0 : index
    %8 = vector.load %arg2[%c0_5, %c0_6] : memref<128x128xbf16, #tpu.memory_space<vmem>>, vector<128x128xbf16>
    %9 = arith.extf %8 : vector<128x128xbf16> to vector<128x128xf32>
    %c0_7 = arith.constant 0 : index
    %c0_8 = arith.constant 0 : index
    %10 = vector.load %arg5[%c0_7, %c0_8] : memref<1x128xf32, #tpu.memory_space<vmem>>, vector<1x128xf32>
    %11 = vector.broadcast %10 : vector<1x128xf32> to vector<128x128xf32>
    %12 = arith.mulf %9, %11 : vector<128x128xf32>
    %c0_9 = arith.constant 0 : index
    %c0_10 = arith.constant 0 : index
    %13 = vector.load %arg6[%c0_9, %c0_10] : memref<1x128xf32, #tpu.memory_space<vmem>>, vector<1x128xf32>
    %14 = vector.broadcast %13 : vector<1x128xf32> to vector<128x128xf32>
    %15 = arith.addf %12, %14 : vector<128x128xf32>
    %16 = arith.addf %7, %15 : vector<128x128xf32>
    %cst = arith.constant 0.000000e+00 : f32
    %17 = vector.broadcast %cst : f32 to vector<128x128xf32>
    %18 = arith.maximumf %16, %17 : vector<128x128xf32>
    %c0_11 = arith.constant 0 : index
    %c0_12 = arith.constant 0 : index
    %19 = vector.load %arg7[%c0_11, %c0_12] : memref<128x128xf32, #tpu.memory_space<vmem>>, vector<128x128xf32>
    tpu.vector_store %arg7[%c0_11, %c0_12], %18 {strides = array<i32>} : memref<128x128xf32, #tpu.memory_space<vmem>>, vector<128x128xf32>,
    return
  }
  func.func @transform_0(%arg0: i32) -> (i32, i32) {
    %c0_i32 = arith.constant 0 : i32
    %c0_i32_0 = arith.constant 0 : i32
    return %arg0, %c0_i32 : i32, i32
  }
  func.func @transform_1(%arg0: i32) -> (i32, i32) {
    %c0_i32 = arith.constant 0 : i32
    %c0_i32_0 = arith.constant 0 : i32
    return %arg0, %c0_i32 : i32, i32
  }
  func.func @transform_2(%arg0: i32) -> (i32, i32) {
    %c0_i32 = arith.constant 0 : i32
    %c0_i32_0 = arith.constant 0 : i32
    %c0_i32_1 = arith.constant 0 : i32
    return %c0_i32, %c0_i32_0 : i32, i32
  }
  func.func @transform_3(%arg0: i32) -> (i32, i32) {
    %c0_i32 = arith.constant 0 : i32
    %c0_i32_0 = arith.constant 0 : i32
    %c0_i32_1 = arith.constant 0 : i32
    return %c0_i32, %c0_i32_0 : i32, i32
  }
  func.func @transform_4(%arg0: i32) -> (i32, i32) {
    %c0_i32 = arith.constant 0 : i32
    %c0_i32_0 = arith.constant 0 : i32
    %c0_i32_1 = arith.constant 0 : i32
    return %c0_i32, %c0_i32_0 : i32, i32
  }
  func.func @transform_5(%arg0: i32) -> (i32, i32) {
    %c0_i32 = arith.constant 0 : i32
    %c0_i32_0 = arith.constant 0 : i32
    %c0_i32_1 = arith.constant 0 : i32
    return %c0_i32, %c0_i32_0 : i32, i32
  }
  func.func @transform_6(%arg0: i32) -> (i32, i32) {
    %c0_i32 = arith.constant 0 : i32
    %c0_i32_0 = arith.constant 0 : i32
    return %arg0, %c0_i32 : i32, i32
  }
}

</mosaic_0001>

<bundles_post_ra>
// kernel: bottleneck_forward.5
= control target key start
LH: loop header
LB: loop body
LE: loop exit
PB: predicated region body
PF: predicated region fallthrough
CT: control target
= control target key end

     0   :  { %s1293_s15 = smov 0   ;;  %s1472_s0 = inlined_call_operand.vmem [shape: bf16[512,128], index: 0, kind: input, shape index: {}]   ;;  %s1473_s1 = inlined_call_operand.vmem [shape: bf16[128,128], index: 1, kind: input, shape index: {}]   ;;  %s1474_s2 = inlined_call_operand.vmem [shape: bf16[512,128], index: 2, kind: output, shape index: {0}]   ;;  %s1475_s3 = inlined_call_operand.vmem [shape: f32[2,1,128], index: 3, kind: output, shape index: {1}]   ;;  %s1476_s4 = inlined_call_operand.vmem [shape: f32[2,1,128], index: 4, kind: output, shape index: {2}]  }
   0x1 LB: > { %s1299_s16 = sadd.s32 4294967295, %s1266_s15   ;;  %p950_p0 = scmp.ge.s32.totalorder %s1266_s15, 1  ;;  %s1266_s15 = sphi %s1293_s15, %s15_s15  }
   0x2   : > { %p168_p1 = scmp.lt.s32.totalorder %s1266_s15, 3 }
   0x4   : > { %p169_p2 = pnand %p950_p0, %p168_p1 }
   0x5   : > { %v1236_v0 = vld [vmem:[%s1473_s1] sm:$0xff] (!%p169_p2)   ;;  %s951_s19 = sshll.u32 (!%p169_p2), %s1299_s16, 5  ;;  %v1237_v1 = vld [vmem:[%s1473_s1 + $0x8] sm:$0xff] (!%p169_p2)   ;;  %v1238_v2 = vld [vmem:[%s1473_s1 + $0x10] sm:$0xff] (!%p169_p2)   ;;  %p212_p4 = scmp.lt.s32.totalorder (!%p169_p2), %s1299_s16, 1 }
   0x6   : > { %172 = sbr.rel (%p169_p2) target bundleno = 330 (0x14a), region = 28  ;;  %p201_p3 = scmp.lt.s32.totalorder (!%p169_p2), %s951_s19, 63  ;;  %1164 = vmatprep.subr.bf16.mxu0 (!%p169_p2), %v1236_v0  ;;  %1212 = vmatprep.subr.bf16.mxu1 (!%p169_p2), %v1236_v0  ;;  %v1239_v3 = vld [vmem:[%s1473_s1 + $0x18] sm:$0xff] (!%p169_p2)   ;;  %v1240_v5 = vld [vmem:[%s1473_s1 + $0x20] sm:$0xff] (!%p169_p2)   ;;  %v1241_v6 = vld [vmem:[%s1473_s1 + $0x28] sm:$0xff] (!%p169_p2)  }
   0x7   : > { %1165 = vmatpush3.bf16.msra.mxu0 (!%p169_p2), %v1236_v0  ;;  %1220 = vmatpush3.bf16.msra.mxu1 (!%p169_p2), %v1236_v0  ;;  %v1242_v8 = vld [vmem:[%s1473_s1 + $0x30] sm:$0xff] (!%p169_p2)   ;;  %v1243_v9 = vld [vmem:[%s1473_s1 + $0x38] sm:$0xff] (!%p169_p2)  }
   0x8   : > { %1166 = vmatprep.subr.bf16.mxu0 (!%p169_p2), %v1237_v1  ;;  %1213 = vmatprep.subr.bf16.mxu1 (!%p169_p2), %v1237_v1 }
   0xb   : > { %1167 = vmatpush3.bf16.msra.mxu0 (!%p169_p2), %v1237_v1  ;;  %1221 = vmatpush3.bf16.msra.mxu1 (!%p169_p2), %v1237_v1 }
   0xc   : > { %1168 = vmatprep.subr.bf16.mxu0 (!%p169_p2), %v1238_v2  ;;  %1214 = vmatprep.subr.bf16.mxu1 (!%p169_p2), %v1238_v2 }
   0xd   : > { %s1478_s19 = smov (!%p201_p3, %s951_s19), 63  ;;  %s1480_s16 = smov (!%p212_p4, %s1299_s16), 1 }
   0xe   : > { %s952_s24 = sshll.u32 %s1478_s19, 2  ;;  %s214_s19 = scalar_lea.vmem %s1475_s3, %s1480_s16 }
   0xf   : > { %s1321_s27 = scalar_lea.vmem %s1472_s0, %s952_s24  ;;  %1169 = vmatpush3.bf16.msra.mxu0 %v1238_v2  ;;  %1222 = vmatpush3.bf16.msra.mxu1 %v1238_v2  ;;  %s1363_s14 = scalar_lea.vmem %s1474_s2, %s952_s24 }
  0x10   : > { %v1244_v4 = vld [vmem:[%s1321_s27] sm:$0xff]   ;;  %1170 = vmatprep.subr.bf16.mxu0 %v1239_v3  ;;  %1215 = vmatprep.subr.bf16.mxu1 %v1239_v3  ;;  %v1245_v10 = vld [vmem:[%s1321_s27 + $0x8] sm:$0xff]   ;;  %v1246_v12 = vld [vmem:[%s1321_s27 + $0x10] sm:$0xff]   ;;  %s217_s22 = scalar_lea.vmem %s1476_s4, %s1480_s16 }
  0x11   : > { %1180 = vmatprep.mubr.bf16.mxu0 %v1244_v4  ;;  %v1252_v7 = vld [vmem:[%s1321_s27 + $0x40] sm:$0xff]   ;;  %v1253_v11 = vld [vmem:[%s1321_s27 + $0x48] sm:$0xff]   ;;  %v1254_v13 = vld [vmem:[%s1321_s27 + $0x50] sm:$0xff]  }
  0x12   : > { %1196 = vmatprep.mubr.bf16.mxu1 %v1252_v7  ;;  %v1247_v14 = vld [vmem:[%s1321_s27 + $0x18] sm:$0xff]   ;;  %v1248_v16 = vld [vmem:[%s1321_s27 + $0x20] sm:$0xff]   ;;  %v1249_v18 = vld [vmem:[%s1321_s27 + $0x28] sm:$0xff]  }
  0x13   : > { %1171 = vmatpush3.bf16.msra.mxu0 %v1239_v3  ;;  %1223 = vmatpush3.bf16.msra.mxu1 %v1239_v3  ;;  %v1255_v15 = vld [vmem:[%s1321_s27 + $0x58] sm:$0xff]   ;;  %v1256_v17 = vld [vmem:[%s1321_s27 + $0x60] sm:$0xff]   ;;  %v1257_v19 = vld [vmem:[%s1321_s27 + $0x68] sm:$0xff]  }
  0x14   : > { %1172 = vmatprep.subr.bf16.mxu0 %v1240_v5  ;;  %1216 = vmatprep.subr.bf16.mxu1 %v1240_v5  ;;  %v1250_v20 = vld [vmem:[%s1321_s27 + $0x30] sm:$0xff]   ;;  %v1251_v22 = vld [vmem:[%s1321_s27 + $0x38] sm:$0xff]  }
  0x15   : > { %v1258_v21 = vld [vmem:[%s1321_s27 + $0x70] sm:$0xff]   ;;  %v1259_v23 = vld [vmem:[%s1321_s27 + $0x78] sm:$0xff]  }
  0x17   : > { %1173 = vmatpush3.bf16.msra.mxu0 %v1240_v5  ;;  %1224 = vmatpush3.bf16.msra.mxu1 %v1240_v5 }
  0x18   : > { %1174 = vmatprep.subr.bf16.mxu0 %v1241_v6  ;;  %1217 = vmatprep.subr.bf16.mxu1 %v1241_v6 }
  0x1b   : > { %1175 = vmatpush3.bf16.msra.mxu0 %v1241_v6  ;;  %1225 = vmatpush3.bf16.msra.mxu1 %v1241_v6 }
  0x1c   : > { %1176 = vmatprep.subr.bf16.mxu0 %v1242_v8  ;;  %1218 = vmatprep.subr.bf16.mxu1 %v1242_v8 }
  0x1f   : > { %1177 = vmatpush3.bf16.msra.mxu0 %v1242_v8  ;;  %1226 = vmatpush3.bf16.msra.mxu1 %v1242_v8 }
  0x20   : > { %1178 = vmatprep.subr.bf16.mxu0 %v1243_v9  ;;  %1219 = vmatprep.subr.bf16.mxu1 %v1243_v9 }
  0x23   : > { %1179 = vmatpush3.bf16.msra.mxu0 %v1243_v9  ;;  %1227 = vmatpush3.bf16.msra.mxu1 %v1243_v9 }
  0x26   : > { %1181 = vmatmul.mubr.bf16.vlgmr.msra.gmra.mrb[0].mxu0 %v1245_v10  ;;  %1197 = vmatmul.mubr.bf16.vlgmr.msra.gmra.mrb[0].mxu1 %v1253_v11 }
  0x27   : > { %1184 = vmatprep.mubr.bf16.mxu0 %v1246_v12  ;;  %1200 = vmatprep.mubr.bf16.mxu1 %v1254_v13 }
  0x2e   : > { %1185 = vmatmul.mubr.bf16.gmra.mrb[4].mxu0 %v1247_v14  ;;  %1201 = vmatmul.mubr.bf16.gmra.mrb[4].mxu1 %v1255_v15 }
  0x2f   : > { %1188 = vmatprep.mubr.bf16.mxu0 %v1248_v16  ;;  %1204 = vmatprep.mubr.bf16.mxu1 %v1256_v17 }
  0x36   : > { %1189 = vmatmul.mubr.bf16.gmra.mrb[8].mxu0 %v1249_v18  ;;  %1205 = vmatmul.mubr.bf16.gmra.mrb[8].mxu1 %v1257_v19 }
  0x37   : > { %1192 = vmatprep.mubr.bf16.mxu0 %v1250_v20  ;;  %1208 = vmatprep.mubr.bf16.mxu1 %v1258_v21 }
  0x3e   : > { %1193 = vmatmul.mubr.bf16.gmra.mrb[12].mxu0 %v1251_v22  ;;  %1209 = vmatmul.mubr.bf16.gmra.mrb[12].mxu1 %v1259_v23 }
  0xf9   : > { %v1182_v24 = vpop.f32.mrb[0].mxu0  ;;  %v1354_v25 = vpop.f32.mrb[0].mxu1 }
  0xfa   : > { %v445_v26 = vpop.f32.mrb[1].mxu0  ;;  %v1356_v27 = vpop.f32.mrb[1].mxu1  ;;  %v772_v39 = vmul.f32 %v1182_v24, %v1182_v24 }
  0xfb   : > { %v1183_v28 = vpop.f32.mrb[2].mxu0  ;;  %v1365_v29 = vpop.f32.mrb[2].mxu1  ;;  %v770_v30 = vmul.f32 %v445_v26, %v445_v26 }
  0xfc   : > { %v1053_v31 = vpack.c.bf16 %v1183_v28, %v1182_v24  ;;  %v448_v32 = vpop.f32.mrb[3].mxu0  ;;  %v1093_v33 = vpack.c.bf16 %v1365_v29, %v1354_v25  ;;  %v1369_v34 = vpop.f32.mrb[3].mxu1  ;;  %v773_v42 = vmul.f32 %v1183_v28, %v1183_v28 }
  0xfd   : > { %v1048_v35 = vpack.c.bf16 %v448_v32, %v445_v26  ;;  %v732_v36 = vadd.f32 %v448_v32, %v445_v26  ;;  %v771_v37 = vmul.f32 %v448_v32, %v448_v32  ;;  %v1088_v38 = vpack.c.bf16 %v1369_v34, %v1356_v27 }
  0xfe   : > { %1125 = vst [vmem:[%s1363_s14 + $0x8] sm:$0xff] %v1053_v31   ;;  %1133 = vst [vmem:[%s1363_s14 + $0x48] sm:$0xff] %v1093_v33  }
  0xff   : > { %1049 = vst [vmem:[%s1363_s14] sm:$0xff] %v1048_v35   ;;  %v733_v40 = vadd.f32 %v1182_v24, %v732_v36  ;;  %v802_v41 = vadd.f32 %v771_v37, %v770_v30  ;;  %1132 = vst [vmem:[%s1363_s14 + $0x40] sm:$0xff] %v1088_v38  }
 0x101   : > { %v803_v43 = vadd.f32 %v802_v41, %v772_v39  ;;  %v1186_v44 = vpop.f32.mrb[4].mxu0  ;;  %v734_v45 = vadd.f32 %v1183_v28, %v733_v40  ;;  %v1377_v46 = vpop.f32.mrb[4].mxu1 }
 0x102   : > { %v461_v47 = vpop.f32.mrb[5].mxu0  ;;  %v1379_v48 = vpop.f32.mrb[5].mxu1  ;;  %v776_v63 = vmul.f32 %v1186_v44, %v1186_v44 }
 0x103   : > { %v735_v49 = vadd.f32 %v734_v45, %v461_v47  ;;  %v774_v50 = vmul.f32 %v461_v47, %v461_v47  ;;  %v804_v51 = vadd.f32 %v803_v43, %v773_v42  ;;  %v1187_v52 = vpop.f32.mrb[6].mxu0  ;;  %v1381_v53 = vpop.f32.mrb[6].mxu1 }
 0x104   : > { %v1063_v54 = vpack.c.bf16 %v1187_v52, %v1186_v44  ;;  %v464_v55 = vpop.f32.mrb[7].mxu0  ;;  %v1103_v56 = vpack.c.bf16 %v1381_v53, %v1377_v46  ;;  %v1385_v57 = vpop.f32.mrb[7].mxu1  ;;  %v777_v2 = vmul.f32 %v1187_v52, %v1187_v52 }
 0x105   : > { %v805_v58 = vadd.f32 %v804_v51, %v774_v50  ;;  %v1058_v59 = vpack.c.bf16 %v464_v55, %v461_v47  ;;  %v736_v60 = vadd.f32 %v735_v49, %v464_v55  ;;  %v775_v61 = vmul.f32 %v464_v55, %v464_v55 }
 0x106   : > { %1127 = vst [vmem:[%s1363_s14 + $0x18] sm:$0xff] %v1063_v54   ;;  %1135 = vst [vmem:[%s1363_s14 + $0x58] sm:$0xff] %v1103_v56   ;;  %v1098_v62 = vpack.c.bf16 %v1385_v57, %v1379_v48 }
 0x107   : > { %1126 = vst [vmem:[%s1363_s14 + $0x10] sm:$0xff] %v1058_v59   ;;  %v737_v0 = vadd.f32 %v1186_v44, %v736_v60  ;;  %v806_v1 = vadd.f32 %v805_v58, %v775_v61  ;;  %v786_v61 = vmul.f32 %v1356_v27, %v1356_v27 }
 0x108   : > { %1134 = vst [vmem:[%s1363_s14 + $0x50] sm:$0xff] %v1098_v62  }
 0x109   : > { %v807_v3 = vadd.f32 %v806_v1, %v776_v63  ;;  %v1190_v4 = vpop.f32.mrb[8].mxu0  ;;  %v738_v5 = vadd.f32 %v1187_v52, %v737_v0  ;;  %v1393_v6 = vpop.f32.mrb[8].mxu1 }
 0x10a   : > { %v477_v7 = vpop.f32.mrb[9].mxu0  ;;  %v1395_v8 = vpop.f32.mrb[9].mxu1  ;;  %v780_v23 = vmul.f32 %v1190_v4, %v1190_v4 }
 0x10b   : > { %v739_v9 = vadd.f32 %v738_v5, %v477_v7  ;;  %v778_v10 = vmul.f32 %v477_v7, %v477_v7  ;;  %v808_v11 = vadd.f32 %v807_v3, %v777_v2  ;;  %v1191_v12 = vpop.f32.mrb[10].mxu0  ;;  %v1397_v13 = vpop.f32.mrb[10].mxu1  ;;  %v787_v2 = vmul.f32 %v1369_v34, %v1369_v34 }
 0x10c   : > { %v1073_v14 = vpack.c.bf16 %v1191_v12, %v1190_v4  ;;  %v480_v15 = vpop.f32.mrb[11].mxu0  ;;  %v1113_v16 = vpack.c.bf16 %v1397_v13, %v1393_v6  ;;  %v1401_v17 = vpop.f32.mrb[11].mxu1  ;;  %v781_v28 = vmul.f32 %v1191_v12, %v1191_v12  ;;  %v788_v3 = vmul.f32 %v1354_v25, %v1354_v25 }
 0x10d   : > { %v809_v18 = vadd.f32 %v808_v11, %v778_v10  ;;  %v1068_v19 = vpack.c.bf16 %v480_v15, %v477_v7  ;;  %v740_v20 = vadd.f32 %v739_v9, %v480_v15  ;;  %v779_v21 = vmul.f32 %v480_v15, %v480_v15 }
 0x10e   : > { %1129 = vst [vmem:[%s1363_s14 + $0x28] sm:$0xff] %v1073_v14   ;;  %1137 = vst [vmem:[%s1363_s14 + $0x68] sm:$0xff] %v1113_v16   ;;  %v1108_v22 = vpack.c.bf16 %v1401_v17, %v1395_v8  ;;  %v789_v7 = vmul.f32 %v1365_v29, %v1365_v29  ;;  %v791_v15 = vmul.f32 %v1385_v57, %v1385_v57 }
 0x10f   : > { %1128 = vst [vmem:[%s1363_s14 + $0x20] sm:$0xff] %v1068_v19   ;;  %v741_v24 = vadd.f32 %v1190_v4, %v740_v20  ;;  %v810_v26 = vadd.f32 %v809_v18, %v779_v21 }
 0x110   : > { %1136 = vst [vmem:[%s1363_s14 + $0x60] sm:$0xff] %v1108_v22  }
 0x111   : > { %v811_v30 = vadd.f32 %v810_v26, %v780_v23  ;;  %v1194_v31 = vpop.f32.mrb[12].mxu0  ;;  %v742_v32 = vadd.f32 %v1191_v12, %v741_v24  ;;  %v1409_v33 = vpop.f32.mrb[12].mxu1  ;;  %v795_v24 = vmul.f32 %v1401_v17, %v1401_v17 }
 0x112   : > { %v493_v35 = vpop.f32.mrb[13].mxu0  ;;  %v557_v36 = vpop.f32.mrb[13].mxu1  ;;  %v784_v54 = vmul.f32 %v1194_v31, %v1194_v31 }
 0x113   : > { %v743_v37 = vadd.f32 %v742_v32, %v493_v35  ;;  %v782_v38 = vmul.f32 %v493_v35, %v493_v35  ;;  %v812_v39 = vadd.f32 %v811_v30, %v781_v28  ;;  %v1195_v40 = vpop.f32.mrb[14].mxu0  ;;  %v1411_v41 = vpop.f32.mrb[14].mxu1 }
 0x114   : > { %v1083_v42 = vpack.c.bf16 %v1195_v40, %v1194_v31  ;;  %v496_v43 = vpop.f32.mrb[15].mxu0  ;;  %v1123_v44 = vpack.c.bf16 %v1411_v41, %v1409_v33  ;;  %v560_v45 = vpop.f32.mrb[15].mxu1  ;;  %v785_v58 = vmul.f32 %v1195_v40, %v1195_v40 }
 0x115   : > { %v813_v47 = vadd.f32 %v812_v39, %v782_v38  ;;  %v1078_v49 = vpack.c.bf16 %v496_v43, %v493_v35  ;;  %v744_v50 = vadd.f32 %v743_v37, %v496_v43  ;;  %v783_v51 = vmul.f32 %v496_v43, %v496_v43 }
 0x116   : > { %1131 = vst [vmem:[%s1363_s14 + $0x38] sm:$0xff] %v1083_v42   ;;  %1139 = vst [vmem:[%s1363_s14 + $0x78] sm:$0xff] %v1123_v44   ;;  %v1118_v52 = vpack.c.bf16 %v560_v45, %v557_v36  ;;  %v800_v39 = vmul.f32 %v1409_v33, %v1409_v33  ;;  %v801_v42 = vmul.f32 %v1411_v41, %v1411_v41 }
 0x117   : > { %1130 = vst [vmem:[%s1363_s14 + $0x30] sm:$0xff] %v1078_v49   ;;  %v745_v55 = vadd.f32 %v1194_v31, %v744_v50  ;;  %v814_v56 = vadd.f32 %v813_v47, %v783_v51  ;;  %v798_v31 = vmul.f32 %v557_v36, %v557_v36 }
 0x118   : > { %1138 = vst [vmem:[%s1363_s14 + $0x70] sm:$0xff] %v1118_v52  }
 0x119   : > { %v815_v59 = vadd.f32 %v814_v56, %v784_v54  ;;  %v746_v60 = vadd.f32 %v1195_v40, %v745_v55 }
 0x11b   : > { %v747_v62 = vadd.f32 %v746_v60, %v1356_v27  ;;  %v816_v63 = vadd.f32 %v815_v59, %v785_v58  ;;  %v790_v27 = vmul.f32 %v1379_v48, %v1379_v48 }
 0x11d   : > { %v817_v0 = vadd.f32 %v816_v63, %v786_v61  ;;  %v748_v1 = vadd.f32 %v747_v62, %v1369_v34 }
 0x11f   : > { %v749_v4 = vadd.f32 %v1354_v25, %v748_v1  ;;  %v818_v5 = vadd.f32 %v817_v0, %v787_v2  ;;  %v792_v25 = vmul.f32 %v1377_v46, %v1377_v46 }
 0x121   : > { %v819_v9 = vadd.f32 %v818_v5, %v788_v3  ;;  %v750_v10 = vadd.f32 %v1365_v29, %v749_v4  ;;  %v793_v29 = vmul.f32 %v1381_v53, %v1381_v53 }
 0x123   : > { %v751_v11 = vadd.f32 %v750_v10, %v1379_v48  ;;  %v820_v12 = vadd.f32 %v819_v9, %v789_v7  ;;  %v794_v48 = vmul.f32 %v1395_v8, %v1395_v8 }
 0x125   : > { %v821_v14 = vadd.f32 %v820_v12, %v790_v27  ;;  %v752_v34 = vadd.f32 %v751_v11, %v1385_v57 }
 0x127   : > { %v753_v16 = vadd.f32 %v1377_v46, %v752_v34  ;;  %v822_v18 = vadd.f32 %v821_v14, %v791_v15  ;;  %v796_v46 = vmul.f32 %v1393_v6, %v1393_v6 }
 0x129   : > { %v823_v19 = vadd.f32 %v822_v18, %v792_v25  ;;  %v754_v20 = vadd.f32 %v1381_v53, %v753_v16  ;;  %v797_v53 = vmul.f32 %v1397_v13, %v1397_v13 }
 0x12b   : > { %v755_v21 = vadd.f32 %v754_v20, %v1395_v8  ;;  %v824_v22 = vadd.f32 %v823_v19, %v793_v29 }
 0x12d   : > { %v825_v23 = vadd.f32 %v824_v22, %v794_v48  ;;  %v756_v57 = vadd.f32 %v755_v21, %v1401_v17  ;;  %v799_v17 = vmul.f32 %v560_v45, %v560_v45 }
 0x12f   : > { %v757_v26 = vadd.f32 %v1393_v6, %v756_v57  ;;  %v826_v28 = vadd.f32 %v825_v23, %v795_v24 }
 0x131   : > { %v827_v30 = vadd.f32 %v826_v28, %v796_v46  ;;  %v758_v8 = vadd.f32 %v1397_v13, %v757_v26 }
 0x133   : > { %v759_v32 = vadd.f32 %v758_v8, %v557_v36  ;;  %v828_v35 = vadd.f32 %v827_v30, %v797_v53 }
 0x135   : > { %v829_v37 = vadd.f32 %v828_v35, %v798_v31  ;;  %v760_v38 = vadd.f32 %v759_v32, %v560_v45 }
 0x137   : > { %v761_v6 = vadd.f32 %v1409_v33, %v760_v38  ;;  %v830_v40 = vadd.f32 %v829_v37, %v799_v17 }
 0x139   : > { %v762_v43 = vadd.f32 %v1411_v41, %v761_v6  ;;  %v831_v44 = vadd.f32 %v830_v40, %v800_v39 }
 0x13b   : > { %v763_v13 = vrot.slane %v762_v43, 4  ;;  %v832_v47 = vadd.f32 %v831_v44, %v801_v42 }
 0x13d   : > { %v764_v36 = vadd.f32 %v763_v13, %v762_v43  ;;  %v833_v49 = vrot.slane %v832_v47, 4 }
 0x13f   : > { %v765_v50 = vrot.slane %v764_v36, 2  ;;  %v834_v51 = vadd.f32 %v833_v49, %v832_v47 }
 0x141   : > { %v766_v45 = vadd.f32 %v765_v50, %v764_v36  ;;  %v835_v52 = vrot.slane %v834_v51, 2 }
 0x143   : > { %v767_v54 = vrot.slane %v766_v45, 1  ;;  %v836_v55 = vadd.f32 %v835_v52, %v834_v51 }
 0x145   : > { %v768_v33 = vadd.f32 %v767_v54, %v766_v45  ;;  %v837_v56 = vrot.slane %v836_v55, 1 }
 0x147   : > { %769 = vst [vmem:[%s214_s19] sm:$0x1] %v768_v33  ;;  %v838_v41 = vadd.f32 %v837_v56, %v836_v55 }
 0x149   : > { %839 = vst [vmem:[%s217_s22] sm:$0x1] %v838_v41 }
 0x14a PF: > { %s15_s15 = sadd.s32 1, %s1266_s15  }
 0x14b   : > { %p12_p5 = scmp.ge.s32.totalorder %s15_s15, 4  }
 0x14d   :  { %14 = sbr.rel (!%p12_p5) target bundleno = 1 (0x1), region = 82 }

// kernel: bottleneck_forward.7
= control target key start
LH: loop header
LB: loop body
LE: loop exit
PB: predicated region body
PF: predicated region fallthrough
CT: control target
= control target key end

     0   :  { %s791_s1 = inlined_call_operand.vmem [shape: bf16[128,128], index: 1, kind: input, shape index: {}]   ;;  %s792_s0 = inlined_call_operand.vmem [shape: bf16[128,128], index: 0, kind: input, shape index: {}]   ;;  %s793_s2 = inlined_call_operand.vmem [shape: f32[1,128], index: 2, kind: input, shape index: {}]   ;;  %s794_s3 = inlined_call_operand.vmem [shape: f32[1,128], index: 3, kind: input, shape index: {}]   ;;  %s795_s4 = inlined_call_operand.vmem [shape: bf16[128,128], index: 4, kind: output, shape index: {0}]   ;;  %s796_s5 = inlined_call_operand.vmem [shape: f32[1,1,128], index: 5, kind: output, shape index: {1}]   ;;  %s797_s6 = inlined_call_operand.vmem [shape: f32[1,1,128], index: 6, kind: output, shape index: {2}]  }
   0x1   :  { %v628_v0 = vld [vmem:[%s791_s1] sm:$0xff]   ;;  %v629_v1 = vld [vmem:[%s791_s1 + $0x8] sm:$0xff]   ;;  %v630_v2 = vld [vmem:[%s791_s1 + $0x10] sm:$0xff]  }
   0x2   :  { %580 = vmatprep.subr.bf16.mxu0 %v628_v0  ;;  %612 = vmatprep.subr.bf16.mxu1 %v628_v0  ;;  %v631_v3 = vld [vmem:[%s791_s1 + $0x18] sm:$0xff]   ;;  %v479_v4 = vld [vmem:[%s792_s0] sm:$0xff]   ;;  %v550_v8 = vld [vmem:[%s792_s0 + $0x8] sm:$0xff]  }
   0x3   :  { %581 = vmatpush3.bf16.msra.mxu0 %v628_v0  ;;  %620 = vmatpush3.bf16.msra.mxu1 %v628_v0  ;;  %v689_v5 = vld [vmem:[%s793_s2] ss:$0 sm:$0xff]  ;;  %v480_v6 = vunpack.c.l.bf16 %v479_v4  ;;  %v481_v7 = vunpack.c.h.bf16 %v479_v4  ;;  %v551_v9 = vld [vmem:[%s792_s0 + $0x10] sm:$0xff]   ;;  %v484_v11 = vunpack.c.l.bf16 %v550_v8  ;;  %v485_v14 = vunpack.c.h.bf16 %v550_v8  ;;  %v552_v22 = vld [vmem:[%s792_s0 + $0x18] sm:$0xff]  }
   0x4   :  { %582 = vmatprep.subr.bf16.mxu0 %v629_v1  ;;  %613 = vmatprep.subr.bf16.mxu1 %v629_v1  ;;  %v700_v10 = vld [vmem:[%s794_s3] ss:$0 sm:$0xff]  ;;  %v488_v17 = vunpack.c.l.bf16 %v551_v9  ;;  %v489_v21 = vunpack.c.h.bf16 %v551_v9  ;;  %v554_v27 = vld [vmem:[%s792_s0 + $0x28] sm:$0xff]   ;;  %v555_v30 = vld [vmem:[%s792_s0 + $0x30] sm:$0xff]   ;;  %v492_v32 = vunpack.c.l.bf16 %v552_v22  ;;  %v493_v33 = vunpack.c.h.bf16 %v552_v22 }
   0x5   :  { %v60_v12 = vmul.f32 %v480_v6, %v689_v5  ;;  %v61_v13 = vmul.f32 %v481_v7, %v689_v5  ;;  %v553_v15 = vld [vmem:[%s792_s0 + $0x20] sm:$0xff]   ;;  %v62_v20 = vmul.f32 %v484_v11, %v689_v5  ;;  %v63_v26 = vmul.f32 %v485_v14, %v689_v5  ;;  %v633_v28 = vld [vmem:[%s791_s1 + $0x28] sm:$0xff]   ;;  %v556_v39 = vld [vmem:[%s792_s0 + $0x38] sm:$0xff]  }
   0x6   :  { %v632_v16 = vld [vmem:[%s791_s1 + $0x20] sm:$0xff]   ;;  %v496_v23 = vunpack.c.l.bf16 %v553_v15  ;;  %v64_v29 = vmul.f32 %v488_v17, %v689_v5  ;;  %v497_v34 = vunpack.c.h.bf16 %v553_v15  ;;  %v65_v36 = vmul.f32 %v489_v21, %v689_v5  ;;  %v634_v44 = vld [vmem:[%s791_s1 + $0x30] sm:$0xff]   ;;  %v635_v61 = vld [vmem:[%s791_s1 + $0x38] sm:$0xff]  }
   0x7   :  { %583 = vmatpush3.bf16.msra.mxu0 %v629_v1  ;;  %621 = vmatpush3.bf16.msra.mxu1 %v629_v1  ;;  %v83_v18 = vadd.f32 %v700_v10, %v60_v12  ;;  %v84_v19 = vadd.f32 %v700_v10, %v61_v13  ;;  %v85_v35 = vadd.f32 %v700_v10, %v62_v20  ;;  %v500_v38 = vunpack.c.l.bf16 %v554_v27 }
   0x8   :  { %584 = vmatprep.subr.bf16.mxu0 %v630_v2  ;;  %614 = vmatprep.subr.bf16.mxu1 %v630_v2  ;;  %v68_v37 = vmul.f32 %v496_v23, %v689_v5  ;;  %v86_v40 = vadd.f32 %v700_v10, %v63_v26  ;;  %v69_v41 = vmul.f32 %v497_v34, %v689_v5  ;;  %v501_v42 = vunpack.c.h.bf16 %v554_v27 }
   0x9   :  { %v99_v24 = vmax.f32 %v83_v18, 0.0  ;;  %v100_v25 = vmax.f32 %v84_v19, 0.0  ;;  %v504_v43 = vunpack.c.l.bf16 %v555_v30  ;;  %v87_v45 = vadd.f32 %v700_v10, %v64_v29 }
   0xa   :  { %v91_v46 = vadd.f32 %v700_v10, %v68_v37  ;;  %v70_v47 = vmul.f32 %v500_v38, %v689_v5  ;;  %v505_v48 = vunpack.c.h.bf16 %v555_v30  ;;  %v92_v49 = vadd.f32 %v700_v10, %v69_v41 }
   0xb   :  { %585 = vmatpush3.bf16.msra.mxu0 %v630_v2  ;;  %622 = vmatpush3.bf16.msra.mxu1 %v630_v2  ;;  %v115_v31 = vpack.c.bf16 %v100_v25, %v99_v24  ;;  %v71_v50 = vmul.f32 %v501_v42, %v689_v5  ;;  %v72_v51 = vmul.f32 %v504_v43, %v689_v5  ;;  %v508_v52 = vunpack.c.l.bf16 %v556_v39 }
   0xc   :  { %586 = vmatprep.subr.bf16.mxu0 %v631_v3  ;;  %615 = vmatprep.subr.bf16.mxu1 %v631_v3  ;;  %v107_v53 = vmax.f32 %v91_v46, 0.0  ;;  %v93_v54 = vadd.f32 %v700_v10, %v70_v47  ;;  %v73_v55 = vmul.f32 %v505_v48, %v689_v5  ;;  %v509_v56 = vunpack.c.h.bf16 %v556_v39 }
   0xd   :  { %596 = vmatprep.mubr.bf16.mxu0 %v115_v31  ;;  %v88_v57 = vadd.f32 %v700_v10, %v65_v36  ;;  %v108_v58 = vmax.f32 %v92_v49, 0.0  ;;  %v94_v59 = vadd.f32 %v700_v10, %v71_v50  ;;  %v95_v60 = vadd.f32 %v700_v10, %v72_v51 }
   0xe   :  { %v66_v62 = vmul.f32 %v492_v32, %v689_v5  ;;  %v96_v63 = vadd.f32 %v700_v10, %v73_v55  ;;  %v101_v0 = vmax.f32 %v85_v35, 0.0  ;;  %v102_v1 = vmax.f32 %v86_v40, 0.0 }
   0xf   :  { %587 = vmatpush3.bf16.msra.mxu0 %v631_v3  ;;  %623 = vmatpush3.bf16.msra.mxu1 %v631_v3  ;;  %v67_v2 = vmul.f32 %v493_v33, %v689_v5  ;;  %v119_v3 = vpack.c.bf16 %v108_v58, %v107_v53  ;;  %v109_v4 = vmax.f32 %v93_v54, 0.0  ;;  %v110_v6 = vmax.f32 %v94_v59, 0.0 }
  0x10   :  { %588 = vmatprep.subr.bf16.mxu0 %v632_v16  ;;  %616 = vmatprep.subr.bf16.mxu1 %v632_v16  ;;  %v74_v7 = vmul.f32 %v508_v52, %v689_v5  ;;  %v75_v8 = vmul.f32 %v509_v56, %v689_v5  ;;  %v103_v9 = vmax.f32 %v87_v45, 0.0  ;;  %v104_v11 = vmax.f32 %v88_v57, 0.0 }
  0x11   :  { %v111_v12 = vmax.f32 %v95_v60, 0.0  ;;  %v112_v13 = vmax.f32 %v96_v63, 0.0  ;;  %v89_v14 = vadd.f32 %v700_v10, %v66_v62  ;;  %v90_v15 = vadd.f32 %v700_v10, %v67_v2  ;;  %604 = vmatprep.mubr.bf16.mxu1 %v119_v3 }
  0x12   :  { %v120_v17 = vpack.c.bf16 %v110_v6, %v109_v4  ;;  %v97_v18 = vadd.f32 %v700_v10, %v74_v7  ;;  %v98_v19 = vadd.f32 %v700_v10, %v75_v8  ;;  %v117_v5 = vpack.c.bf16 %v104_v11, %v103_v9 }
  0x13   :  { %589 = vmatpush3.bf16.msra.mxu0 %v632_v16  ;;  %624 = vmatpush3.bf16.msra.mxu1 %v632_v16  ;;  %v116_v16 = vpack.c.bf16 %v102_v1, %v101_v0  ;;  %v121_v20 = vpack.c.bf16 %v112_v13, %v111_v12  ;;  %v105_v21 = vmax.f32 %v89_v14, 0.0  ;;  %v106_v22 = vmax.f32 %v90_v15, 0.0 }
  0x14   :  { %590 = vmatprep.subr.bf16.mxu0 %v633_v28  ;;  %617 = vmatprep.subr.bf16.mxu1 %v633_v28  ;;  %v113_v23 = vmax.f32 %v97_v18, 0.0  ;;  %v114_v24 = vmax.f32 %v98_v19, 0.0 }
  0x15   :  { %v118_v25 = vpack.c.bf16 %v106_v22, %v105_v21 }
  0x16   :  { %v122_v26 = vpack.c.bf16 %v114_v24, %v113_v23 }
  0x17   :  { %591 = vmatpush3.bf16.msra.mxu0 %v633_v28  ;;  %625 = vmatpush3.bf16.msra.mxu1 %v633_v28 }
  0x18   :  { %592 = vmatprep.subr.bf16.mxu0 %v634_v44  ;;  %618 = vmatprep.subr.bf16.mxu1 %v634_v44 }
  0x1b   :  { %593 = vmatpush3.bf16.msra.mxu0 %v634_v44  ;;  %626 = vmatpush3.bf16.msra.mxu1 %v634_v44 }
  0x1c   :  { %594 = vmatprep.subr.bf16.mxu0 %v635_v61  ;;  %619 = vmatprep.subr.bf16.mxu1 %v635_v61 }
  0x1f   :  { %595 = vmatpush3.bf16.msra.mxu0 %v635_v61  ;;  %627 = vmatpush3.bf16.msra.mxu1 %v635_v61 }
  0x22   :  { %597 = vmatmul.mubr.bf16.vlgmr.msra.gmra.mrb[0].mxu0 %v116_v16  ;;  %605 = vmatmul.mubr.bf16.vlgmr.msra.gmra.mrb[0].mxu1 %v120_v17 }
  0x23   :  { %600 = vmatprep.mubr.bf16.mxu0 %v117_v5  ;;  %608 = vmatprep.mubr.bf16.mxu1 %v121_v20 }
  0x2a   :  { %601 = vmatmul.mubr.bf16.gmra.mrb[4].mxu0 %v118_v25  ;;  %609 = vmatmul.mubr.bf16.gmra.mrb[4].mxu1 %v122_v26 }
  0xf5   :  { %v598_v27 = vpop.f32.mrb[0].mxu0  ;;  %v606_v28 = vpop.f32.mrb[0].mxu1 }
  0xf6   :  { %v221_v29 = vpop.f32.mrb[1].mxu0  ;;  %v253_v10 = vpop.f32.mrb[1].mxu1  ;;  %v388_v41 = vmul.f32 %v598_v27, %v598_v27  ;;  %v396_v15 = vmul.f32 %v606_v28, %v606_v28 }
  0xf7   :  { %v599_v30 = vpop.f32.mrb[2].mxu0  ;;  %v607_v31 = vpop.f32.mrb[2].mxu1  ;;  %v386_v32 = vmul.f32 %v221_v29, %v221_v29  ;;  %v394_v8 = vmul.f32 %v253_v10, %v253_v10 }
  0xf8   :  { %v518_v33 = vpack.c.bf16 %v599_v30, %v598_v27  ;;  %v224_v34 = vpop.f32.mrb[3].mxu0  ;;  %v538_v35 = vpack.c.bf16 %v607_v31, %v606_v28  ;;  %v256_v36 = vpop.f32.mrb[3].mxu1  ;;  %v389_v44 = vmul.f32 %v599_v30, %v599_v30  ;;  %v397_v18 = vmul.f32 %v607_v31, %v607_v31 }
  0xf9   :  { %v513_v37 = vpack.c.bf16 %v224_v34, %v221_v29  ;;  %v364_v38 = vadd.f32 %v224_v34, %v221_v29  ;;  %v387_v39 = vmul.f32 %v224_v34, %v224_v34  ;;  %v533_v40 = vpack.c.bf16 %v256_v36, %v253_v10 }
  0xfa   :  { %557 = vst [vmem:[%s795_s4 + $0x8] sm:$0xff] %v518_v33   ;;  %561 = vst [vmem:[%s795_s4 + $0x28] sm:$0xff] %v538_v35   ;;  %v395_v14 = vmul.f32 %v256_v36, %v256_v36 }
  0xfb   :  { %514 = vst [vmem:[%s795_s4] sm:$0xff] %v513_v37   ;;  %v365_v42 = vadd.f32 %v598_v27, %v364_v38  ;;  %v402_v43 = vadd.f32 %v387_v39, %v386_v32  ;;  %560 = vst [vmem:[%s795_s4 + $0x20] sm:$0xff] %v533_v40  }
  0xfd   :  { %v403_v45 = vadd.f32 %v402_v43, %v388_v41  ;;  %v602_v46 = vpop.f32.mrb[4].mxu0  ;;  %v366_v47 = vadd.f32 %v599_v30, %v365_v42  ;;  %v610_v48 = vpop.f32.mrb[4].mxu1 }
  0xfe   :  { %v237_v49 = vpop.f32.mrb[5].mxu0  ;;  %v269_v50 = vpop.f32.mrb[5].mxu1  ;;  %v392_v1 = vmul.f32 %v602_v46, %v602_v46  ;;  %v400_v26 = vmul.f32 %v610_v48, %v610_v48 }
  0xff   :  { %v367_v51 = vadd.f32 %v366_v47, %v237_v49  ;;  %v390_v52 = vmul.f32 %v237_v49, %v237_v49  ;;  %v404_v53 = vadd.f32 %v403_v45, %v389_v44  ;;  %v603_v54 = vpop.f32.mrb[6].mxu0  ;;  %v611_v55 = vpop.f32.mrb[6].mxu1  ;;  %v398_v20 = vmul.f32 %v269_v50, %v269_v50 }
 0x100   :  { %v528_v56 = vpack.c.bf16 %v603_v54, %v602_v46  ;;  %v240_v57 = vpop.f32.mrb[7].mxu0  ;;  %v548_v58 = vpack.c.bf16 %v611_v55, %v610_v48  ;;  %v272_v59 = vpop.f32.mrb[7].mxu1  ;;  %v393_v4 = vmul.f32 %v603_v54, %v603_v54 }
 0x101   :  { %v405_v60 = vadd.f32 %v404_v53, %v390_v52  ;;  %v523_v61 = vpack.c.bf16 %v240_v57, %v237_v49  ;;  %v368_v62 = vadd.f32 %v367_v51, %v240_v57  ;;  %v391_v63 = vmul.f32 %v240_v57, %v240_v57 }
 0x102   :  { %559 = vst [vmem:[%s795_s4 + $0x18] sm:$0xff] %v528_v56   ;;  %563 = vst [vmem:[%s795_s4 + $0x38] sm:$0xff] %v548_v58   ;;  %v543_v0 = vpack.c.bf16 %v272_v59, %v269_v50  ;;  %v399_v25 = vmul.f32 %v272_v59, %v272_v59 }
 0x103   :  { %558 = vst [vmem:[%s795_s4 + $0x10] sm:$0xff] %v523_v61   ;;  %v369_v2 = vadd.f32 %v602_v46, %v368_v62  ;;  %v406_v3 = vadd.f32 %v405_v60, %v391_v63 }
 0x104   :  { %562 = vst [vmem:[%s795_s4 + $0x30] sm:$0xff] %v543_v0  }
 0x105   :  { %v407_v6 = vadd.f32 %v406_v3, %v392_v1  ;;  %v370_v7 = vadd.f32 %v603_v54, %v369_v2 }
 0x107   :  { %v371_v9 = vadd.f32 %v370_v7, %v253_v10  ;;  %v408_v11 = vadd.f32 %v407_v6, %v393_v4  ;;  %v401_v10 = vmul.f32 %v611_v55, %v611_v55 }
 0x109   :  { %v409_v12 = vadd.f32 %v408_v11, %v394_v8  ;;  %v372_v13 = vadd.f32 %v371_v9, %v256_v36 }
 0x10b   :  { %v373_v16 = vadd.f32 %v606_v28, %v372_v13  ;;  %v410_v17 = vadd.f32 %v409_v12, %v395_v14 }
 0x10d   :  { %v411_v19 = vadd.f32 %v410_v17, %v396_v15  ;;  %v374_v5 = vadd.f32 %v607_v31, %v373_v16 }
 0x10f   :  { %v375_v21 = vadd.f32 %v374_v5, %v269_v50  ;;  %v412_v22 = vadd.f32 %v411_v19, %v397_v18 }
 0x111   :  { %v413_v23 = vadd.f32 %v412_v22, %v398_v20  ;;  %v376_v24 = vadd.f32 %v375_v21, %v272_v59 }
 0x113   :  { %v377_v27 = vadd.f32 %v610_v48, %v376_v24  ;;  %v414_v29 = vadd.f32 %v413_v23, %v399_v25 }
 0x115   :  { %v378_v30 = vadd.f32 %v611_v55, %v377_v27  ;;  %v415_v32 = vadd.f32 %v414_v29, %v400_v26 }
 0x117   :  { %v379_v33 = vrot.slane %v378_v30, 4  ;;  %v416_v34 = vadd.f32 %v415_v32, %v401_v10 }
 0x119   :  { %v380_v35 = vadd.f32 %v379_v33, %v378_v30  ;;  %v417_v28 = vrot.slane %v416_v34, 4 }
 0x11b   :  { %v381_v36 = vrot.slane %v380_v35, 2  ;;  %v418_v37 = vadd.f32 %v417_v28, %v416_v34 }
 0x11d   :  { %v382_v38 = vadd.f32 %v381_v36, %v380_v35  ;;  %v419_v31 = vrot.slane %v418_v37, 2 }
 0x11f   :  { %v383_v39 = vrot.slane %v382_v38, 1  ;;  %v420_v40 = vadd.f32 %v419_v31, %v418_v37 }
 0x121   :  { %v384_v41 = vadd.f32 %v383_v39, %v382_v38  ;;  %v421_v42 = vrot.slane %v420_v40, 1 }
 0x123   :  { %385 = vst [vmem:[%s796_s5] sm:$0x1] %v384_v41  ;;  %v422_v43 = vadd.f32 %v421_v42, %v420_v40 }
 0x125   :  { %423 = vst [vmem:[%s797_s6] sm:$0x1] %v422_v43 }

// kernel: bottleneck_forward.6
= control target key start
LH: loop header
LB: loop body
LE: loop exit
PB: predicated region body
PF: predicated region fallthrough
CT: control target
= control target key end

     0   :  { %s3310_s21 = smov 0   ;;  %s3784_s0 = inlined_call_operand.vmem [shape: bf16[8,8,8,128], index: 0, kind: input, shape index: {}]   ;;  %s3785_s1 = inlined_call_operand.vmem [shape: bf16[1152,128], index: 1, kind: input, shape index: {}]   ;;  %s3786_s2 = inlined_call_operand.vmem [shape: f32[1,128], index: 2, kind: input, shape index: {}]   ;;  %s3787_s3 = inlined_call_operand.vmem [shape: f32[1,128], index: 3, kind: input, shape index: {}]   ;;  %s3788_s4 = inlined_call_operand.vmem [shape: bf16[128,128], index: 4, kind: output, shape index: {0}]   ;;  %s3789_s5 = inlined_call_operand.vmem [shape: f32[2,1,128], index: 5, kind: output, shape index: {1}]   ;;  %s3790_s6 = inlined_call_operand.vmem [shape: f32[2,1,128], index: 6, kind: output, shape index: {2}]  }
   0x1 LB: > { %s2555_s22 = sadd.s32 4294967295, %s3272_s21   ;;  %p2559_p0 = scmp.ge.s32.totalorder %s3272_s21, 1  ;;  %s3272_s21 = sphi %s3310_s21, %s17_s21  }
   0x2   : > { %p219_p1 = scmp.lt.s32.totalorder %s3272_s21, 3 }
   0x4   : > { %p220_p2 = pnand %p2559_p0, %p219_p1 }
   0x5   : > { %s2560_s23 = sshll.u32 (!%p220_p2), %s2555_s22, 2  ;;  %s2563_s24 = sshll.u32 (!%p220_p2), %s2555_s22, 3 }
   0x6   : > { %223 = sbr.rel (%p220_p2) target bundleno = 420 (0x1a4), region = 36  ;;  %p257_p3 = scmp.lt.s32.totalorder (!%p220_p2), %s2560_s23, 7 }
   0x7   : > { %p264_p4 = scmp.lt.s32.totalorder (!%p220_p2), %s2563_s24, 15  ;;  %p269_p5 = scmp.lt.s32.totalorder (!%p220_p2), %s2555_s22, 1 }
   0x8   : > { %p2565_p6 = scmp.ne.s32.totalorder (!%p220_p2), %s2555_s22, 0 }
   0xd   : > { %s3794_s23 = smov (!%p257_p3, %s2560_s23), 7  ;;  %s3796_s24 = smov (!%p264_p4, %s2563_s24), 15 }
   0xe   : > { %s2788_s25 = sshll.u32 %s3794_s23, 5  ;;  %s2564_s29 = sshll.u32 %s3796_s24, 2  ;;  %v3274_v0 = vmov (!%p2565_p6), 0  }
   0xf   : > { %s3321_s28 = scalar_lea.vmem %s3784_s0, %s2788_s25  ;;  %s3326_s8 = scalar_lea.vmem %s3788_s4, %s2564_s29  ;;  %281 = vst [vmem:[#allocation2 + $0x8] sm:$0xff] (!%p2565_p6), %v3274_v0  ;;  %282 = vst [vmem:[#allocation2 + $0x10] sm:$0xff] (!%p2565_p6), %v3274_v0 }
  0x10   : > { %s3328_s9 = scalar_select %p269_p5, %s2555_s22, 1 }
  0x11   : > { %279 = sbr.rel (%p2565_p6) target bundleno = 33 (0x21), region = 40  ;;  %283 = vst [vmem:[#allocation2 + $0x18] sm:$0xff] (!%p2565_p6), %v3274_v0  ;;  %284 = vst [vmem:[#allocation2 + $0x20] sm:$0xff] (!%p2565_p6), %v3274_v0 }
  0x12   : > { %s271_s12 = scalar_lea.vmem %s3789_s5, %s3328_s9  ;;  %s274_s15 = scalar_lea.vmem %s3790_s6, %s3328_s9  ;;  %285 = vst [vmem:[#allocation2 + $0x28] sm:$0xff] (!%p2565_p6), %v3274_v0  ;;  %286 = vst [vmem:[#allocation2 + $0x30] sm:$0xff] (!%p2565_p6), %v3274_v0 }
  0x13   : > { %287 = vst [vmem:[#allocation2 + $0x38] sm:$0xff] (!%p2565_p6), %v3274_v0  ;;  %288 = vst [vmem:[#allocation2 + $0x40] sm:$0xff] (!%p2565_p6), %v3274_v0 }
  0x14   : > { %290 = vst [vmem:[#allocation2 + $0x50] sm:$0xff] (!%p2565_p6), %v3274_v0  ;;  %291 = vst [vmem:[#allocation2 + $0x58] sm:$0xff] (!%p2565_p6), %v3274_v0 }
  0x15   : > { %292 = vst [vmem:[#allocation2 + $0x60] sm:$0xff] (!%p2565_p6), %v3274_v0  ;;  %293 = vst [vmem:[#allocation2 + $0x68] sm:$0xff] (!%p2565_p6), %v3274_v0 }
  0x16   : > { %294 = vst [vmem:[#allocation2 + $0x70] sm:$0xff] (!%p2565_p6), %v3274_v0  ;;  %295 = vst [vmem:[#allocation2 + $0x78] sm:$0xff] (!%p2565_p6), %v3274_v0 }
  0x17   : > { %296 = vst [vmem:[#allocation2 + $0x80] sm:$0xff] (!%p2565_p6), %v3274_v0  ;;  %297 = vst [vmem:[#allocation2 + $0x88] sm:$0xff] (!%p2565_p6), %v3274_v0 }
  0x18   : > { %298 = vst [vmem:[#allocation2 + $0x90] sm:$0xff] %v3274_v0  ;;  %299 = vst [vmem:[#allocation2 + $0x98] sm:$0xff] %v3274_v0 }
  0x19   : > { %300 = vst [vmem:[#allocation2 + $0xa0] sm:$0xff] %v3274_v0  ;;  %301 = vst [vmem:[#allocation2 + $0xa8] sm:$0xff] %v3274_v0 }
  0x1a   : > { %302 = vst [vmem:[#allocation2 + $0xb0] sm:$0xff] %v3274_v0  ;;  %303 = vst [vmem:[#allocation2 + $0xb8] sm:$0xff] %v3274_v0 }
  0x1b   : > { %304 = vst [vmem:[#allocation2 + $0xc0] sm:$0xff] %v3274_v0  ;;  %305 = vst [vmem:[#allocation2 + $0xc8] sm:$0xff] %v3274_v0 }
  0x1c   : > { %306 = vst [vmem:[#allocation2 + $0xd0] sm:$0xff] %v3274_v0  ;;  %307 = vst [vmem:[#allocation2 + $0xd8] sm:$0xff] %v3274_v0 }
  0x1d   : > { %308 = vst [vmem:[#allocation2 + $0xe0] sm:$0xff] %v3274_v0  ;;  %309 = vst [vmem:[#allocation2 + $0xe8] sm:$0xff] %v3274_v0 }
  0x1e   : > { %310 = vst [vmem:[#allocation2 + $0xf0] sm:$0xff] %v3274_v0  ;;  %311 = vst [vmem:[#allocation2 + $0xf8] sm:$0xff] %v3274_v0 }
  0x1f   : > { %312 = vst [vmem:[#allocation2 + $0x100] sm:$0xff] %v3274_v0  ;;  %313 = vst [vmem:[#allocation2 + $0x108] sm:$0xff] %v3274_v0 }
  0x20   : > { %314 = vst [vmem:[#allocation2 + $0x110] sm:$0xff] %v3274_v0  ;;  %315 = vst [vmem:[#allocation2 + $0x118] sm:$0xff] %v3274_v0 }
  0x21 PF: > { %v3120_v1 = vld [vmem:[%s3785_s1 + $0x40] sm:$0xff]   ;;  %v3124_v5 = vld [vmem:[%s3785_s1 + $0x48] sm:$0xff]   ;;  %v3128_v9 = vld [vmem:[%s3785_s1 + $0x50] sm:$0xff]   ;;  %vm748_vm0 = vsmask.f32 256 }
  0x22   : > { %v3121_v2 = vld [vmem:[%s3785_s1 + $0xc0] sm:$0xff]   ;;  %2899 = vmatprep.subr.bf16.mxu0 %v3120_v1  ;;  %v3125_v6 = vld [vmem:[%s3785_s1 + $0xc8] sm:$0xff]   ;;  %v3129_v10 = vld [vmem:[%s3785_s1 + $0xd0] sm:$0xff]   ;;  %vm749_vm1 = vsmask.f32 4368 }
  0x23   : > { %v3122_v3 = vld [vmem:[%s3785_s1] sm:$0xff]   ;;  %2939 = vmatprep.subr.bf16.mxu1 %v3121_v2  ;;  %v3126_v7 = vld [vmem:[%s3785_s1 + $0x8] sm:$0xff]   ;;  %v3130_v11 = vld [vmem:[%s3785_s1 + $0x10] sm:$0xff]  }
  0x24   : > { %v3123_v4 = vld [vmem:[%s3785_s1 + $0x80] sm:$0xff]   ;;  %2900 = vmatpush3.bf16.msra.mxu0 %v3122_v3  ;;  %v3127_v8 = vld [vmem:[%s3785_s1 + $0x88] sm:$0xff]   ;;  %v3131_v12 = vld [vmem:[%s3785_s1 + $0x90] sm:$0xff]  }
  0x25   : > { %2940 = vmatpush3.bf16.msra.mxu1 %v3123_v4  ;;  %2901 = vmatprep.subr.bf16.mxu0 %v3124_v5  ;;  %v3132_v13 = vld [vmem:[%s3785_s1 + $0x58] sm:$0xff]   ;;  %v3136_v17 = vld [vmem:[%s3785_s1 + $0x60] sm:$0xff]   ;;  %v3140_v21 = vld [vmem:[%s3785_s1 + $0x68] sm:$0xff]  }
  0x26   : > { %2941 = vmatprep.subr.bf16.mxu1 %v3125_v6  ;;  %v3133_v14 = vld [vmem:[%s3785_s1 + $0xd8] sm:$0xff]   ;;  %v3137_v18 = vld [vmem:[%s3785_s1 + $0xe0] sm:$0xff]   ;;  %v3141_v22 = vld [vmem:[%s3785_s1 + $0xe8] sm:$0xff]  }
  0x27   : > { %v3134_v15 = vld [vmem:[%s3785_s1 + $0x18] sm:$0xff]   ;;  %v3138_v19 = vld [vmem:[%s3785_s1 + $0x20] sm:$0xff]   ;;  %v3142_v23 = vld [vmem:[%s3785_s1 + $0x28] sm:$0xff]  }
  0x28   : > { %2902 = vmatpush3.bf16.msra.mxu0 %v3126_v7  ;;  %v3135_v16 = vld [vmem:[%s3785_s1 + $0x98] sm:$0xff]   ;;  %v3139_v20 = vld [vmem:[%s3785_s1 + $0xa0] sm:$0xff]   ;;  %v3143_v24 = vld [vmem:[%s3785_s1 + $0xa8] sm:$0xff]  }
  0x29   : > { %2942 = vmatpush3.bf16.msra.mxu1 %v3127_v8  ;;  %2903 = vmatprep.subr.bf16.mxu0 %v3128_v9  ;;  %v3144_v25 = vld [vmem:[%s3785_s1 + $0x70] sm:$0xff]   ;;  %v3148_v29 = vld [vmem:[%s3785_s1 + $0x78] sm:$0xff]   ;;  %v2888_v33 = vld [vmem:[%s3321_s28 + $0x40] sm:$0xff]  }
  0x2a   : > { %2943 = vmatprep.subr.bf16.mxu1 %v3129_v10  ;;  %v3145_v26 = vld [vmem:[%s3785_s1 + $0xf0] sm:$0xff]   ;;  %v3149_v30 = vld [vmem:[%s3785_s1 + $0xf8] sm:$0xff]   ;;  %v3438_v34 = vld [vmem:[%s3786_s2] ss:$0 sm:$0xff]  ;;  %v2831_v35 = vunpack.c.l.bf16 %v2888_v33  ;;  %v2832_v36 = vunpack.c.h.bf16 %v2888_v33 }
  0x2b   : > { %v3146_v27 = vld [vmem:[%s3785_s1 + $0x30] sm:$0xff]   ;;  %v3150_v31 = vld [vmem:[%s3785_s1 + $0x38] sm:$0xff]   ;;  %v2884_v37 = vld [vmem:[%s3321_s28 + $0x20] sm:$0xff]  }
  0x2c   : > { %2904 = vmatpush3.bf16.msra.mxu0 %v3130_v11  ;;  %v3147_v28 = vld [vmem:[%s3785_s1 + $0xb0] sm:$0xff]   ;;  %v3151_v32 = vld [vmem:[%s3785_s1 + $0xb8] sm:$0xff]   ;;  %v2892_v38 = vld [vmem:[%s3321_s28 + $0x60] sm:$0xff]   ;;  %v2815_v39 = vunpack.c.l.bf16 %v2884_v37  ;;  %v2816_v40 = vunpack.c.h.bf16 %v2884_v37  ;;  %v531_v43 = vmul.f32 %v2831_v35, %v3438_v34  ;;  %v532_v47 = vmul.f32 %v2832_v36, %v3438_v34 }
  0x2d   : > { %2944 = vmatpush3.bf16.msra.mxu1 %v3131_v12  ;;  %2905 = vmatprep.subr.bf16.mxu0 %v3132_v13  ;;  %v2847_v41 = vunpack.c.l.bf16 %v2892_v38  ;;  %v700_v42 = vld [vmem:[#allocation2 + $0xd8] sm:$0xf8]  ;;  %v3446_v44 = vld [vmem:[%s3787_s3] ss:$0 sm:$0xff]  ;;  %v2848_v52 = vunpack.c.h.bf16 %v2892_v38  ;;  %vm3479_vm2 = vmor %vm748_vm0, %vm749_vm1 }
  0x2e   : > { %2945 = vmatprep.subr.bf16.mxu1 %v3133_v14  ;;  %v2598_v45 = vcombine.low %v700_v42, %v700_v42  ;;  %v2599_v46 = vcombine.high %v700_v42, %v700_v42  ;;  %v435_v48 = vmul.f32 %v2815_v39, %v3438_v34  ;;  %v436_v49 = vmul.f32 %v2816_v40, %v3438_v34  ;;  %v3162_v51 = vld [vmem:[%s3785_s1 + $0x140] sm:$0xff]  }
  0x2f   : > { %v627_v50 = vmul.f32 %v2847_v41, %v3438_v34  ;;  %v546_v53 = vadd.f32 %v3446_v44, %v531_v43  ;;  %v3163_v55 = vld [vmem:[%s3785_s1 + $0x1c0] sm:$0xff]   ;;  %v547_v59 = vadd.f32 %v3446_v44, %v532_v47  ;;  %v628_v63 = vmul.f32 %v2848_v52, %v3438_v34 }
  0x30   : > { %2906 = vmatpush3.bf16.msra.mxu0 %v3134_v15  ;;  %v3456_v54 = vshrl.u32 %v2598_v45, 16  ;;  %v450_v56 = vadd.f32 %v3446_v44, %v435_v48  ;;  %v451_v57 = vadd.f32 %v3446_v44, %v436_v49  ;;  %v757_v61 = vshrl.u32 %v2599_v46, 16  ;;  %v2889_v15 = vld [vmem:[%s3321_s28 + $0x48] sm:$0xff]  }
  0x31   : > { %2946 = vmatpush3.bf16.msra.mxu1 %v3135_v16  ;;  %2907 = vmatprep.subr.bf16.mxu0 %v3136_v17  ;;  %v642_v58 = vadd.f32 %v3446_v44, %v627_v50  ;;  %v554_v60 = vmax.f32 %v546_v53, 0.0  ;;  %v760_v62 = vshll.u32 %v2599_v46, 16  ;;  %v643_v5 = vadd.f32 %v3446_v44, %v628_v63  ;;  %v2885_v17 = vld [vmem:[%s3321_s28 + $0x28] sm:$0xff]  }
  0x32   : > { %2947 = vmatprep.subr.bf16.mxu1 %v3137_v18  ;;  %v458_v0 = vmax.f32 %v450_v56, 0.0  ;;  %v459_v1 = vmax.f32 %v451_v57, 0.0  ;;  %v2614_v3 = vrot.slane %v3456_v54, 11  ;;  %v555_v9 = vmax.f32 %v547_v59, 0.0 }
  0x33   : > { %v650_v2 = vmax.f32 %v642_v58, 0.0  ;;  %v562_v4 = vpack.c.bf16 %v554_v60, %v554_v60  ;;  %v759_v11 = vrot.slane %v757_v61, 7  ;;  %v2835_v18 = vunpack.c.l.bf16 %v2889_v15 }
  0x34   : > { %2908 = vmatpush3.bf16.msra.mxu0 %v3138_v19  ;;  %v466_v6 = vpack.c.bf16 %v458_v0, %v458_v0  ;;  %v467_v7 = vpack.c.bf16 %v459_v1, %v459_v1  ;;  %v563_v16 = vpack.c.bf16 %v555_v9, %v555_v9  ;;  %v2819_v19 = vunpack.c.l.bf16 %v2885_v17  ;;  %v3498_v9 = vld [vmem:[%s3321_s28 + $0x50] sm:$0xff]  }
  0x35   : > { %2948 = vmatpush3.bf16.msra.mxu1 %v3139_v20  ;;  %2909 = vmatprep.subr.bf16.mxu0 %v3140_v21  ;;  %v658_v8 = vpack.c.bf16 %v650_v2, %v650_v2  ;;  %v578_v10 = vrot.slane %v562_v4, 4  ;;  %v2820_v20 = vunpack.c.h.bf16 %v2885_v17  ;;  %v2893_v21 = vld [vmem:[%s3321_s28 + $0x68] sm:$0xff]  }
  0x36   : > { %2949 = vmatprep.subr.bf16.mxu1 %v3141_v22  ;;  %v482_v12 = vrot.slane %v466_v6, 4  ;;  %v483_v13 = vrot.slane %v467_v7, 4  ;;  %v651_v22 = vmax.f32 %v643_v5, 0.0 }
  0x37   : > { %v674_v14 = vrot.slane %v658_v8, 4  ;;  %595 = vst [vmem:[#allocation2 + $0x98] sm:$0xf0] %v578_v10 }
  0x38   : > { %2910 = vmatpush3.bf16.msra.mxu0 %v3142_v23  ;;  %499 = vst [vmem:[#allocation2 + $0x50] sm:$0xf0] %v482_v12  ;;  %500 = vst [vmem:[#allocation2 + $0x58] sm:$0xf0] %v483_v13  ;;  %v579_v23 = vrot.slane %v563_v16, 4 }
  0x39   : > { %2950 = vmatpush3.bf16.msra.mxu1 %v3143_v24  ;;  %2911 = vmatprep.subr.bf16.mxu0 %v3144_v25  ;;  %691 = vst [vmem:[#allocation2 + $0xe0] sm:$0xf0] %v674_v14  ;;  %v2851_v24 = vunpack.c.l.bf16 %v2893_v21  ;;  %v2836_v25 = vunpack.c.h.bf16 %v2889_v15 }
  0x3a   : > { %2951 = vmatprep.subr.bf16.mxu1 %v3145_v26  ;;  %v2852_v26 = vunpack.c.h.bf16 %v2893_v21  ;;  %596 = vst [vmem:[#allocation2 + $0xa0] sm:$0xf0] %v579_v23 }
  0x3b   : > { %v534_v33 = vmul.f32 %v2836_v25, %v3438_v34 }
  0x3c   : > { %2912 = vmatpush3.bf16.msra.mxu0 %v3146_v27  ;;  %v533_v27 = vmul.f32 %v2835_v18, %v3438_v34  ;;  %v630_v35 = vmul.f32 %v2852_v26, %v3438_v34  ;;  %v3164_v26 = vld [vmem:[%s3785_s1 + $0x100] sm:$0xff]  }
  0x3d   : > { %2952 = vmatpush3.bf16.msra.mxu1 %v3147_v28  ;;  %2913 = vmatprep.subr.bf16.mxu0 %v3148_v29  ;;  %v437_v28 = vmul.f32 %v2819_v19, %v3438_v34  ;;  %v438_v29 = vmul.f32 %v2820_v20, %v3438_v34  ;;  %v3492_v49 = vadd.f32 %v3446_v44, %v534_v33 }
  0x3e   : > { %2953 = vmatprep.subr.bf16.mxu1 %v3149_v30  ;;  %v659_v30 = vpack.c.bf16 %v651_v22, %v651_v22  ;;  %v548_v37 = vadd.f32 %v3446_v44, %v533_v27  ;;  %v3152_v46 = vld [vmem:[#allocation2 + $0x94] ss:$8 sps:$4 sm:$0xff]   ;;  %v3495_v56 = vadd.f32 %v3446_v44, %v630_v35  ;;  %v2839_v27 = vunpack.c.l.bf16 %v3498_v9 }
  0x3f   : > { %v452_v38 = vadd.f32 %v3446_v44, %v437_v28  ;;  %v453_v39 = vadd.f32 %v3446_v44, %v438_v29  ;;  %v948_v50 = vld [vmem:[#allocation2 + $0x50] sm:$0xf8]  ;;  %2080 = vmatprep.mubr.bf16.mxu0 %v3152_v46  ;;  %v557_v28 = vmax.f32 %v3492_v49, 0.0 }
  0x40   : > { %2914 = vmatpush3.bf16.msra.mxu0 %v3150_v31  ;;  %v762_v31 = vor.u32 %v760_v62, %v759_v11  ;;  %v675_v40 = vrot.slane %v659_v30, 4  ;;  %v556_v42 = vmax.f32 %v548_v37, 0.0  ;;  %v701_v52 = vld [vmem:[#allocation2 + $0xe0] sm:$0xf8]  ;;  %v2634_v57 = vcombine.low %v948_v50, %v948_v50  ;;  %v2886_v29 = vld [vmem:[%s3321_s28 + $0x30] sm:$0xff]  }
  0x41   : > { %2954 = vmatpush3.bf16.msra.mxu1 %v3151_v32  ;;  %2979 = vmatprep.subr.bf16.mxu0 %v3162_v51  ;;  %v629_v32 = vmul.f32 %v2851_v24, %v3438_v34  ;;  %v460_v43 = vmax.f32 %v452_v38, 0.0  ;;  %v461_v45 = vmax.f32 %v453_v39, 0.0  ;;  %v949_v51 = vld [vmem:[#allocation2 + $0x58] sm:$0xf8]  ;;  %v2635_v58 = vcombine.high %v948_v50, %v948_v50 }
  0x42   : > { %3019 = vmatprep.subr.bf16.mxu1 %v3163_v55  ;;  %692 = vst [vmem:[#allocation2 + $0xe8] sm:$0xf0] %v675_v40  ;;  %v3489_v47 = vsel %vm3479_vm2, %v2614_v3, %v762_v31  ;;  %v564_v53 = vpack.c.bf16 %v556_v42, %v556_v42  ;;  %v2636_v59 = vcombine.low %v949_v51, %v949_v51  ;;  %v997_v1 = vshrl.u32 %v2634_v57, 16  ;;  %v3161_v25 = vld [vmem:[#allocation2 + $0xdc] ss:$8 sps:$4 sm:$0xff]   ;;  %v3167_v40 = vld [vmem:[%s3785_s1 + $0x1c8] sm:$0xff]  }
  0x43   : > { %v644_v41 = vadd.f32 %v3446_v44, %v629_v32  ;;  %v468_v54 = vpack.c.bf16 %v460_v43, %v460_v43  ;;  %v469_v55 = vpack.c.bf16 %v461_v45, %v461_v45  ;;  %v2637_v60 = vcombine.high %v949_v51, %v949_v51  ;;  %v3165_v31 = vld [vmem:[%s3785_s1 + $0x180] sm:$0xff]   ;;  %v3166_v32 = vld [vmem:[%s3785_s1 + $0x148] sm:$0xff]   ;;  %v3523_v43 = vld [vmem:[%s3321_s28 + $0x70] sm:$0xff]  }
  0x44   : > { %v2600_v61 = vcombine.low %v701_v52, %v701_v52  ;;  %v2601_v62 = vcombine.high %v701_v52, %v701_v52  ;;  %v580_v63 = vrot.slane %v564_v53, 4  ;;  %v1002_v2 = vshrl.u32 %v2635_v58, 16  ;;  %v3168_v52 = vld [vmem:[%s3785_s1 + $0x108] sm:$0xff]  }
  0x45   : > { %v652_v48 = vmax.f32 %v644_v41, 0.0  ;;  %v484_v0 = vrot.slane %v468_v54, 4  ;;  %v1005_v3 = vshll.u32 %v2635_v58, 16  ;;  %v1010_v4 = vshrl.u32 %v2636_v59, 16  ;;  %v3169_v58 = vld [vmem:[%s3785_s1 + $0x188] sm:$0xff]  }
  0x46   : > { %v1015_v5 = vshrl.u32 %v2637_v60, 16  ;;  %v1018_v6 = vshll.u32 %v2637_v60, 16  ;;  %v765_v7 = vshrl.u32 %v2600_v61, 16  ;;  %v770_v8 = vshrl.u32 %v2601_v62, 16  ;;  %597 = vst [vmem:[#allocation2 + $0xa8] sm:$0xf0] %v580_v63 }
  0x47   : > { %501 = vst [vmem:[#allocation2 + $0x60] sm:$0xf0] %v484_v0  ;;  %v2650_v10 = vrot.slane %v997_v1, 11  ;;  %v1004_v11 = vrot.slane %v1002_v2, 7  ;;  %v2651_v12 = vrot.slane %v1010_v4, 11  ;;  %v773_v13 = vshll.u32 %v2601_v62, 16 }
  0x48   : > { %v1017_v15 = vrot.slane %v1015_v5, 7  ;;  %v2615_v16 = vrot.slane %v765_v7, 11  ;;  %v772_v17 = vrot.slane %v770_v8, 7  ;;  %v485_v18 = vrot.slane %v469_v55, 4  ;;  %v3180_v2 = vld [vmem:[%s3785_s1 + $0x150] sm:$0xff]  }
  0x49   : > { %v702_v14 = vld [vmem:[#allocation2 + $0xe8] sm:$0xf8]  ;;  %v1007_v19 = vor.u32 %v1005_v3, %v1004_v11  ;;  %v660_v20 = vpack.c.bf16 %v652_v48, %v652_v48  ;;  %v535_v42 = vmul.f32 %v2839_v27, %v3438_v34  ;;  %v565_v50 = vpack.c.bf16 %v557_v28, %v557_v28  ;;  %v3181_v4 = vld [vmem:[%s3785_s1 + $0x1d0] sm:$0xff]   ;;  %v3184_v27 = vld [vmem:[%s3785_s1 + $0x158] sm:$0xff]  }
  0x4a   : > { %v2602_v21 = vcombine.low %v702_v14, %v702_v14  ;;  %v2603_v22 = vcombine.high %v702_v14, %v702_v14  ;;  %v1020_v23 = vor.u32 %v1018_v6, %v1017_v15  ;;  %v775_v24 = vor.u32 %v773_v13, %v772_v17  ;;  %502 = vst [vmem:[#allocation2 + $0x68] sm:$0xf0] %v485_v18 }
  0x4b   : > { %v1008_v30 = vsel %vm3479_vm2, %v2650_v10, %v1007_v19  ;;  %v676_v33 = vrot.slane %v660_v20, 4  ;;  %v2823_v51 = vunpack.c.l.bf16 %v2886_v29  ;;  %v581_v59 = vrot.slane %v565_v50, 4 }
  0x4c   : > { %v778_v35 = vshrl.u32 %v2602_v21, 16  ;;  %v783_v37 = vshrl.u32 %v2603_v22, 16  ;;  %v1021_v38 = vsel %vm3479_vm2, %v2651_v12, %v1020_v23  ;;  %v776_v39 = vsel %vm3479_vm2, %v2615_v16, %v775_v24  ;;  %v3182_v23 = vld [vmem:[%s3785_s1 + $0x110] sm:$0xff]  }
  0x4d   : > { %v786_v41 = vshll.u32 %v2603_v22, 16  ;;  %v2658_v45 = vcombine.low %v1008_v30, %v1021_v38  ;;  %v2622_v46 = vcombine.low %v3489_v47, %v776_v39  ;;  %v3170_v48 = vld [vmem:[#allocation2 + $0xa4] ss:$8 sps:$4 sm:$0xff]   ;;  %693 = vst [vmem:[#allocation2 + $0xf0] sm:$0xf0] %v676_v33  ;;  %v550_v47 = vadd.f32 %v3446_v44, %v535_v42  ;;  %v3185_v33 = vld [vmem:[%s3785_s1 + $0x1d8] sm:$0xff]  }
  0x4e   : > { %v950_v49 = vld [vmem:[#allocation2 + $0x60] sm:$0xf8]  ;;  %v2616_v55 = vrot.slane %v778_v35, 11  ;;  %v785_v57 = vrot.slane %v783_v37, 7  ;;  %v2824_v60 = vunpack.c.h.bf16 %v2886_v29  ;;  %v439_v61 = vmul.f32 %v2823_v51, %v3438_v34  ;;  %598 = vst [vmem:[#allocation2 + $0xb0] sm:$0xf0] %v581_v59 }
  0x4f   : > { %v2638_v53 = vcombine.low %v950_v49, %v950_v49  ;;  %v2639_v54 = vcombine.high %v950_v49, %v950_v49  ;;  %2145 = vmatprep.mubr.bf16.mxu1 %v2658_v45  ;;  %2081 = vmatmul.mubr.bf16.vlgmr.msra.gmra.mrb[0].mxu0 %v2622_v46  ;;  %v558_v5 = vmax.f32 %v550_v47, 0.0  ;;  %v2855_v8 = vunpack.c.l.bf16 %v3523_v43  ;;  %v3186_v35 = vld [vmem:[%s3785_s1 + $0x118] sm:$0xff]  }
  0x50   : > { %2146 = vmatmul.mubr.bf16.vlgmr.msra.gmra.mrb[0].mxu1 %v3161_v25  ;;  %2980 = vmatpush3.bf16.msra.mxu0 %v3164_v26  ;;  %v788_v1 = vor.u32 %v786_v41, %v785_v57  ;;  %v440_v6 = vmul.f32 %v2824_v60, %v3438_v34  ;;  %v454_v7 = vadd.f32 %v3446_v44, %v439_v61  ;;  %v3183_v26 = vld [vmem:[%s3785_s1 + $0x190] sm:$0xff]   ;;  %v3566_v38 = vld [vmem:[%s3321_s28 + $0x58] sm:$0xff]   ;;  %v2840_v47 = vunpack.c.h.bf16 %v3498_v9 }
  0x51   : > { %v1023_v62 = vshrl.u32 %v2638_v53, 16  ;;  %v1028_v63 = vshrl.u32 %v2639_v54, 16  ;;  %v1031_v0 = vshll.u32 %v2639_v54, 16  ;;  %3020 = vmatpush3.bf16.msra.mxu1 %v3165_v31  ;;  %2981 = vmatprep.subr.bf16.mxu0 %v3166_v32  ;;  %v951_v3 = vld [vmem:[#allocation2 + $0x68] sm:$0xf8]  ;;  %v566_v15 = vpack.c.bf16 %v558_v5, %v558_v5  ;;  %v3187_v42 = vld [vmem:[%s3785_s1 + $0x198] sm:$0xff]  }
  0x52   : > { %3021 = vmatprep.subr.bf16.mxu1 %v3167_v40  ;;  %2088 = vmatprep.mubr.bf16.mxu0 %v3170_v48  ;;  %v2640_v10 = vcombine.low %v951_v3, %v951_v3  ;;  %v2641_v11 = vcombine.high %v951_v3, %v951_v3  ;;  %v3545_v14 = vsel %vm3479_vm2, %v2616_v55, %v788_v1  ;;  %v462_v17 = vmax.f32 %v454_v7, 0.0  ;;  %v2887_v46 = vld [vmem:[%s3321_s28 + $0x38] sm:$0xff]   ;;  %v3198_v53 = vld [vmem:[%s3785_s1 + $0x160] sm:$0xff]  }
  0x53   : > { %v2652_v12 = vrot.slane %v1023_v62, 11  ;;  %v1030_v13 = vrot.slane %v1028_v63, 7  ;;  %v455_v16 = vadd.f32 %v3446_v44, %v440_v6  ;;  %v582_v28 = vrot.slane %v566_v15, 4  ;;  %v3201_v5 = vld [vmem:[%s3785_s1 + $0x1a0] sm:$0xff]   ;;  %v3202_v6 = vld [vmem:[%s3785_s1 + $0x168] sm:$0xff]  }
  0x54   : > { %2982 = vmatpush3.bf16.msra.mxu0 %v3168_v52  ;;  %v1036_v19 = vshrl.u32 %v2640_v10, 16  ;;  %v1041_v20 = vshrl.u32 %v2641_v11, 16  ;;  %v1044_v21 = vshll.u32 %v2641_v11, 16  ;;  %v703_v22 = vld [vmem:[#allocation2 + $0xf0] sm:$0xf8]  ;;  %v470_v37 = vpack.c.bf16 %v462_v17, %v462_v17 }
  0x55   : > { %v1033_v18 = vor.u32 %v1031_v0, %v1030_v13  ;;  %3022 = vmatpush3.bf16.msra.mxu1 %v3169_v58  ;;  %v2604_v24 = vcombine.low %v703_v22, %v703_v22  ;;  %v2605_v25 = vcombine.high %v703_v22, %v703_v22  ;;  %2983 = vmatprep.subr.bf16.mxu0 %v3180_v2  ;;  %v463_v29 = vmax.f32 %v455_v16, 0.0  ;;  %v3179_v49 = vld [vmem:[#allocation2 + $0xec] ss:$8 sps:$4 sm:$0xff]   ;;  %v3199_v58 = vld [vmem:[%s3785_s1 + $0x1e0] sm:$0xff]   ;;  %v3590_v2 = vld [vmem:[%s3321_s28 + $0x78] sm:$0xff]  }
  0x56   : > { %v2653_v31 = vrot.slane %v1036_v19, 11  ;;  %v1043_v32 = vrot.slane %v1041_v20, 7  ;;  %3023 = vmatprep.subr.bf16.mxu1 %v3181_v4  ;;  %599 = vst [vmem:[#allocation2 + $0xb8] sm:$0xf0] %v582_v28  ;;  %v486_v50 = vrot.slane %v470_v37, 4  ;;  %v631_v51 = vmul.f32 %v2855_v8, %v3438_v34  ;;  %v3200_v0 = vld [vmem:[%s3785_s1 + $0x120] sm:$0xff]  }
  0x57   : > { %v1034_v30 = vsel %vm3479_vm2, %v2652_v12, %v1033_v18  ;;  %v791_v39 = vshrl.u32 %v2604_v24, 16  ;;  %v796_v40 = vshrl.u32 %v2605_v25, 16  ;;  %v799_v41 = vshll.u32 %v2605_v25, 16  ;;  %v3203_v18 = vld [vmem:[%s3785_s1 + $0x1e8] sm:$0xff]  }
  0x58   : > { %v471_v45 = vpack.c.bf16 %v463_v29, %v463_v29  ;;  %v1046_v48 = vor.u32 %v1044_v21, %v1043_v32  ;;  %2984 = vmatpush3.bf16.msra.mxu0 %v3182_v23  ;;  %v653_v52 = vmax.f32 %v3495_v56, 0.0  ;;  %503 = vst [vmem:[#allocation2 + $0x70] sm:$0xf0] %v486_v50  ;;  %v646_v56 = vadd.f32 %v3446_v44, %v631_v51  ;;  %v3205_v25 = vld [vmem:[%s3785_s1 + $0x1a8] sm:$0xff]  }
  0x59   : > { %v2617_v54 = vrot.slane %v791_v39, 11  ;;  %v798_v55 = vrot.slane %v796_v40, 7  ;;  %3024 = vmatpush3.bf16.msra.mxu1 %v3183_v26  ;;  %2985 = vmatprep.subr.bf16.mxu0 %v3184_v27  ;;  %v2843_v61 = vunpack.c.l.bf16 %v3566_v38  ;;  %v536_v1 = vmul.f32 %v2840_v47, %v3438_v34 }
  0x5a   : > { %v487_v57 = vrot.slane %v471_v45, 4  ;;  %v1047_v59 = vsel %vm3479_vm2, %v2653_v31, %v1046_v48  ;;  %3025 = vmatprep.subr.bf16.mxu1 %v3185_v33  ;;  %v661_v60 = vpack.c.bf16 %v653_v52, %v653_v52  ;;  %v2827_v9 = vunpack.c.l.bf16 %v2887_v46 }
  0x5b   : > { %v2659_v62 = vcombine.low %v1034_v30, %v1047_v59  ;;  %v801_v63 = vor.u32 %v799_v41, %v798_v55  ;;  %v654_v3 = vmax.f32 %v646_v56, 0.0  ;;  %v537_v7 = vmul.f32 %v2843_v61, %v3438_v34  ;;  %v3217_v41 = vld [vmem:[%s3785_s1 + $0x1f0] sm:$0xff]  }
  0x5c   : > { %504 = vst [vmem:[#allocation2 + $0x78] sm:$0xf0] %v487_v57  ;;  %2986 = vmatpush3.bf16.msra.mxu0 %v3186_v35  ;;  %v677_v4 = vrot.slane %v661_v60, 4  ;;  %v2828_v8 = vunpack.c.h.bf16 %v2887_v46  ;;  %v551_v11 = vadd.f32 %v3446_v44, %v536_v1  ;;  %v441_v12 = vmul.f32 %v2827_v9, %v3438_v34  ;;  %v3216_v35 = vld [vmem:[%s3785_s1 + $0x170] sm:$0xff]   ;;  %v2798_v1 = vld [vmem:[%s3321_s28] sm:$0xff]  }
  0x5d   : > { %2153 = vmatprep.mubr.bf16.mxu1 %v2659_v62  ;;  %v802_v10 = vsel %vm3479_vm2, %v2617_v54, %v801_v63  ;;  %3026 = vmatpush3.bf16.msra.mxu1 %v3187_v42  ;;  %v2856_v13 = vunpack.c.h.bf16 %v3523_v43  ;;  %v3188_v16 = vld [vmem:[#allocation2 + $0xb4] ss:$8 sps:$4 sm:$0xff]   ;;  %v662_v17 = vpack.c.bf16 %v654_v3, %v654_v3  ;;  %v552_v19 = vadd.f32 %v3446_v44, %v537_v7  ;;  %v3204_v43 = vld [vmem:[%s3785_s1 + $0x128] sm:$0xff]  }
  0x5e   : > { %v2623_v15 = vcombine.low %v3545_v14, %v802_v10  ;;  %2154 = vmatmul.mubr.bf16.gmra.mrb[4].mxu1 %v3179_v49  ;;  %694 = vst [vmem:[#allocation2 + $0xf8] sm:$0xf0] %v677_v4  ;;  %2987 = vmatprep.subr.bf16.mxu0 %v3198_v53  ;;  %v2859_v20 = vunpack.c.l.bf16 %v3590_v2  ;;  %v559_v21 = vmax.f32 %v551_v11, 0.0  ;;  %v442_v14 = vmul.f32 %v2828_v8, %v3438_v34  ;;  %v3218_v54 = vld [vmem:[%s3785_s1 + $0x130] sm:$0xff]  }
  0x5f   : > { %3027 = vmatprep.subr.bf16.mxu1 %v3199_v58  ;;  %v456_v22 = vadd.f32 %v3446_v44, %v441_v12  ;;  %v632_v23 = vmul.f32 %v2856_v13, %v3438_v34  ;;  %v678_v24 = vrot.slane %v662_v17, 4  ;;  %v560_v26 = vmax.f32 %v552_v19, 0.0  ;;  %v952_v29 = vld [vmem:[#allocation2 + $0x70] sm:$0xf8]  ;;  %v3222_v12 = vld [vmem:[%s3785_s1 + $0x138] sm:$0xff]  }
  0x60   : > { %2089 = vmatmul.mubr.bf16.gmra.mrb[4].mxu0 %v2623_v15  ;;  %v633_v27 = vmul.f32 %v2859_v20, %v3438_v34  ;;  %v2844_v28 = vunpack.c.h.bf16 %v3566_v38  ;;  %v567_v30 = vpack.c.bf16 %v559_v21, %v559_v21  ;;  %v457_v31 = vadd.f32 %v3446_v44, %v442_v14  ;;  %v3219_v56 = vld [vmem:[%s3785_s1 + $0x1b0] sm:$0xff]   ;;  %v3652_v19 = vld [vmem:[%s3786_s2] ss:$0 sm:$0xff] }
  0x61   : > { %2096 = vmatprep.mubr.bf16.mxu0 %v3188_v16  ;;  %2988 = vmatpush3.bf16.msra.mxu0 %v3200_v0  ;;  %v464_v32 = vmax.f32 %v456_v22, 0.0  ;;  %v3623_v33 = vadd.f32 %v3446_v44, %v632_v23  ;;  %v2642_v39 = vcombine.low %v952_v29, %v952_v29  ;;  %v2643_v40 = vcombine.high %v952_v29, %v952_v29  ;;  %v3220_v0 = vld [vmem:[%s3785_s1 + $0x178] sm:$0xff]   ;;  %v3662_v23 = vld [vmem:[%s3787_s3] ss:$0 sm:$0xff]  ;;  %v1192_v29 = vld [vmem:[#allocation2 + $0xe0] sm:$0xf8] }
  0x62   : > { %695 = vst [vmem:[#allocation2 + $0x100] sm:$0xf0] %v678_v24  ;;  %3028 = vmatpush3.bf16.msra.mxu1 %v3201_v5  ;;  %2989 = vmatprep.subr.bf16.mxu0 %v3202_v6  ;;  %v568_v34 = vpack.c.bf16 %v560_v26, %v560_v26  ;;  %v2860_v42 = vunpack.c.h.bf16 %v3590_v2  ;;  %v583_v48 = vrot.slane %v567_v30, 4  ;;  %v465_v49 = vmax.f32 %v457_v31, 0.0  ;;  %v3221_v6 = vld [vmem:[%s3785_s1 + $0x1f8] sm:$0xff]   ;;  %v3670_v30 = vld [vmem:[%s3785_s1 + $0x200] sm:$0xff]  }
  0x63   : > { %v953_v37 = vld [vmem:[#allocation2 + $0x78] sm:$0xf8]  ;;  %3029 = vmatprep.subr.bf16.mxu1 %v3203_v18  ;;  %v1049_v50 = vshrl.u32 %v2642_v39, 16  ;;  %v1054_v51 = vshrl.u32 %v2643_v40, 16  ;;  %v1057_v52 = vshll.u32 %v2643_v40, 16  ;;  %v472_v59 = vpack.c.bf16 %v464_v32, %v464_v32 }
  0x64   : > { %v2644_v45 = vcombine.low %v953_v37, %v953_v37  ;;  %v2645_v46 = vcombine.high %v953_v37, %v953_v37  ;;  %v584_v53 = vrot.slane %v568_v34, 4  ;;  %600 = vst [vmem:[#allocation2 + $0xc0] sm:$0xf0] %v583_v48  ;;  %v473_v4 = vpack.c.bf16 %v465_v49, %v465_v49  ;;  %v3265_v38 = vld [vmem:[%s3787_s3] ss:$0 sm:$0xff] }
  0x65   : > { %v704_v47 = vld [vmem:[#allocation2 + $0xf8] sm:$0xf8]  ;;  %2990 = vmatpush3.bf16.msra.mxu0 %v3204_v43  ;;  %v2654_v60 = vrot.slane %v1049_v50, 11  ;;  %v1056_v61 = vrot.slane %v1054_v51, 7  ;;  %v488_v5 = vrot.slane %v472_v59, 4  ;;  %v648_v16 = vadd.f32 %v3446_v44, %v633_v27 }
  0x66   : > { %v1062_v55 = vshrl.u32 %v2644_v45, 16  ;;  %v1067_v57 = vshrl.u32 %v2645_v46, 16  ;;  %v1070_v58 = vshll.u32 %v2645_v46, 16  ;;  %v2606_v62 = vcombine.low %v704_v47, %v704_v47  ;;  %3030 = vmatpush3.bf16.msra.mxu1 %v3205_v25  ;;  %601 = vst [vmem:[#allocation2 + $0xc8] sm:$0xf0] %v584_v53  ;;  %2991 = vmatprep.subr.bf16.mxu0 %v3216_v35  ;;  %v3223_v44 = vld [vmem:[%s3785_s1 + $0x1b8] sm:$0xff]  }
  0x67   : > { %v2607_v63 = vcombine.high %v704_v47, %v704_v47  ;;  %3031 = vmatprep.subr.bf16.mxu1 %v3217_v41  ;;  %v1059_v7 = vor.u32 %v1057_v52, %v1056_v61  ;;  %505 = vst [vmem:[#allocation2 + $0x80] sm:$0xf0] %v488_v5  ;;  %v2799_v17 = vunpack.c.l.bf16 %v2798_v1  ;;  %v2800_v18 = vunpack.c.h.bf16 %v2798_v1  ;;  %v1193_v45 = vld [vmem:[#allocation2 + $0xe8] sm:$0xf8] }
  0x68   : > { %v2655_v9 = vrot.slane %v1062_v55, 11  ;;  %v1069_v3 = vrot.slane %v1067_v57, 7  ;;  %v804_v8 = vshrl.u32 %v2606_v62, 16  ;;  %v489_v26 = vrot.slane %v473_v4, 4 }
  0x69   : > { %v809_v10 = vshrl.u32 %v2607_v63, 16  ;;  %v812_v11 = vshll.u32 %v2607_v63, 16  ;;  %v705_v15 = vld [vmem:[#allocation2 + $0x100] sm:$0xf8]  ;;  %2992 = vmatpush3.bf16.msra.mxu0 %v3218_v54  ;;  %v1060_v20 = vsel %vm3479_vm2, %v2654_v60, %v1059_v7  ;;  %v655_v27 = vmax.f32 %v3623_v33, 0.0  ;;  %v2881_v7 = vld [vmem:[%s3321_s28 + $0x8] sm:$0xff]  }
  0x6a   : > { %v1072_v13 = vor.u32 %v1070_v58, %v1069_v3  ;;  %v2608_v43 = vcombine.low %v705_v15, %v705_v15  ;;  %v2609_v21 = vcombine.high %v705_v15, %v705_v15  ;;  %v2618_v14 = vrot.slane %v804_v8, 11  ;;  %v3197_v22 = vld [vmem:[#allocation2 + $0xfc] ss:$8 sps:$4 sm:$0xff]   ;;  %3032 = vmatpush3.bf16.msra.mxu1 %v3219_v56  ;;  %2993 = vmatprep.subr.bf16.mxu0 %v3220_v0 }
  0x6b   : > { %v811_v25 = vrot.slane %v809_v10, 7  ;;  %3033 = vmatprep.subr.bf16.mxu1 %v3221_v6  ;;  %506 = vst [vmem:[#allocation2 + $0x88] sm:$0xf0] %v489_v26  ;;  %v656_v40 = vmax.f32 %v648_v16, 0.0  ;;  %v663_v34 = vpack.c.bf16 %v655_v27, %v655_v27  ;;  %v339_v41 = vmul.f32 %v2799_v17, %v3652_v19 }
  0x6c   : > { %v1073_v24 = vsel %vm3479_vm2, %v2655_v9, %v1072_v13  ;;  %v817_v32 = vshrl.u32 %v2608_v43, 16  ;;  %v822_v35 = vshrl.u32 %v2609_v21, 16  ;;  %v825_v37 = vshll.u32 %v2609_v21, 16 }
  0x6d   : > { %v2660_v31 = vcombine.low %v1060_v20, %v1073_v24  ;;  %v814_v39 = vor.u32 %v812_v11, %v811_v25  ;;  %2994 = vmatpush3.bf16.msra.mxu0 %v3222_v12  ;;  %v340_v48 = vmul.f32 %v2800_v18, %v3652_v19  ;;  %v2670_v49 = vcombine.low %v1192_v29, %v1192_v29  ;;  %v3206_v63 = vld [vmem:[#allocation2 + $0xc4] ss:$8 sps:$4 sm:$0xff]  }
  0x6e   : > { %v2619_v33 = vrot.slane %v817_v32, 11  ;;  %v824_v46 = vrot.slane %v822_v35, 7  ;;  %3034 = vmatpush3.bf16.msra.mxu1 %v3223_v44  ;;  %v664_v51 = vpack.c.bf16 %v656_v40, %v656_v40  ;;  %v679_v52 = vrot.slane %v663_v34, 4  ;;  %3071 = vmatprep.subr.bf16.mxu0 %v3670_v30  ;;  %v954_v55 = vld [vmem:[#allocation2 + $0x80] sm:$0xf8] }
  0x6f   : > { %2161 = vmatprep.mubr.bf16.mxu1 %v2660_v31  ;;  %v815_v50 = vsel %vm3479_vm2, %v2618_v14, %v814_v39  ;;  %v354_v53 = vadd.f32 %v3662_v23, %v339_v41  ;;  %v355_v57 = vadd.f32 %v3662_v23, %v340_v48  ;;  %v2671_v58 = vcombine.high %v1192_v29, %v1192_v29 }
  0x70   : > { %2162 = vmatmul.mubr.bf16.gmra.mrb[8].mxu1 %v3197_v22  ;;  %v827_v54 = vor.u32 %v825_v37, %v824_v46  ;;  %v2672_v47 = vcombine.low %v1193_v45, %v1193_v45  ;;  %3095 = vmatprep.subr.bf16.mxu1 %v3670_v30  ;;  %v2646_v59 = vcombine.low %v954_v55, %v954_v55  ;;  %v680_v60 = vrot.slane %v664_v51, 4 }
  0x71   : > { %v2647_v56 = vcombine.high %v954_v55, %v954_v55  ;;  %696 = vst [vmem:[#allocation2 + $0x108] sm:$0xf0] %v679_v52  ;;  %v362_v61 = vmax.f32 %v354_v53, 0.0  ;;  %v363_v0 = vmax.f32 %v355_v57, 0.0  ;;  %v3682_v1 = vcombine.high %v1193_v45, %v1193_v45 }
  0x72   : > { %v828_v62 = vsel %vm3479_vm2, %v2619_v33, %v827_v54  ;;  %v1241_v9 = vshrl.u32 %v2670_v49, 16  ;;  %v1075_v4 = vshrl.u32 %v2646_v59, 16  ;;  %697 = vst [vmem:[#allocation2 + $0x110] sm:$0xf0] %v680_v60  ;;  %v955_v8 = vld [vmem:[#allocation2 + $0x88] sm:$0xf8]  ;;  %v2803_v32 = vunpack.c.l.bf16 %v2881_v7 }
  0x73   : > { %v2624_v3 = vcombine.low %v815_v50, %v828_v62  ;;  %v1080_v5 = vshrl.u32 %v2647_v56, 16  ;;  %v1083_v6 = vshll.u32 %v2647_v56, 16  ;;  %v370_v10 = vpack.c.bf16 %v362_v61, %v362_v61  ;;  %v3225_v54 = vld [vmem:[#allocation2 + $0x9c] ss:$8 sps:$4 sm:$0xff]  }
  0x74   : > { %v371_v11 = vpack.c.bf16 %v363_v0, %v363_v0  ;;  %v2686_v12 = vrot.slane %v1241_v9, 11  ;;  %v1246_v13 = vshrl.u32 %v2671_v58, 16  ;;  %v2648_v15 = vcombine.low %v955_v8, %v955_v8  ;;  %v1195_v62 = vld [vmem:[#allocation2 + $0xf8] sm:$0xf8] }
  0x75   : > { %2097 = vmatmul.mubr.bf16.gmra.mrb[8].mxu0 %v2624_v3  ;;  %v2649_v16 = vcombine.high %v955_v8, %v955_v8  ;;  %v2656_v17 = vrot.slane %v1075_v4, 11  ;;  %v1082_v18 = vrot.slane %v1080_v5, 7  ;;  %v386_v20 = vrot.slane %v370_v10, 4 }
  0x76   : > { %2104 = vmatprep.mubr.bf16.mxu0 %v3206_v63  ;;  %v387_v43 = vrot.slane %v371_v11, 4  ;;  %v1248_v21 = vrot.slane %v1246_v13, 7  ;;  %v1249_v14 = vshll.u32 %v2671_v58, 16  ;;  %v1088_v44 = vshrl.u32 %v2648_v15, 16  ;;  %v1194_v58 = vld [vmem:[#allocation2 + $0xf0] sm:$0xf8] }
  0x77   : > { %v1085_v22 = vor.u32 %v1083_v6, %v1082_v18  ;;  %v1093_v24 = vshrl.u32 %v2649_v16, 16  ;;  %v1096_v25 = vshll.u32 %v2649_v16, 16  ;;  %403 = vst [vmem:[#allocation2 + $0x8] sm:$0xf0] %v386_v20  ;;  %v1254_v29 = vshrl.u32 %v2672_v47, 16 }
  0x78   : > { %v706_v26 = vld [vmem:[#allocation2 + $0x108] sm:$0xf8]  ;;  %404 = vst [vmem:[#allocation2 + $0x10] sm:$0xf0] %v387_v43  ;;  %v1251_v27 = vor.u32 %v1249_v14, %v1248_v21  ;;  %v1259_v31 = vshrl.u32 %v3682_v1, 16  ;;  %v2657_v37 = vrot.slane %v1088_v44, 11  ;;  %v2804_v33 = vunpack.c.h.bf16 %v2881_v7 }
  0x79   : > { %v1086_v35 = vsel %vm3479_vm2, %v2656_v17, %v1085_v22  ;;  %v1095_v39 = vrot.slane %v1093_v24, 7  ;;  %v2610_v40 = vcombine.low %v706_v26, %v706_v26  ;;  %v707_v34 = vld [vmem:[#allocation2 + $0x110] sm:$0xf8]  ;;  %v2611_v41 = vcombine.high %v706_v26, %v706_v26  ;;  %v1196_v26 = vld [vmem:[#allocation2 + $0x100] sm:$0xf8] }
  0x7a   : > { %v3690_v45 = vsel %vm3479_vm2, %v2686_v12, %v1251_v27  ;;  %v341_v46 = vmul.f32 %v2803_v32, %v3652_v19  ;;  %v2612_v49 = vcombine.low %v707_v34, %v707_v34  ;;  %v2613_v50 = vcombine.high %v707_v34, %v707_v34  ;;  %v3215_v61 = vld [vmem:[#allocation2 + $0x10c] ss:$8 sps:$4 sm:$0xff]  }
  0x7b   : > { %v1098_v48 = vor.u32 %v1096_v25, %v1095_v39  ;;  %v830_v51 = vshrl.u32 %v2610_v40, 16  ;;  %v835_v52 = vshrl.u32 %v2611_v41, 16  ;;  %v838_v53 = vshll.u32 %v2611_v41, 16  ;;  %v3224_v18 = vld [vmem:[#allocation2 + $0x54] ss:$8 sps:$4 sm:$0xff]  }
  0x7c   : > { %v2687_v55 = vrot.slane %v1254_v29, 11  ;;  %v1261_v57 = vrot.slane %v1259_v31, 7  ;;  %v843_v56 = vshrl.u32 %v2612_v49, 16  ;;  %v848_v60 = vshrl.u32 %v2613_v50, 16  ;;  %v2882_v25 = vld [vmem:[%s3321_s28 + $0x10] sm:$0xff]  }
  0x7d   : > { %v1099_v47 = vsel %vm3479_vm2, %v2657_v37, %v1098_v48  ;;  %v2620_v59 = vrot.slane %v830_v51, 11  ;;  %v837_v0 = vrot.slane %v835_v52, 7  ;;  %v851_v9 = vshll.u32 %v2613_v50, 16  ;;  %v3234_v29 = vld [vmem:[#allocation2 + $0xac] ss:$8 sps:$4 sm:$0xff]  }
  0x7e   : > { %v2661_v63 = vcombine.low %v1086_v35, %v1099_v47  ;;  %v1262_v3 = vshll.u32 %v3682_v1, 16  ;;  %v2621_v4 = vrot.slane %v843_v56, 11  ;;  %v850_v5 = vrot.slane %v848_v60, 7  ;;  %v1197_v37 = vld [vmem:[#allocation2 + $0x108] sm:$0xf8] }
  0x7f   : > { %v342_v6 = vmul.f32 %v2804_v33, %v3652_v19  ;;  %v356_v7 = vadd.f32 %v3662_v23, %v341_v46  ;;  %v840_v8 = vor.u32 %v838_v53, %v837_v0  ;;  %v2674_v11 = vcombine.low %v1194_v58, %v1194_v58  ;;  %v3226_v47 = vld [vmem:[#allocation2 + $0xc] ss:$8 sps:$4 sm:$0xff]  }
  0x80   : > { %2169 = vmatprep.mubr.bf16.mxu1 %v2661_v63  ;;  %v1264_v10 = vor.u32 %v1262_v3, %v1261_v57  ;;  %v2675_v12 = vcombine.high %v1194_v58, %v1194_v58  ;;  %v853_v13 = vor.u32 %v851_v9, %v850_v5  ;;  %v2676_v17 = vcombine.low %v1195_v62, %v1195_v62  ;;  %v3233_v3 = vld [vmem:[#allocation2 + $0x64] ss:$8 sps:$4 sm:$0xff]  }
  0x81   : > { %2170 = vmatmul.mubr.bf16.gmra.mrb[12].mxu1 %v3215_v61  ;;  %v357_v15 = vadd.f32 %v3662_v23, %v342_v6  ;;  %v364_v16 = vmax.f32 %v356_v7, 0.0  ;;  %v841_v1 = vsel %vm3479_vm2, %v2620_v59, %v840_v8  ;;  %v2677_v43 = vcombine.high %v1195_v62, %v1195_v62  ;;  %v2883_v8 = vld [vmem:[%s3321_s28 + $0x18] sm:$0xff]  }
  0x82   : > { %2275 = vmatprep.mubr.bf16.mxu1 %v3225_v54  ;;  %v1265_v20 = vsel %vm3479_vm2, %v2687_v55, %v1264_v10  ;;  %v1267_v21 = vshrl.u32 %v2674_v11, 16  ;;  %v854_v14 = vsel %vm3479_vm2, %v2621_v4, %v853_v13  ;;  %v1272_v32 = vshrl.u32 %v2675_v12, 16  ;;  %v3240_v11 = vld [vmem:[%s3785_s1 + $0x210] sm:$0xff]  }
  0x83   : > { %v2694_v22 = vcombine.low %v3690_v45, %v1265_v20  ;;  %v365_v44 = vmax.f32 %v357_v15, 0.0  ;;  %v372_v24 = vpack.c.bf16 %v364_v16, %v364_v16  ;;  %v2625_v27 = vcombine.low %v841_v1, %v854_v14  ;;  %v3710_v45 = vld [vmem:[%s3785_s1 + $0x208] sm:$0xff]  }
  0x84   : > { %v2688_v31 = vrot.slane %v1267_v21, 11  ;;  %v1275_v35 = vshll.u32 %v2675_v12, 16  ;;  %v1280_v34 = vshrl.u32 %v2676_v17, 16  ;;  %v1285_v41 = vshrl.u32 %v2677_v43, 16 }
  0x85   : > { %v373_v39 = vpack.c.bf16 %v365_v44, %v365_v44  ;;  %v388_v40 = vrot.slane %v372_v24, 4  ;;  %2105 = vmatmul.mubr.bf16.gmra.mrb[12].mxu0 %v2625_v27  ;;  %v1274_v33 = vrot.slane %v1272_v32, 7  ;;  %v1288_v46 = vshll.u32 %v2677_v43, 16  ;;  %v3243_v43 = vld [vmem:[#allocation2 + $0xbc] ss:$8 sps:$4 sm:$0xff]  }
  0x86   : > { %v2807_v48 = vunpack.c.l.bf16 %v2882_v25  ;;  %v2808_v49 = vunpack.c.h.bf16 %v2882_v25  ;;  %2210 = vmatprep.mubr.bf16.mxu0 %v3224_v18  ;;  %v2689_v51 = vrot.slane %v1280_v34, 11  ;;  %v1287_v52 = vrot.slane %v1285_v41, 7  ;;  %v3264_v18 = vld [vmem:[%s3786_s2] ss:$0 sm:$0xff]  ;;  %v3241_v24 = vld [vmem:[%s3785_s1 + $0x218] sm:$0xff]  }
  0x87   : > { %v389_v50 = vrot.slane %v373_v39, 4  ;;  %405 = vst [vmem:[#allocation2 + $0x18] sm:$0xf0] %v388_v40  ;;  %v2678_v53 = vcombine.low %v1196_v26, %v1196_v26  ;;  %v1277_v54 = vor.u32 %v1275_v35, %v1274_v33  ;;  %v2679_v58 = vcombine.high %v1196_v26, %v1196_v26  ;;  %v3242_v34 = vld [vmem:[#allocation2 + $0x74] ss:$8 sps:$4 sm:$0xff]  }
  0x88   : > { %v343_v55 = vmul.f32 %v2807_v48, %v3652_v19  ;;  %v344_v57 = vmul.f32 %v2808_v49, %v3652_v19  ;;  %v1290_v59 = vor.u32 %v1288_v46, %v1287_v52  ;;  %v2680_v56 = vcombine.low %v1197_v37, %v1197_v37  ;;  %v3249_v48 = vld [vmem:[%s3785_s1 + $0x220] sm:$0xff]  }
  0x89   : > { %2276 = vmatmul.mubr.bf16.vlgmr.msra.gmra.mrb[16].mxu1 %v2694_v22  ;;  %406 = vst [vmem:[#allocation2 + $0x20] sm:$0xf0] %v389_v50  ;;  %v2681_v60 = vcombine.high %v1197_v37, %v1197_v37  ;;  %v1293_v61 = vshrl.u32 %v2678_v53, 16  ;;  %v1278_v62 = vsel %vm3479_vm2, %v2688_v31, %v1277_v54  ;;  %v1298_v9 = vshrl.u32 %v2679_v58, 16  ;;  %v1198_v50 = vld [vmem:[#allocation2 + $0x110] sm:$0xf8] }
  0x8a   : > { %3103 = vmatpush3.bf16.msra.mxu1 %v3670_v30  ;;  %2283 = vmatprep.mubr.bf16.mxu1 %v3234_v29  ;;  %v358_v63 = vadd.f32 %v3662_v23, %v343_v55  ;;  %v359_v0 = vadd.f32 %v3662_v23, %v344_v57  ;;  %v1291_v4 = vsel %vm3479_vm2, %v2689_v51, %v1290_v59  ;;  %v1301_v6 = vshll.u32 %v2679_v58, 16 }
  0x8b   : > { %3096 = vmatprep.subr.bf16.mxu1 %v3710_v45  ;;  %v2690_v5 = vrot.slane %v1293_v61, 11  ;;  %v1306_v7 = vshrl.u32 %v2680_v56, 16  ;;  %v2695_v10 = vcombine.low %v1278_v62, %v1291_v4  ;;  %v1300_v15 = vrot.slane %v1298_v9, 7  ;;  %v3251_v61 = vld [vmem:[#allocation2 + $0x84] ss:$8 sps:$4 sm:$0xff]  }
  0x8c   : > { %v366_v12 = vmax.f32 %v358_v63, 0.0  ;;  %v367_v13 = vmax.f32 %v359_v0, 0.0  ;;  %v1311_v17 = vshrl.u32 %v2681_v60, 16  ;;  %v1314_v1 = vshll.u32 %v2681_v60, 16  ;;  %v3258_v63 = vld [vmem:[%s3785_s1 + $0x230] sm:$0xff]  }
  0x8d   : > { %v2691_v16 = vrot.slane %v1306_v7, 11  ;;  %v538_v20 = vmul.f32 %v3264_v18, %v2844_v28  ;;  %2211 = vmatmul.mubr.bf16.vlgmr.msra.gmra.mrb[16].mxu0 %v3226_v47  ;;  %v1303_v22 = vor.u32 %v1301_v6, %v1300_v15  ;;  %v2811_v44 = vunpack.c.l.bf16 %v2883_v8 }
  0x8e   : > { %3104 = vmatpush3.bf16.msra.mxu1 %v3710_v45  ;;  %v374_v21 = vpack.c.bf16 %v366_v12, %v366_v12  ;;  %v375_v14 = vpack.c.bf16 %v367_v13, %v367_v13  ;;  %3072 = vmatpush3.bf16.msra.mxu0 %v3670_v30  ;;  %v1313_v25 = vrot.slane %v1311_v17, 7  ;;  %v2812_v26 = vunpack.c.h.bf16 %v2883_v8 }
  0x8f   : > { %2218 = vmatprep.mubr.bf16.mxu0 %v3233_v3  ;;  %v553_v28 = vadd.f32 %v3265_v38, %v538_v20  ;;  %v634_v27 = vmul.f32 %v3264_v18, %v2860_v42  ;;  %3073 = vmatprep.subr.bf16.mxu0 %v3710_v45  ;;  %v345_v31 = vmul.f32 %v2811_v44, %v3652_v19  ;;  %v3262_v44 = vld [vmem:[#allocation2 + $0xf4] ss:$8 sps:$4 sm:$0xff]  }
  0x90   : > { %3097 = vmatprep.subr.bf16.mxu1 %v3240_v11  ;;  %v390_v29 = vrot.slane %v374_v21, 4  ;;  %v391_v30 = vrot.slane %v375_v14, 4  ;;  %v1316_v32 = vor.u32 %v1314_v1, %v1313_v25  ;;  %v346_v37 = vmul.f32 %v2812_v26, %v3652_v19  ;;  %v3235_v40 = vld [vmem:[#allocation2 + $0x1c] ss:$8 sps:$4 sm:$0xff]  }
  0x91   : > { %2284 = vmatmul.mubr.bf16.gmra.mrb[20].mxu1 %v2695_v10  ;;  %v561_v35 = vmax.f32 %v553_v28, 0.0  ;;  %v649_v39 = vadd.f32 %v3265_v38, %v634_v27  ;;  %v1304_v2 = vsel %vm3479_vm2, %v2690_v5, %v1303_v22  ;;  %v360_v42 = vadd.f32 %v3662_v23, %v345_v31  ;;  %v3259_v5 = vld [vmem:[%s3785_s1 + $0x238] sm:$0xff]   ;;  %v3261_v14 = vld [vmem:[#allocation2 + $0x104] ss:$8 sps:$4 sm:$0xff]  }
  0x92   : > { %3105 = vmatpush3.bf16.msra.mxu1 %v3240_v11  ;;  %2291 = vmatprep.mubr.bf16.mxu1 %v3243_v43  ;;  %407 = vst [vmem:[#allocation2 + $0x28] sm:$0xf0] %v390_v29  ;;  %408 = vst [vmem:[#allocation2 + $0x30] sm:$0xf0] %v391_v30  ;;  %v1317_v41 = vsel %vm3479_vm2, %v2691_v16, %v1316_v32  ;;  %v361_v19 = vadd.f32 %v3662_v23, %v346_v37  ;;  %v3250_v23 = vld [vmem:[%s3785_s1 + $0x228] sm:$0xff]  }
  0x93   : > { %3074 = vmatpush3.bf16.msra.mxu0 %v3710_v45  ;;  %3098 = vmatprep.subr.bf16.mxu1 %v3241_v24  ;;  %v569_v33 = vpack.c.bf16 %v561_v35, %v561_v35  ;;  %v657_v46 = vmax.f32 %v649_v39, 0.0  ;;  %v368_v49 = vmax.f32 %v360_v42, 0.0  ;;  %v2696_v51 = vcombine.low %v1304_v2, %v1317_v41 }
  0x94   : > { %3075 = vmatprep.subr.bf16.mxu0 %v3240_v11  ;;  %v369_v53 = vmax.f32 %v361_v19, 0.0  ;;  %v2683_v58 = vcombine.high %v1198_v50, %v1198_v50  ;;  %v2682_v60 = vcombine.low %v1198_v50, %v1198_v50 }
  0x95   : > { %v585_v52 = vrot.slane %v569_v33, 4  ;;  %v665_v45 = vpack.c.bf16 %v657_v46, %v657_v46  ;;  %2219 = vmatmul.mubr.bf16.gmra.mrb[20].mxu0 %v3235_v40  ;;  %v376_v54 = vpack.c.bf16 %v368_v49, %v368_v49 }
  0x96   : > { %3106 = vmatpush3.bf16.msra.mxu1 %v3241_v24  ;;  %2226 = vmatprep.mubr.bf16.mxu0 %v3242_v34  ;;  %v377_v55 = vpack.c.bf16 %v369_v53, %v369_v53  ;;  %v1324_v62 = vshrl.u32 %v2683_v58, 16  ;;  %v1319_v9 = vshrl.u32 %v2682_v60, 16  ;;  %v1327_v4 = vshll.u32 %v2683_v58, 16 }
  0x97   : > { %3076 = vmatpush3.bf16.msra.mxu0 %v3240_v11  ;;  %602 = vst [vmem:[#allocation2 + $0xd0] sm:$0xf0] %v585_v52  ;;  %v681_v57 = vrot.slane %v665_v45, 4  ;;  %3099 = vmatprep.subr.bf16.mxu1 %v3249_v48  ;;  %v392_v47 = vrot.slane %v376_v54, 4  ;;  %v3260_v11 = vld [vmem:[#allocation2 + $0xe4] ss:$8 sps:$4 sm:$0xff]  }
  0x98   : > { %3077 = vmatprep.subr.bf16.mxu0 %v3241_v24  ;;  %v393_v56 = vrot.slane %v377_v55, 4  ;;  %v1326_v3 = vrot.slane %v1324_v62, 7  ;;  %v2692_v10 = vrot.slane %v1319_v9, 11 }
  0x99   : > { %2292 = vmatmul.mubr.bf16.gmra.mrb[24].mxu1 %v2696_v51  ;;  %698 = vst [vmem:[#allocation2 + $0x118] sm:$0xf0] %v681_v57  ;;  %v3244_v59 = vld [vmem:[#allocation2 + $0x2c] ss:$8 sps:$4 sm:$0xff]   ;;  %409 = vst [vmem:[#allocation2 + $0x38] sm:$0xf0] %v392_v47 }
  0x9a   : > { %3107 = vmatpush3.bf16.msra.mxu1 %v3249_v48  ;;  %410 = vst [vmem:[#allocation2 + $0x40] sm:$0xf0] %v393_v56  ;;  %v1329_v13 = vor.u32 %v1327_v4, %v1326_v3 }
  0x9b   : > { %3078 = vmatpush3.bf16.msra.mxu0 %v3241_v24  ;;  %3100 = vmatprep.subr.bf16.mxu1 %v3250_v23 }
  0x9c   : > { %3079 = vmatprep.subr.bf16.mxu0 %v3249_v48  ;;  %v1330_v20 = vsel %vm3479_vm2, %v2692_v10, %v1329_v13 }
  0x9d   : > { %2227 = vmatmul.mubr.bf16.gmra.mrb[24].mxu0 %v3244_v59 }
  0x9e   : > { %3108 = vmatpush3.bf16.msra.mxu1 %v3250_v23  ;;  %v3252_v0 = vld [vmem:[#allocation2 + $0xcc] ss:$8 sps:$4 sm:$0xff]   ;;  %2234 = vmatprep.mubr.bf16.mxu0 %v3251_v61 }
  0x9f   : > { %3080 = vmatpush3.bf16.msra.mxu0 %v3249_v48  ;;  %2299 = vmatprep.mubr.bf16.mxu1 %v3252_v0 }
  0xa0   : > { %3081 = vmatprep.subr.bf16.mxu0 %v3250_v23  ;;  %v1199_v6 = vld [vmem:[#allocation2 + $0x118] sm:$0xf8]  ;;  %3101 = vmatprep.subr.bf16.mxu1 %v3258_v63 }
  0xa1   : > { %v2684_v7 = vcombine.low %v1199_v6, %v1199_v6  ;;  %v2685_v8 = vcombine.high %v1199_v6, %v1199_v6  ;;  %v3253_v12 = vld [vmem:[#allocation2 + $0x3c] ss:$8 sps:$4 sm:$0xff]  }
  0xa2   : > { %3109 = vmatpush3.bf16.msra.mxu1 %v3258_v63  ;;  %v3263_v24 = vld [vmem:[#allocation2 + $0x114] ss:$8 sps:$4 sm:$0xff]  }
  0xa3   : > { %3082 = vmatpush3.bf16.msra.mxu0 %v3250_v23  ;;  %v1332_v15 = vshrl.u32 %v2684_v7, 16  ;;  %v1337_v16 = vshrl.u32 %v2685_v8, 16  ;;  %3102 = vmatprep.subr.bf16.mxu1 %v3259_v5  ;;  %v1340_v17 = vshll.u32 %v2685_v8, 16 }
  0xa4   : > { %3083 = vmatprep.subr.bf16.mxu0 %v3258_v63 }
  0xa5   : > { %v2693_v1 = vrot.slane %v1332_v15, 11  ;;  %v1339_v18 = vrot.slane %v1337_v16, 7  ;;  %2235 = vmatmul.mubr.bf16.gmra.mrb[28].mxu0 %v3253_v12 }
  0xa6   : > { %3110 = vmatpush3.bf16.msra.mxu1 %v3259_v5  ;;  %3087 = vmatprep.mubr.bf16.mxu0 %v3260_v11 }
  0xa7   : > { %v1342_v43 = vor.u32 %v1340_v17, %v1339_v18  ;;  %3084 = vmatpush3.bf16.msra.mxu0 %v3258_v63 }
  0xa8   : > { %3085 = vmatprep.subr.bf16.mxu0 %v3259_v5 }
  0xa9   : > { %v1343_v21 = vsel %vm3479_vm2, %v2693_v1, %v1342_v43 }
  0xaa   : > { %v2697_v22 = vcombine.low %v1330_v20, %v1343_v21 }
  0xab   : > { %3086 = vmatpush3.bf16.msra.mxu0 %v3259_v5 }
  0xac   : > { %2300 = vmatmul.mubr.bf16.gmra.mrb[28].mxu1 %v2697_v22 }
  0xad   : > { %3091 = vmatprep.mubr.bf16.mxu1 %v3261_v14 }
  0xae   : > { %3088 = vmatmul.mubr.bf16.vlgmr.msra.gmra.mrb[32].mxu0 %v3262_v44 }
  0xb4   : > { %3092 = vmatmul.mubr.bf16.vlgmr.msra.gmra.mrb[32].mxu1 %v3263_v24 }
 0x122   : > { %v2915_v25 = vpop.f32.mrb[0].mxu0 }
 0x123   : > { %v2955_v38 = vpop.f32.mrb[0].mxu1  ;;  %v2916_v28 = vpop.f32.mrb[1].mxu0 }
 0x124   : > { %v2917_v26 = vadd.f32 %v2916_v28, %v2915_v25  ;;  %v2956_v27 = vpop.f32.mrb[1].mxu1  ;;  %v2918_v29 = vpop.f32.mrb[2].mxu0 }
 0x125   : > { %v2957_v30 = vadd.f32 %v2956_v27, %v2955_v38  ;;  %v2958_v31 = vpop.f32.mrb[2].mxu1  ;;  %v2919_v32 = vpop.f32.mrb[3].mxu0 }
 0x126   : > { %v2920_v36 = vadd.f32 %v2919_v32, %v2918_v29  ;;  %v2959_v35 = vpop.f32.mrb[3].mxu1 }
 0x127   : > { %v2148_v37 = vadd.f32 %v2957_v30, %v2917_v26  ;;  %v2960_v39 = vadd.f32 %v2959_v35, %v2958_v31 }
 0x129   : > { %v2151_v40 = vadd.f32 %v2960_v39, %v2920_v36 }
 0x131   : > { %v2961_v2 = vpop.f32.mrb[4].mxu1 }
 0x132   : > { %v2962_v42 = vpop.f32.mrb[5].mxu1 }
 0x133   : > { %v2921_v34 = vpop.f32.mrb[4].mxu0  ;;  %v2963_v41 = vadd.f32 %v2962_v42, %v2961_v2  ;;  %v2964_v33 = vpop.f32.mrb[6].mxu1 }
 0x134   : > { %v2922_v19 = vpop.f32.mrb[5].mxu0  ;;  %v2965_v46 = vpop.f32.mrb[7].mxu1 }
 0x135   : > { %v2923_v48 = vadd.f32 %v2922_v19, %v2921_v34  ;;  %v2924_v49 = vpop.f32.mrb[6].mxu0  ;;  %v2966_v50 = vadd.f32 %v2965_v46, %v2964_v33 }
 0x136   : > { %v2925_v51 = vpop.f32.mrb[7].mxu0 }
 0x137   : > { %v2156_v52 = vadd.f32 %v2963_v41, %v2923_v48  ;;  %v2926_v53 = vadd.f32 %v2925_v51, %v2924_v49 }
 0x139   : > { %v2159_v45 = vadd.f32 %v2966_v50, %v2926_v53 }
 0x143   : > { %v2967_v54 = vpop.f32.mrb[8].mxu1 }
 0x144   : > { %v2968_v23 = vpop.f32.mrb[9].mxu1 }
 0x145   : > { %v2969_v55 = vadd.f32 %v2968_v23, %v2967_v54  ;;  %v2970_v57 = vpop.f32.mrb[10].mxu1 }
 0x146   : > { %v2971_v58 = vpop.f32.mrb[11].mxu1 }
 0x147   : > { %v2972_v47 = vadd.f32 %v2971_v58, %v2970_v57 }
 0x148   : > { %v2927_v59 = vpop.f32.mrb[8].mxu0 }
 0x149   : > { %v2928_v56 = vpop.f32.mrb[9].mxu0 }
 0x14a   : > { %v2929_v60 = vadd.f32 %v2928_v56, %v2927_v59  ;;  %v2930_v61 = vpop.f32.mrb[10].mxu0 }
 0x14b   : > { %v2931_v62 = vpop.f32.mrb[11].mxu0 }
 0x14c   : > { %v2164_v63 = vadd.f32 %v2969_v55, %v2929_v60  ;;  %v2932_v0 = vadd.f32 %v2931_v62, %v2930_v61 }
 0x14e   : > { %v2167_v9 = vadd.f32 %v2972_v47, %v2932_v0 }
 0x154   : > { %v2973_v3 = vpop.f32.mrb[12].mxu1 }
 0x155   : > { %v2974_v4 = vpop.f32.mrb[13].mxu1 }
 0x156   : > { %v2975_v5 = vadd.f32 %v2974_v4, %v2973_v3  ;;  %v2976_v6 = vpop.f32.mrb[14].mxu1 }
 0x157   : > { %v2977_v7 = vpop.f32.mrb[15].mxu1 }
 0x158   : > { %v2978_v8 = vadd.f32 %v2977_v7, %v2976_v6  ;;  %v2933_v10 = vpop.f32.mrb[12].mxu0 }
 0x159   : > { %v2934_v11 = vpop.f32.mrb[13].mxu0 }
 0x15a   : > { %v2935_v12 = vadd.f32 %v2934_v11, %v2933_v10  ;;  %v2936_v13 = vpop.f32.mrb[14].mxu0 }
 0x15b   : > { %v2937_v15 = vpop.f32.mrb[15].mxu0 }
 0x15c   : > { %v3035_v16 = vpop.f32.mrb[16].mxu1  ;;  %v2172_v17 = vadd.f32 %v2975_v5, %v2935_v12  ;;  %v2938_v1 = vadd.f32 %v2937_v15, %v2936_v13 }
 0x15d   : > { %v3036_v18 = vpop.f32.mrb[17].mxu1 }
 0x15e   : > { %v3037_v20 = vadd.f32 %v3036_v18, %v3035_v16  ;;  %v3038_v43 = vpop.f32.mrb[18].mxu1  ;;  %v2175_v21 = vadd.f32 %v2978_v8, %v2938_v1 }
 0x15f   : > { %v3039_v14 = vpop.f32.mrb[19].mxu1 }
 0x160   : > { %v3040_v22 = vadd.f32 %v3039_v14, %v3038_v43  ;;  %v2995_v44 = vpop.f32.mrb[16].mxu0 }
 0x161   : > { %v2996_v24 = vpop.f32.mrb[17].mxu0 }
 0x162   : > { %v2997_v25 = vadd.f32 %v2996_v24, %v2995_v44  ;;  %v2998_v38 = vpop.f32.mrb[18].mxu0 }
 0x163   : > { %v2999_v28 = vpop.f32.mrb[19].mxu0 }
 0x164   : > { %v3041_v26 = vpop.f32.mrb[20].mxu1  ;;  %v2213_v27 = vadd.f32 %v2997_v25, %v2148_v37  ;;  %v3000_v29 = vadd.f32 %v2999_v28, %v2998_v38 }
 0x165   : > { %v3042_v30 = vpop.f32.mrb[21].mxu1 }
 0x166   : > { %v3043_v31 = vadd.f32 %v3042_v30, %v3041_v26  ;;  %v3044_v32 = vpop.f32.mrb[22].mxu1  ;;  %v2216_v36 = vadd.f32 %v3000_v29, %v2151_v40  ;;  %v2278_v39 = vadd.f32 %v3037_v20, %v2213_v27 }
 0x167   : > { %v3045_v35 = vpop.f32.mrb[23].mxu1 }
 0x168   : > { %v3046_v2 = vadd.f32 %v3045_v35, %v3044_v32  ;;  %v3001_v42 = vpop.f32.mrb[20].mxu0  ;;  %v2281_v34 = vadd.f32 %v3040_v22, %v2216_v36 }
 0x169   : > { %v3002_v41 = vpop.f32.mrb[21].mxu0 }
 0x16a   : > { %v3003_v33 = vadd.f32 %v3002_v41, %v3001_v42  ;;  %v3004_v19 = vpop.f32.mrb[22].mxu0 }
 0x16b   : > { %v3005_v46 = vpop.f32.mrb[23].mxu0 }
 0x16c   : > { %v3047_v48 = vpop.f32.mrb[24].mxu1  ;;  %v2221_v49 = vadd.f32 %v3003_v33, %v2156_v52  ;;  %v3006_v50 = vadd.f32 %v3005_v46, %v3004_v19 }
 0x16d   : > { %v3048_v51 = vpop.f32.mrb[25].mxu1 }
 0x16e   : > { %v3049_v53 = vadd.f32 %v3048_v51, %v3047_v48  ;;  %v3050_v37 = vpop.f32.mrb[26].mxu1  ;;  %v2224_v54 = vadd.f32 %v3006_v50, %v2159_v45  ;;  %v2286_v55 = vadd.f32 %v3043_v31, %v2221_v49 }
 0x16f   : > { %v3051_v23 = vpop.f32.mrb[27].mxu1 }
 0x170   : > { %v3052_v57 = vadd.f32 %v3051_v23, %v3050_v37  ;;  %v3007_v40 = vpop.f32.mrb[24].mxu0  ;;  %v2289_v58 = vadd.f32 %v3046_v2, %v2224_v54 }
 0x171   : > { %v3008_v47 = vpop.f32.mrb[25].mxu0 }
 0x172   : > { %v3009_v59 = vadd.f32 %v3008_v47, %v3007_v40  ;;  %v3010_v56 = vpop.f32.mrb[26].mxu0 }
 0x173   : > { %v3011_v60 = vpop.f32.mrb[27].mxu0 }
 0x174   : > { %v2229_v61 = vadd.f32 %v3009_v59, %v2164_v63  ;;  %v3012_v62 = vadd.f32 %v3011_v60, %v3010_v56 }
 0x176   : > { %v2232_v0 = vadd.f32 %v3012_v62, %v2167_v9  ;;  %v2294_v3 = vadd.f32 %v3049_v53, %v2229_v61 }
 0x178   : > { %v3013_v4 = vpop.f32.mrb[28].mxu0  ;;  %v2297_v52 = vadd.f32 %v3052_v57, %v2232_v0 }
 0x179   : > { %v3014_v5 = vpop.f32.mrb[29].mxu0 }
 0x17a   : > { %v3015_v6 = vadd.f32 %v3014_v5, %v3013_v4  ;;  %v3016_v7 = vpop.f32.mrb[30].mxu0 }
 0x17b   : > { %v3017_v8 = vpop.f32.mrb[31].mxu0 }
 0x17c   : > { %v2237_v45 = vadd.f32 %v3015_v6, %v2172_v17  ;;  %v3018_v10 = vadd.f32 %v3017_v8, %v3016_v7 }
 0x17e   : > { %v2240_v12 = vadd.f32 %v3018_v10, %v2175_v21 }
 0x17f   : > { %v3053_v11 = vpop.f32.mrb[28].mxu1 }
 0x180   : > { %v3054_v13 = vpop.f32.mrb[29].mxu1 }
 0x181   : > { %v3055_v15 = vadd.f32 %v3054_v13, %v3053_v11  ;;  %v3056_v16 = vpop.f32.mrb[30].mxu1  ;;  %v3089_v1 = vpop.f32.mrb[32].mxu0 }
 0x182   : > { %v3057_v18 = vpop.f32.mrb[31].mxu1  ;;  %v2351_v20 = vadd.f32 %v3089_v1, %v2286_v55  ;;  %v2342_v63 = vpop.f32.mrb[33].mxu0 }
 0x183   : > { %v3058_v43 = vadd.f32 %v3057_v18, %v3056_v16  ;;  %v2302_v9 = vadd.f32 %v3055_v15, %v2237_v45  ;;  %v2343_v14 = vadd.f32 %v2342_v63, %v2278_v39  ;;  %v3090_v22 = vpop.f32.mrb[34].mxu0 }
 0x184   : > { %v2354_v44 = vadd.f32 %v3090_v22, %v2289_v58  ;;  %v2345_v24 = vpop.f32.mrb[35].mxu0  ;;  %v2429_v32 = vmul.f32 %v2351_v20, %v2351_v20 }
 0x185   : > { %v2305_v25 = vadd.f32 %v3058_v43, %v2240_v12  ;;  %v2346_v17 = vadd.f32 %v2345_v24, %v2281_v34  ;;  %v2427_v21 = vmul.f32 %v2343_v14, %v2343_v14 }
 0x186   : > { %v2869_v38 = vpack.c.bf16 %v2354_v44, %v2351_v20  ;;  %v2430_v34 = vmul.f32 %v2354_v44, %v2354_v44 }
 0x187   : > { %v3093_v28 = vpop.f32.mrb[32].mxu1  ;;  %v2864_v26 = vpack.c.bf16 %v2346_v17, %v2343_v14  ;;  %v2413_v27 = vadd.f32 %v2346_v17, %v2343_v14  ;;  %v2428_v29 = vmul.f32 %v2346_v17, %v2346_v17 }
 0x188   : > { %v2367_v30 = vadd.f32 %v3093_v28, %v2302_v9  ;;  %v2358_v31 = vpop.f32.mrb[33].mxu1  ;;  %2896 = vst [vmem:[%s3326_s8 + $0x8] sm:$0xff] %v2869_v38  }
 0x189   : > { %v2359_v36 = vadd.f32 %v2358_v31, %v2294_v3  ;;  %v3094_v35 = vpop.f32.mrb[34].mxu1  ;;  %2865 = vst [vmem:[%s3326_s8] sm:$0xff] %v2864_v26   ;;  %v2414_v39 = vadd.f32 %v2413_v27, %v2351_v20  ;;  %v2435_v2 = vadd.f32 %v2428_v29, %v2427_v21 }
 0x18a   : > { %v2370_v42 = vadd.f32 %v3094_v35, %v2305_v25  ;;  %v2361_v41 = vpop.f32.mrb[35].mxu1  ;;  %v2433_v55 = vmul.f32 %v2367_v30, %v2367_v30 }
 0x18b   : > { %v2436_v33 = vadd.f32 %v2435_v2, %v2429_v32  ;;  %v2362_v19 = vadd.f32 %v2361_v41, %v2297_v52  ;;  %v2415_v46 = vadd.f32 %v2414_v39, %v2354_v44  ;;  %v2431_v49 = vmul.f32 %v2359_v36, %v2359_v36 }
 0x18c   : > { %v2879_v48 = vpack.c.bf16 %v2370_v42, %v2367_v30  ;;  %v2434_v58 = vmul.f32 %v2370_v42, %v2370_v42 }
 0x18d   : > { %v2874_v50 = vpack.c.bf16 %v2362_v19, %v2359_v36  ;;  %v2416_v51 = vadd.f32 %v2415_v46, %v2359_v36  ;;  %v2437_v53 = vadd.f32 %v2436_v33, %v2430_v34  ;;  %v2432_v54 = vmul.f32 %v2362_v19, %v2362_v19 }
 0x18e   : > { %2898 = vst [vmem:[%s3326_s8 + $0x18] sm:$0xff] %v2879_v48  }
 0x18f   : > { %2897 = vst [vmem:[%s3326_s8 + $0x10] sm:$0xff] %v2874_v50   ;;  %v2417_v37 = vadd.f32 %v2416_v51, %v2362_v19  ;;  %v2438_v23 = vadd.f32 %v2437_v53, %v2431_v49 }
 0x191   : > { %v2418_v57 = vadd.f32 %v2417_v37, %v2367_v30  ;;  %v2439_v40 = vadd.f32 %v2438_v23, %v2432_v54 }
 0x193   : > { %v2419_v47 = vadd.f32 %v2418_v57, %v2370_v42  ;;  %v2440_v59 = vadd.f32 %v2439_v40, %v2433_v55 }
 0x195   : > { %v2420_v56 = vrot.slane %v2419_v47, 4  ;;  %v2441_v60 = vadd.f32 %v2440_v59, %v2434_v58 }
 0x197   : > { %v2421_v61 = vadd.f32 %v2420_v56, %v2419_v47  ;;  %v2442_v62 = vrot.slane %v2441_v60, 4 }
 0x199   : > { %v2422_v0 = vrot.slane %v2421_v61, 2  ;;  %v2443_v3 = vadd.f32 %v2442_v62, %v2441_v60 }
 0x19b   : > { %v2423_v4 = vadd.f32 %v2422_v0, %v2421_v61  ;;  %v2444_v52 = vrot.slane %v2443_v3, 2 }
 0x19d   : > { %v2424_v5 = vrot.slane %v2423_v4, 1  ;;  %v2445_v6 = vadd.f32 %v2444_v52, %v2443_v3 }
 0x19f   : > { %v2425_v7 = vadd.f32 %v2424_v5, %v2423_v4  ;;  %v2446_v8 = vrot.slane %v2445_v6, 1 }
 0x1a1   : > { %2426 = vst [vmem:[%s271_s12] sm:$0x1] %v2425_v7  ;;  %v2447_v45 = vadd.f32 %v2446_v8, %v2445_v6 }
 0x1a3   : > { %2448 = vst [vmem:[%s274_s15] sm:$0x1] %v2447_v45 }
 0x1a4 PF: > { %s17_s21 = sadd.s32 1, %s3272_s21  }
 0x1a5   : > { %p14_p7 = scmp.ge.s32.totalorder %s17_s21, 4  }
 0x1a7   :  { %16 = sbr.rel (!%p14_p7) target bundleno = 1 (0x1), region = 103 }

// kernel: bottleneck_forward.8
= control target key start
LH: loop header
LB: loop body
LE: loop exit
PB: predicated region body
PF: predicated region fallthrough
CT: control target
= control target key end

     0   :  { %s670_s1 = inlined_call_operand.vmem [shape: bf16[128,128], index: 1, kind: input, shape index: {}]   ;;  %s671_s0 = inlined_call_operand.vmem [shape: bf16[128,128], index: 0, kind: input, shape index: {}]   ;;  %s672_s2 = inlined_call_operand.vmem [shape: bf16[128,128], index: 2, kind: output, shape index: {0}]   ;;  %s673_s3 = inlined_call_operand.vmem [shape: f32[1,1,128], index: 3, kind: output, shape index: {1}]   ;;  %s674_s4 = inlined_call_operand.vmem [shape: f32[1,1,128], index: 4, kind: output, shape index: {2}]  }
   0x1   :  { %v551_v0 = vld [vmem:[%s670_s1] sm:$0xff]   ;;  %v552_v1 = vld [vmem:[%s670_s1 + $0x8] sm:$0xff]   ;;  %v553_v2 = vld [vmem:[%s670_s1 + $0x10] sm:$0xff]  }
   0x2   :  { %503 = vmatprep.subr.bf16.mxu0 %v551_v0  ;;  %535 = vmatprep.subr.bf16.mxu1 %v551_v0  ;;  %v554_v3 = vld [vmem:[%s670_s1 + $0x18] sm:$0xff]   ;;  %v559_v4 = vld [vmem:[%s671_s0] sm:$0xff]   ;;  %v556_v7 = vld [vmem:[%s670_s1 + $0x28] sm:$0xff]  }
   0x3   :  { %504 = vmatpush3.bf16.msra.mxu0 %v551_v0  ;;  %543 = vmatpush3.bf16.msra.mxu1 %v551_v0  ;;  %v555_v5 = vld [vmem:[%s670_s1 + $0x20] sm:$0xff]   ;;  %v557_v8 = vld [vmem:[%s670_s1 + $0x30] sm:$0xff]   ;;  %v558_v9 = vld [vmem:[%s670_s1 + $0x38] sm:$0xff]  }
   0x4   :  { %505 = vmatprep.subr.bf16.mxu0 %v552_v1  ;;  %536 = vmatprep.subr.bf16.mxu1 %v552_v1  ;;  %v563_v6 = vld [vmem:[%s671_s0 + $0x20] sm:$0xff]   ;;  %v560_v10 = vld [vmem:[%s671_s0 + $0x8] sm:$0xff]   ;;  %v561_v12 = vld [vmem:[%s671_s0 + $0x10] sm:$0xff]  }
   0x5   :  { %519 = vmatprep.mubr.bf16.mxu0 %v559_v4  ;;  %527 = vmatprep.mubr.bf16.mxu1 %v563_v6  ;;  %v564_v11 = vld [vmem:[%s671_s0 + $0x28] sm:$0xff]   ;;  %v565_v13 = vld [vmem:[%s671_s0 + $0x30] sm:$0xff]   ;;  %v562_v14 = vld [vmem:[%s671_s0 + $0x18] sm:$0xff]  }
   0x6   :  { %v566_v15 = vld [vmem:[%s671_s0 + $0x38] sm:$0xff]  }
   0x7   :  { %506 = vmatpush3.bf16.msra.mxu0 %v552_v1  ;;  %544 = vmatpush3.bf16.msra.mxu1 %v552_v1 }
   0x8   :  { %507 = vmatprep.subr.bf16.mxu0 %v553_v2  ;;  %537 = vmatprep.subr.bf16.mxu1 %v553_v2 }
   0xb   :  { %508 = vmatpush3.bf16.msra.mxu0 %v553_v2  ;;  %545 = vmatpush3.bf16.msra.mxu1 %v553_v2 }
   0xc   :  { %509 = vmatprep.subr.bf16.mxu0 %v554_v3  ;;  %538 = vmatprep.subr.bf16.mxu1 %v554_v3 }
   0xf   :  { %510 = vmatpush3.bf16.msra.mxu0 %v554_v3  ;;  %546 = vmatpush3.bf16.msra.mxu1 %v554_v3 }
  0x10   :  { %511 = vmatprep.subr.bf16.mxu0 %v555_v5  ;;  %539 = vmatprep.subr.bf16.mxu1 %v555_v5 }
  0x13   :  { %512 = vmatpush3.bf16.msra.mxu0 %v555_v5  ;;  %547 = vmatpush3.bf16.msra.mxu1 %v555_v5 }
  0x14   :  { %513 = vmatprep.subr.bf16.mxu0 %v556_v7  ;;  %540 = vmatprep.subr.bf16.mxu1 %v556_v7 }
  0x17   :  { %514 = vmatpush3.bf16.msra.mxu0 %v556_v7  ;;  %548 = vmatpush3.bf16.msra.mxu1 %v556_v7 }
  0x18   :  { %515 = vmatprep.subr.bf16.mxu0 %v557_v8  ;;  %541 = vmatprep.subr.bf16.mxu1 %v557_v8 }
  0x1b   :  { %516 = vmatpush3.bf16.msra.mxu0 %v557_v8  ;;  %549 = vmatpush3.bf16.msra.mxu1 %v557_v8 }
  0x1c   :  { %517 = vmatprep.subr.bf16.mxu0 %v558_v9  ;;  %542 = vmatprep.subr.bf16.mxu1 %v558_v9 }
  0x1f   :  { %518 = vmatpush3.bf16.msra.mxu0 %v558_v9  ;;  %550 = vmatpush3.bf16.msra.mxu1 %v558_v9 }
  0x22   :  { %520 = vmatmul.mubr.bf16.vlgmr.msra.gmra.mrb[0].mxu0 %v560_v10  ;;  %528 = vmatmul.mubr.bf16.vlgmr.msra.gmra.mrb[0].mxu1 %v564_v11 }
  0x23   :  { %523 = vmatprep.mubr.bf16.mxu0 %v561_v12  ;;  %531 = vmatprep.mubr.bf16.mxu1 %v565_v13 }
  0x2a   :  { %524 = vmatmul.mubr.bf16.gmra.mrb[4].mxu0 %v562_v14  ;;  %532 = vmatmul.mubr.bf16.gmra.mrb[4].mxu1 %v566_v15 }
  0xf5   :  { %v521_v16 = vpop.f32.mrb[0].mxu0  ;;  %v529_v17 = vpop.f32.mrb[0].mxu1 }
  0xf6   :  { %v177_v18 = vpop.f32.mrb[1].mxu0  ;;  %v209_v19 = vpop.f32.mrb[1].mxu1  ;;  %v344_v31 = vmul.f32 %v521_v16, %v521_v16  ;;  %v352_v3 = vmul.f32 %v529_v17, %v529_v17 }
  0xf7   :  { %v522_v20 = vpop.f32.mrb[2].mxu0  ;;  %v530_v21 = vpop.f32.mrb[2].mxu1  ;;  %v342_v22 = vmul.f32 %v177_v18, %v177_v18  ;;  %v350_v61 = vmul.f32 %v209_v19, %v209_v19 }
  0xf8   :  { %v448_v23 = vpack.c.bf16 %v522_v20, %v521_v16  ;;  %v180_v24 = vpop.f32.mrb[3].mxu0  ;;  %v468_v25 = vpack.c.bf16 %v530_v21, %v529_v17  ;;  %v212_v26 = vpop.f32.mrb[3].mxu1  ;;  %v345_v34 = vmul.f32 %v522_v20, %v522_v20  ;;  %v353_v6 = vmul.f32 %v530_v21, %v530_v21 }
  0xf9   :  { %v443_v27 = vpack.c.bf16 %v180_v24, %v177_v18  ;;  %v320_v28 = vadd.f32 %v180_v24, %v177_v18  ;;  %v343_v29 = vmul.f32 %v180_v24, %v180_v24  ;;  %v463_v30 = vpack.c.bf16 %v212_v26, %v209_v19 }
  0xfa   :  { %480 = vst [vmem:[%s672_s2 + $0x8] sm:$0xff] %v448_v23   ;;  %484 = vst [vmem:[%s672_s2 + $0x28] sm:$0xff] %v468_v25   ;;  %v351_v2 = vmul.f32 %v212_v26, %v212_v26 }
  0xfb   :  { %444 = vst [vmem:[%s672_s2] sm:$0xff] %v443_v27   ;;  %v321_v32 = vadd.f32 %v521_v16, %v320_v28  ;;  %v358_v33 = vadd.f32 %v343_v29, %v342_v22  ;;  %483 = vst [vmem:[%s672_s2 + $0x20] sm:$0xff] %v463_v30  }
  0xfd   :  { %v359_v35 = vadd.f32 %v358_v33, %v344_v31  ;;  %v525_v36 = vpop.f32.mrb[4].mxu0  ;;  %v322_v37 = vadd.f32 %v522_v20, %v321_v32  ;;  %v533_v38 = vpop.f32.mrb[4].mxu1 }
  0xfe   :  { %v193_v39 = vpop.f32.mrb[5].mxu0  ;;  %v225_v40 = vpop.f32.mrb[5].mxu1  ;;  %v348_v55 = vmul.f32 %v525_v36, %v525_v36  ;;  %v356_v15 = vmul.f32 %v533_v38, %v533_v38 }
  0xff   :  { %v323_v41 = vadd.f32 %v322_v37, %v193_v39  ;;  %v346_v42 = vmul.f32 %v193_v39, %v193_v39  ;;  %v360_v43 = vadd.f32 %v359_v35, %v345_v34  ;;  %v526_v44 = vpop.f32.mrb[6].mxu0  ;;  %v534_v45 = vpop.f32.mrb[6].mxu1  ;;  %v354_v9 = vmul.f32 %v225_v40, %v225_v40 }
 0x100   :  { %v458_v46 = vpack.c.bf16 %v526_v44, %v525_v36  ;;  %v196_v47 = vpop.f32.mrb[7].mxu0  ;;  %v478_v48 = vpack.c.bf16 %v534_v45, %v533_v38  ;;  %v228_v49 = vpop.f32.mrb[7].mxu1  ;;  %v349_v58 = vmul.f32 %v526_v44, %v526_v44 }
 0x101   :  { %v361_v50 = vadd.f32 %v360_v43, %v346_v42  ;;  %v453_v51 = vpack.c.bf16 %v196_v47, %v193_v39  ;;  %v324_v52 = vadd.f32 %v323_v41, %v196_v47  ;;  %v347_v53 = vmul.f32 %v196_v47, %v196_v47 }
 0x102   :  { %482 = vst [vmem:[%s672_s2 + $0x18] sm:$0xff] %v458_v46   ;;  %486 = vst [vmem:[%s672_s2 + $0x38] sm:$0xff] %v478_v48   ;;  %v473_v54 = vpack.c.bf16 %v228_v49, %v225_v40  ;;  %v355_v14 = vmul.f32 %v228_v49, %v228_v49 }
 0x103   :  { %481 = vst [vmem:[%s672_s2 + $0x10] sm:$0xff] %v453_v51   ;;  %v325_v56 = vadd.f32 %v525_v36, %v324_v52  ;;  %v362_v57 = vadd.f32 %v361_v50, %v347_v53 }
 0x104   :  { %485 = vst [vmem:[%s672_s2 + $0x30] sm:$0xff] %v473_v54  }
 0x105   :  { %v363_v59 = vadd.f32 %v362_v57, %v348_v55  ;;  %v326_v60 = vadd.f32 %v526_v44, %v325_v56 }
 0x107   :  { %v327_v62 = vadd.f32 %v326_v60, %v209_v19  ;;  %v364_v63 = vadd.f32 %v363_v59, %v349_v58  ;;  %v357_v19 = vmul.f32 %v534_v45, %v534_v45 }
 0x109   :  { %v365_v0 = vadd.f32 %v364_v63, %v350_v61  ;;  %v328_v1 = vadd.f32 %v327_v62, %v212_v26 }
 0x10b   :  { %v329_v4 = vadd.f32 %v529_v17, %v328_v1  ;;  %v366_v5 = vadd.f32 %v365_v0, %v351_v2 }
 0x10d   :  { %v367_v7 = vadd.f32 %v366_v5, %v352_v3  ;;  %v330_v8 = vadd.f32 %v530_v21, %v329_v4 }
 0x10f   :  { %v331_v10 = vadd.f32 %v330_v8, %v225_v40  ;;  %v368_v11 = vadd.f32 %v367_v7, %v353_v6 }
 0x111   :  { %v369_v12 = vadd.f32 %v368_v11, %v354_v9  ;;  %v332_v13 = vadd.f32 %v331_v10, %v228_v49 }
 0x113   :  { %v333_v16 = vadd.f32 %v533_v38, %v332_v13  ;;  %v370_v18 = vadd.f32 %v369_v12, %v355_v14 }
 0x115   :  { %v334_v20 = vadd.f32 %v534_v45, %v333_v16  ;;  %v371_v22 = vadd.f32 %v370_v18, %v356_v15 }
 0x117   :  { %v335_v23 = vrot.slane %v334_v20, 4  ;;  %v372_v24 = vadd.f32 %v371_v22, %v357_v19 }
 0x119   :  { %v336_v25 = vadd.f32 %v335_v23, %v334_v20  ;;  %v373_v17 = vrot.slane %v372_v24, 4 }
 0x11b   :  { %v337_v26 = vrot.slane %v336_v25, 2  ;;  %v374_v27 = vadd.f32 %v373_v17, %v372_v24 }
 0x11d   :  { %v338_v28 = vadd.f32 %v337_v26, %v336_v25  ;;  %v375_v21 = vrot.slane %v374_v27, 2 }
 0x11f   :  { %v339_v29 = vrot.slane %v338_v28, 1  ;;  %v376_v30 = vadd.f32 %v375_v21, %v374_v27 }
 0x121   :  { %v340_v31 = vadd.f32 %v339_v29, %v338_v28  ;;  %v377_v32 = vrot.slane %v376_v30, 1 }
 0x123   :  { %341 = vst [vmem:[%s673_s3] sm:$0x1] %v340_v31  ;;  %v378_v33 = vadd.f32 %v377_v32, %v376_v30 }
 0x125   :  { %379 = vst [vmem:[%s674_s4] sm:$0x1] %v378_v33 }

// kernel: bottleneck_forward.9
= control target key start
LH: loop header
LB: loop body
LE: loop exit
PB: predicated region body
PF: predicated region fallthrough
CT: control target
= control target key end

     0   :  { %s535_s0 = inlined_call_operand.vmem [shape: bf16[128,128], index: 0, kind: input, shape index: {}]   ;;  %s536_s1 = inlined_call_operand.vmem [shape: bf16[128,128], index: 1, kind: input, shape index: {}]   ;;  %s537_s2 = inlined_call_operand.vmem [shape: f32[1,128], index: 2, kind: input, shape index: {}]   ;;  %s538_s3 = inlined_call_operand.vmem [shape: f32[1,128], index: 3, kind: input, shape index: {}]   ;;  %s539_s4 = inlined_call_operand.vmem [shape: f32[1,128], index: 4, kind: input, shape index: {}]   ;;  %s540_s5 = inlined_call_operand.vmem [shape: f32[1,128], index: 5, kind: input, shape index: {}]   ;;  %s541_s6 = inlined_call_operand.hbm [shape: f32[128,128], index: 6, kind: output, shape index: {}]  }
   0x1   :  { %v249_v0 = vld [vmem:[%s535_s0] sm:$0xff]   ;;  %v312_v9 = vld [vmem:[%s535_s0 + $0x8] sm:$0xff]   ;;  %v313_v20 = vld [vmem:[%s535_s0 + $0x10] sm:$0xff]  }
   0x2   :  { %v397_v1 = vld [vmem:[%s537_s2] ss:$0 sm:$0xff]  ;;  %v250_v2 = vunpack.c.l.bf16 %v249_v0  ;;  %v251_v5 = vunpack.c.h.bf16 %v249_v0  ;;  %v319_v10 = vld [vmem:[%s536_s1 + $0x8] sm:$0xff]   ;;  %v254_v14 = vunpack.c.l.bf16 %v312_v9  ;;  %v255_v18 = vunpack.c.h.bf16 %v312_v9  ;;  %v320_v21 = vld [vmem:[%s536_s1 + $0x10] sm:$0xff]  }
   0x3   :  { %v281_v3 = vld [vmem:[%s536_s1] sm:$0xff]   ;;  %v286_v15 = vunpack.c.l.bf16 %v319_v10  ;;  %v287_v19 = vunpack.c.h.bf16 %v319_v10 }
   0x4   :  { %v405_v4 = vld [vmem:[%s539_s4] ss:$0 sm:$0xff]  ;;  %v282_v7 = vunpack.c.l.bf16 %v281_v3  ;;  %v283_v8 = vunpack.c.h.bf16 %v281_v3  ;;  %v63_v11 = vmul.f32 %v250_v2, %v397_v1  ;;  %v64_v13 = vmul.f32 %v251_v5, %v397_v1 }
   0x5   :  { %v410_v6 = vld [vmem:[%s538_s3] ss:$0 sm:$0xff]  ;;  %v65_v24 = vmul.f32 %v254_v14, %v397_v1  ;;  %v143_v25 = vmul.f32 %v286_v15, %v405_v4  ;;  %v66_v28 = vmul.f32 %v255_v18, %v397_v1  ;;  %v144_v29 = vmul.f32 %v287_v19, %v405_v4 }
   0x6   :  { %v422_v12 = vld [vmem:[%s540_s5] ss:$0 sm:$0xff]  ;;  %v141_v16 = vmul.f32 %v282_v7, %v405_v4  ;;  %v142_v17 = vmul.f32 %v283_v8, %v405_v4  ;;  %v86_v22 = vadd.f32 %v410_v6, %v63_v11  ;;  %v87_v23 = vadd.f32 %v410_v6, %v64_v13 }
   0x8   :  { %v164_v26 = vadd.f32 %v422_v12, %v141_v16  ;;  %v165_v27 = vadd.f32 %v422_v12, %v142_v17 }
   0x9   :  { %11 = vsyncpa [#allocation3], 0  ;;  %v88_v30 = vadd.f32 %v410_v6, %v65_v24  ;;  %v166_v31 = vadd.f32 %v422_v12, %v143_v25  ;;  %v258_v32 = vunpack.c.l.bf16 %v313_v20  ;;  %v290_v33 = vunpack.c.l.bf16 %v320_v21  ;;  %v314_v42 = vld [vmem:[%s535_s0 + $0x18] sm:$0xff]   ;;  %v315_v52 = vld [vmem:[%s535_s0 + $0x20] sm:$0xff]  }
   0xa   :  { %v180_v34 = vadd.f32 %v164_v26, %v86_v22  ;;  %v181_v35 = vadd.f32 %v165_v27, %v87_v23  ;;  %v89_v36 = vadd.f32 %v410_v6, %v66_v28  ;;  %v167_v37 = vadd.f32 %v422_v12, %v144_v29  ;;  %v321_v43 = vld [vmem:[%s536_s1 + $0x18] sm:$0xff]   ;;  %v322_v57 = vld [vmem:[%s536_s1 + $0x20] sm:$0xff]   ;;  %v316_v14 = vld [vmem:[%s535_s0 + $0x28] sm:$0xff]  }
   0xb   :  { %v182_v38 = vadd.f32 %v166_v31, %v88_v30  ;;  %v67_v39 = vmul.f32 %v258_v32, %v397_v1  ;;  %v145_v40 = vmul.f32 %v290_v33, %v405_v4  ;;  %v259_v41 = vunpack.c.h.bf16 %v313_v20  ;;  %v323_v19 = vld [vmem:[%s536_s1 + $0x28] sm:$0xff]   ;;  %v317_v32 = vld [vmem:[%s535_s0 + $0x30] sm:$0xff]  }
   0xc   :  { %v196_v44 = vmax.f32 %v180_v34, 0.0  ;;  %v197_v45 = vmax.f32 %v181_v35, 0.0  ;;  %v183_v46 = vadd.f32 %v167_v37, %v89_v36  ;;  %v291_v47 = vunpack.c.h.bf16 %v320_v21  ;;  %v324_v33 = vld [vmem:[%s536_s1 + $0x30] sm:$0xff]  }
   0xd   :  { %v198_v48 = vmax.f32 %v182_v38, 0.0  ;;  %v90_v49 = vadd.f32 %v410_v6, %v67_v39  ;;  %v168_v50 = vadd.f32 %v422_v12, %v145_v40  ;;  %v68_v51 = vmul.f32 %v259_v41, %v397_v1 }
   0xe   :  { %212 = vst [vmem:[#allocation2] sm:$0xff] %v196_v44  ;;  %213 = vst [vmem:[#allocation2 + $0x8] sm:$0xff] %v197_v45  ;;  %v199_v53 = vmax.f32 %v183_v46, 0.0  ;;  %v146_v54 = vmul.f32 %v291_v47, %v405_v4  ;;  %v262_v55 = vunpack.c.l.bf16 %v314_v42  ;;  %v294_v56 = vunpack.c.l.bf16 %v321_v43  ;;  %v318_v46 = vld [vmem:[%s535_s0 + $0x38] sm:$0xff]   ;;  %s353_s0 = smov [#allocation2]  }
   0xf   :  { %214 = vst [vmem:[#allocation2 + $0x10] sm:$0xff] %v198_v48  ;;  %v184_v58 = vadd.f32 %v168_v50, %v90_v49  ;;  %v91_v59 = vadd.f32 %v410_v6, %v68_v51  ;;  %v263_v60 = vunpack.c.h.bf16 %v314_v42  ;;  %v295_v61 = vunpack.c.h.bf16 %v321_v43 }
  0x10   :  { %215 = vst [vmem:[#allocation2 + $0x18] sm:$0xff] %v199_v53  ;;  %v169_v62 = vadd.f32 %v422_v12, %v146_v54  ;;  %v69_v63 = vmul.f32 %v262_v55, %v397_v1  ;;  %v147_v0 = vmul.f32 %v294_v56, %v405_v4  ;;  %v266_v2 = vunpack.c.l.bf16 %v315_v52  ;;  %v325_v55 = vld [vmem:[%s536_s1 + $0x38] sm:$0xff]   ;;  %s233_s1 = sshll.u32 %s353_s0, 4  ;;  %s234_s1 = int_to_ptr.vmem [resolvable:$true] %s233_s1 }
  0x11   :  { %v200_v3 = vmax.f32 %v184_v58, 0.0  ;;  %v70_v5 = vmul.f32 %v263_v60, %v397_v1  ;;  %v148_v7 = vmul.f32 %v295_v61, %v405_v4  ;;  %v298_v8 = vunpack.c.l.bf16 %v322_v57  ;;  %s329_s8 = scalar_lea.vmem %s234_s1, 2048  ;;  %p334_p1 = scmp.lt.s32.totalorder %s234_s1, %s234_s1 }
  0x12   :  { %v185_v9 = vadd.f32 %v169_v62, %v91_v59  ;;  %v92_v10 = vadd.f32 %v410_v6, %v69_v63  ;;  %v170_v11 = vadd.f32 %v422_v12, %v147_v0  ;;  %v71_v13 = vmul.f32 %v266_v2, %v397_v1  ;;  %p330_p0 = scmp.ne.s32.totalorder %s234_s1, %s329_s8  ;;  %p335_p2 = scmp.lt.s32.totalorder %s329_s8, %s329_s8 }
  0x13   :  { %216 = vst [vmem:[#allocation2 + $0x20] sm:$0xff] %v200_v3  ;;  %v93_v15 = vadd.f32 %v410_v6, %v70_v5  ;;  %v171_v16 = vadd.f32 %v422_v12, %v148_v7  ;;  %v149_v17 = vmul.f32 %v298_v8, %v405_v4  ;;  %v267_v18 = vunpack.c.h.bf16 %v315_v52 }
  0x14   :  { %v201_v20 = vmax.f32 %v185_v9, 0.0  ;;  %v186_v21 = vadd.f32 %v170_v11, %v92_v10  ;;  %v94_v22 = vadd.f32 %v410_v6, %v71_v13  ;;  %v299_v23 = vunpack.c.h.bf16 %v322_v57  ;;  %p336_p3 = por %p335_p2, %p334_p1 }
  0x15   :  { %v187_v24 = vadd.f32 %v171_v16, %v93_v15  ;;  %v172_v25 = vadd.f32 %v422_v12, %v149_v17  ;;  %v72_v26 = vmul.f32 %v267_v18, %v397_v1  ;;  %v270_v27 = vunpack.c.l.bf16 %v316_v14 }
  0x16   :  { %217 = vst [vmem:[#allocation2 + $0x28] sm:$0xff] %v201_v20  ;;  %v202_v28 = vmax.f32 %v186_v21, 0.0  ;;  %v150_v29 = vmul.f32 %v299_v23, %v405_v4  ;;  %v302_v30 = vunpack.c.l.bf16 %v323_v19  ;;  %v271_v31 = vunpack.c.h.bf16 %v316_v14  ;;  %p337_p4 = pnand %p336_p3, %p330_p0 }
  0x17   :  { %v203_v34 = vmax.f32 %v187_v24, 0.0  ;;  %v188_v35 = vadd.f32 %v172_v25, %v94_v22  ;;  %v95_v36 = vadd.f32 %v410_v6, %v72_v26  ;;  %v73_v37 = vmul.f32 %v270_v27, %v397_v1 }
  0x18   :  { %218 = vst [vmem:[#allocation2 + $0x30] sm:$0xff] %v202_v28  ;;  %v173_v38 = vadd.f32 %v422_v12, %v150_v29  ;;  %v151_v39 = vmul.f32 %v302_v30, %v405_v4  ;;  %v74_v40 = vmul.f32 %v271_v31, %v397_v1  ;;  %v303_v41 = vunpack.c.h.bf16 %v323_v19 }
  0x19   :  { %219 = vst [vmem:[#allocation2 + $0x38] sm:$0xff] %v203_v34  ;;  %v204_v42 = vmax.f32 %v188_v35, 0.0  ;;  %v96_v43 = vadd.f32 %v410_v6, %v73_v37  ;;  %v274_v44 = vunpack.c.l.bf16 %v317_v32  ;;  %v306_v45 = vunpack.c.l.bf16 %v324_v33 }
  0x1a   :  { %v189_v47 = vadd.f32 %v173_v38, %v95_v36  ;;  %v174_v48 = vadd.f32 %v422_v12, %v151_v39  ;;  %v97_v49 = vadd.f32 %v410_v6, %v74_v40  ;;  %v152_v50 = vmul.f32 %v303_v41, %v405_v4 }
  0x1b   :  { %220 = vst [vmem:[#allocation2 + $0x40] sm:$0xff] %v204_v42  ;;  %v75_v51 = vmul.f32 %v274_v44, %v397_v1  ;;  %v153_v52 = vmul.f32 %v306_v45, %v405_v4  ;;  %v275_v53 = vunpack.c.h.bf16 %v317_v32  ;;  %v307_v54 = vunpack.c.h.bf16 %v324_v33 }
  0x1c   :  { %v205_v56 = vmax.f32 %v189_v47, 0.0  ;;  %v190_v57 = vadd.f32 %v174_v48, %v96_v43  ;;  %v175_v58 = vadd.f32 %v422_v12, %v152_v50  ;;  %v278_v59 = vunpack.c.l.bf16 %v318_v46 }
  0x1d   :  { %v98_v60 = vadd.f32 %v410_v6, %v75_v51  ;;  %v176_v61 = vadd.f32 %v422_v12, %v153_v52  ;;  %v76_v62 = vmul.f32 %v275_v53, %v397_v1  ;;  %v154_v63 = vmul.f32 %v307_v54, %v405_v4 }
  0x1e   :  { %221 = vst [vmem:[#allocation2 + $0x48] sm:$0xff] %v205_v56  ;;  %v206_v0 = vmax.f32 %v190_v57, 0.0  ;;  %v191_v2 = vadd.f32 %v175_v58, %v97_v49  ;;  %v77_v3 = vmul.f32 %v278_v59, %v397_v1  ;;  %v310_v5 = vunpack.c.l.bf16 %v325_v55 }
  0x1f   :  { %v192_v7 = vadd.f32 %v176_v61, %v98_v60  ;;  %v99_v8 = vadd.f32 %v410_v6, %v76_v62  ;;  %v177_v9 = vadd.f32 %v422_v12, %v154_v63  ;;  %v279_v10 = vunpack.c.h.bf16 %v318_v46 }
  0x20   :  { %222 = vst [vmem:[#allocation2 + $0x50] sm:$0xff] %v206_v0  ;;  %v207_v11 = vmax.f32 %v191_v2, 0.0  ;;  %v100_v13 = vadd.f32 %v410_v6, %v77_v3  ;;  %v155_v14 = vmul.f32 %v310_v5, %v405_v4  ;;  %v311_v15 = vunpack.c.h.bf16 %v325_v55 }
  0x21   :  { %v208_v16 = vmax.f32 %v192_v7, 0.0  ;;  %v193_v17 = vadd.f32 %v177_v9, %v99_v8  ;;  %v78_v18 = vmul.f32 %v279_v10, %v397_v1 }
  0x22   :  { %223 = vst [vmem:[#allocation2 + $0x58] sm:$0xff] %v207_v11  ;;  %v178_v19 = vadd.f32 %v422_v12, %v155_v14  ;;  %v156_v20 = vmul.f32 %v311_v15, %v405_v4 }
  0x23   :  { %224 = vst [vmem:[#allocation2 + $0x60] sm:$0xff] %v208_v16  ;;  %v209_v21 = vmax.f32 %v193_v17, 0.0  ;;  %v101_v22 = vadd.f32 %v410_v6, %v78_v18 }
  0x24   :  { %v194_v23 = vadd.f32 %v178_v19, %v100_v13  ;;  %v179_v24 = vadd.f32 %v422_v12, %v156_v20 }
  0x25   :  { %225 = vst [vmem:[#allocation2 + $0x68] sm:$0xff] %v209_v21 }
  0x26   :  { %v210_v25 = vmax.f32 %v194_v23, 0.0  ;;  %v195_v26 = vadd.f32 %v179_v24, %v101_v22 }
  0x28   :  { %226 = vst [vmem:[#allocation2 + $0x70] sm:$0xff] %v210_v25  ;;  %v211_v1 = vmax.f32 %v195_v26, 0.0 }
  0x2a   :  { %227 = vst [vmem:[#allocation2 + $0x78] sm:$0xff] %v211_v1 }
  0x2b   :  { %340 = shalt.err (!%p337_p4)
}
  0x2c   :  { %s341_s10 = scalar_lea.hbm %s541_s6, 2048 }
  0x2d   :  { %p342_p5 = scmp.ne.s32.totalorder %s541_s6, %s341_s10  ;;  %p345_p6 = scmp.lt.u32.totalorder %s341_s10, %s541_s6 }
  0x2f   :  { %p347_p7 = pnand %p345_p6, %p342_p5 }
  0x31   :  { %350 = shalt.err (!%p347_p7)
}
  0x32   :  { %s354_s5 = smov 128   ;;  %s355_s14 = smov 8  }
  0x33   :  { %239 = dma.vmem_to_hbm [thread:$0]  %s234_s1, 2048, %s541_s6, [#allocation3], %s354_s5, %s354_s5, %s355_s14  }
  0x34   :  { %351 = dma.done.wait [#allocation3], 2048  }
  0x35   :  { %352 = vsyncadd [#allocation3], 4294965248 }
  0x36   :  { %243 = vsyncpa [#allocation3], 1 }

</bundles_post_ra>
